<compile_context>
chip_gen: v6e
topology: v6e:2x2x1
jax: 0.10.0
libtpu: 0.0.40
codegen_flags: <defaults>
</compile_context>

<pallas_src>
import numpy as np
import jax
import jax.numpy as jnp
from jax.experimental import pallas as pl
from jax.experimental.pallas import tpu as pltpu

_NP = 8  # padded batch rows (one sublane group); slab row index = width*8 + n


# --------------------------------------------------------------------------
# Pallas kernel: the whole DQN forward, everything resident in VMEM.
# --------------------------------------------------------------------------
def dqn_kernel(
    # activations
    x0a_ref, x0b_ref, x1_ref, x2_ref,
    # conv2 (with the 1x1 conv1 folded in); uniform + edge bias rows
    v2a_ref, v2b_ref, b2m_ref, b2f_ref, b2l_ref,
    # conv3 / conv4 (two taps fused into one lane-concatenated weight)
    w3cat_ref, b3_ref, w4cat_ref, b4_ref,
    # maxpool + flatten + fc1 (HBM, manual DMA), fc2
    wfc1_hbm_ref, bfc1_ref, wfc2_ref, bfc2_ref,
    # linear_relu_stack
    wl1_ref, bl1_ref, wl2_ref, bl2_ref, wl3_ref, bl3_ref,
    # aggr (cat(logits1, logits2) realized by splitting the first weight)
    wa1a_ref, wa1b_ref, ba1_ref, wa2_ref, ba2_ref, wa3_ref, ba3_ref,
    # act_select (cat(g, x2) via split weight); last layer lane-padded to 128
    ws1a_ref, ws1b_ref, bs1_ref, ws2_ref, bs2_ref,
    # output
    out_ref,
    # scratch
    pad2_ref, pad3_ref, y3_ref, y4_ref, act_ref, wfc1_vmem_ref, dma_sem,
):
    f32 = jnp.float32
    bf16 = jnp.bfloat16
    NP = _NP
    relu = lambda v: jnp.maximum(v, 0.0)
    # bf16 MXU matmul with f32 accumulation (weights are pre-packed bf16).
    mm = lambda a, b: jnp.dot(a.astype(bf16), b, preferred_element_type=f32)

    # Start the fc1 weight DMA first so it overlaps the entire conv stack.
    fc1_copy = pltpu.make_async_copy(wfc1_hbm_ref, wfc1_vmem_ref, dma_sem)
    fc1_copy.start()

    # ------------------------------ conv_stack ------------------------------
    # Conv2d(1,40,(1,1)) folded into Conv2d(40,80,(1,2),stride=2,pad=(0,1)):
    # single input channel => rank-1, so the fused conv is a VPU broadcast FMA
    # over the host-gathered stride-2 taps x0a/x0b.            (17*8, 80) f32
    h2 = x0a_ref[...] * v2a_ref[...] + x0b_ref[...] * v2b_ref[...]
    # MaxPool2d((1,1), stride=1) is the identity.
    # Zero-width-pad conv2 output into scratch; the edge width blocks (w=0 and
    # w=16) get the corrected conv1-bias rows (one conv2 tap hits zero pad).
    pad2_ref[0:NP, :] = jnp.zeros((NP, 80), f32)
    pad2_ref[18 * NP:19 * NP, :] = jnp.zeros((NP, 80), f32)
    pad2_ref[NP:2 * NP, :] = h2[0:NP, :] + b2f_ref[...]
    pad2_ref[2 * NP:17 * NP, :] = h2[NP:16 * NP, :] + b2m_ref[...]
    pad2_ref[17 * NP:18 * NP, :] = h2[16 * NP:17 * NP, :] + b2l_ref[...]

    # Conv2d(80,100,(1,2),stride=1,pad=(0,1)): both kernel taps in ONE MXU pass
    # against the lane-concatenated (80, 256) weight; taps are then combined
    # with a 128-lane / 8-sublane aligned VPU add read from scratch.
    y3_ref[...] = mm(pad2_ref[...], w3cat_ref[...])            # (19*8, 256)
    pad3_ref[0:NP, :] = jnp.zeros((NP, 128), f32)
    pad3_ref[19 * NP:20 * NP, :] = jnp.zeros((NP, 128), f32)
    pad3_ref[NP:19 * NP, :] = (y3_ref[0:18 * NP, 0:128]
                               + y3_ref[NP:19 * NP, 128:256]
                               + b3_ref[...])                  # (18*8, 128)

    # Conv2d(100,120,(1,2),stride=1,pad=(0,1)), same fused-tap trick.
    y4_ref[...] = mm(pad3_ref[...], w4cat_ref[...])            # (20*8, 256)

    # MaxPool2d((1,2),stride=2) + Flatten: pooled width w = max(h4[2w], h4[2w+1])
    # (conv4 bias added AFTER the max - exact since it is uniform per channel),
    # stored into the packed fc1 activation at lanes [128*w, 128*w+128).
    for w in range(9):
        j = 2 * w
        h4_a = (y4_ref[j * NP:(j + 1) * NP, 0:128]
                + y4_ref[(j + 1) * NP:(j + 2) * NP, 128:256])
        h4_b = (y4_ref[(j + 1) * NP:(j + 2) * NP, 0:128]
                + y4_ref[(j + 2) * NP:(j + 3) * NP, 128:256])
        act_ref[:, 128 * w:128 * (w + 1)] = jnp.maximum(h4_a, h4_b) + b4_ref[...]

    # --------------------------- linear_relu_stack ---------------------------
    # Independent of the fc1 weights -> keep it before the DMA wait.
    l = relu(mm(x1_ref[...], wl1_ref[...]) + bl1_ref[...])
    l = relu(mm(l, wl2_ref[...]) + bl2_ref[...])
    logits1 = relu(mm(l, wl3_ref[...]) + bl3_ref[...])         # (8, 12)

    # Flatten + Linear(1080,500) as a single K=1152 matmul, then Linear(500,60).
    fc1_copy.wait()
    hfc = relu(mm(act_ref[...], wfc1_vmem_ref[...]) + bfc1_ref[...])   # (8, 500)
    logits2 = relu(mm(hfc, wfc2_ref[...]) + bfc2_ref[...])             # (8, 60)

    # -------------- aggr: cat((logits1, logits2)) via split weight -----------
    g = relu(mm(logits1, wa1a_ref[...]) + mm(logits2, wa1b_ref[...])
             + ba1_ref[...])
    g = relu(mm(g, wa2_ref[...]) + ba2_ref[...])
    g = relu(mm(g, wa3_ref[...]) + ba3_ref[...])               # (8, 7)

    # -------------- act_select: cat((g, x2)) via split weight ----------------
    s = relu(mm(g, ws1a_ref[...]) + mm(x2_ref[...], ws1b_ref[...])
             + bs1_ref[...])
    # Last Linear pre-padded to 128 output lanes -> single lane-dense store.
    out_ref[...] = relu(mm(s, ws2_ref[...]) + bs2_ref[...])    # (8, 128)


# --------------------------------------------------------------------------
# Parameter init (deterministic, PyTorch layouts: conv OIHW, linear (out,in))
# --------------------------------------------------------------------------
def init_torch_params(key):
    def dense(k, out_f, in_f):
        kw, kb = jax.random.split(k)
        w = jax.random.normal(kw, (out_f, in_f), jnp.float32) / np.sqrt(in_f)
        b = 0.01 * jax.random.normal(kb, (out_f,), jnp.float32)
        return w, b

    def conv(k, out_c, in_c, kw_):
        kw, kb = jax.random.split(k)
        w = jax.random.normal(kw, (out_c, in_c, 1, kw_),
                              jnp.float32) / np.sqrt(in_c * kw_)
        b = 0.01 * jax.random.normal(kb, (out_c,), jnp.float32)
        return w, b

    keys = jax.random.split(key, 14)
    p = {}
    p['c1w'], p['c1b'] = conv(keys[0], 40, 1, 1)
    p['c2w'], p['c2b'] = conv(keys[1], 80, 40, 2)
    p['c3w'], p['c3b'] = conv(keys[2], 100, 80, 2)
    p['c4w'], p['c4b'] = conv(keys[3], 120, 100, 2)
    p['fc1w'], p['fc1b'] = dense(keys[4], 500, 1080)
    p['fc2w'], p['fc2b'] = dense(keys[5], 60, 500)
    p['l1w'], p['l1b'] = dense(keys[6], 27, 27)
    p['l2w'], p['l2b'] = dense(keys[7], 20, 27)
    p['l3w'], p['l3b'] = dense(keys[8], 12, 20)
    p['a1w'], p['a1b'] = dense(keys[9], 40, 72)
    p['a2w'], p['a2b'] = dense(keys[10], 20, 40)
    p['a3w'], p['a3b'] = dense(keys[11], 7, 20)
    p['s1w'], p['s1b'] = dense(keys[12], 6, 9)
    p['s2w'], p['s2b'] = dense(keys[13], 3, 6)
    return p


# --------------------------------------------------------------------------
# One-time host prep: fold conv1 into conv2, fuse conv taps, pack fc1 weight,
# transpose / pack everything to bf16.
# --------------------------------------------------------------------------
_PARAM_ORDER = (
    "v2a", "v2b", "b2m", "b2f", "b2l",
    "w3cat", "b3", "w4cat", "b4",
    "wfc1", "bfc1", "wfc2", "bfc2",
    "wl1", "bl1", "wl2", "bl2", "wl3", "bl3",
    "wa1a", "wa1b", "ba1", "wa2", "ba2", "wa3", "ba3",
    "ws1a", "ws1b", "bs1", "ws2", "bs2",
)


def prepare_params(tp):
    f32, bf16 = jnp.float32, jnp.bfloat16
    row = lambda b: b.reshape(1, -1).astype(f32)
    wt = lambda w: w.T.astype(bf16)

    # Fold the pointwise Conv2d(1,40,(1,1)) into Conv2d(40,80,(1,2),s=2,p=(0,1)).
    w1 = tp['c1w'].reshape(1, 40).astype(f32)
    b1 = tp['c1b'].reshape(1, 40).astype(f32)
    w2a = tp['c2w'][:, :, 0, 0].T.astype(f32)      # (40,80) tap @ orig col 2w-1
    w2b = tp['c2w'][:, :, 0, 1].T.astype(f32)      # (40,80) tap @ orig col 2w
    v2a = w1 @ w2a                                 # (1, 80)
    v2b = w1 @ w2b
    c2b = tp['c2b'].reshape(1, 80).astype(f32)
    ba_t = b1 @ w2a                                # conv1-bias term through tap A
    bb_t = b1 @ w2b                                # conv1-bias term through tap B
    # conv1 bias only contributes where the tap is not zero-padding:
    #   tap A (orig 2w-1) invalid at w=0, tap B (orig 2w) invalid at w=16.
    b2m = c2b + ba_t + bb_t                        # interior widths w=1..15
    b2f = c2b + bb_t                               # w=0 edge
    b2l = c2b + ba_t                               # w=16 edge

    # conv3: both taps lane-concatenated -> (80, 256) bf16 ([tap0|pad|tap1|pad])
    w3cat = jnp.zeros((80, 256), bf16)
    w3cat = w3cat.at[:, 0:100].set(tp['c3w'][:, :, 0, 0].T.astype(bf16))
    w3cat = w3cat.at[:, 128:228].set(tp['c3w'][:, :, 0, 1].T.astype(bf16))
    b3 = jnp.zeros((1, 128), f32).at[:, :100].set(tp['c3b'].astype(f32))

    # conv4: (128, 256) bf16 (input channels padded 100->128, taps concatenated)
    w4cat = jnp.zeros((128, 256), bf16)
    w4cat = w4cat.at[0:100, 0:120].set(tp['c4w'][:, :, 0, 0].T.astype(bf16))
    w4cat = w4cat.at[0:100, 128:248].set(tp['c4w'][:, :, 0, 1].T.astype(bf16))
    b4 = jnp.zeros((1, 128), f32).at[:, :120].set(tp['c4b'].astype(f32))

    # fc1: packed K = 128*w + c (channel slabs zero-padded 120 -> 128 rows);
    # flatten feature index in PyTorch is c*9 + w.
    slabs = tp['fc1w'].reshape(500, 120, 9).transpose(2, 1, 0)     # (9,120,500)
    wfc1 = jnp.zeros((9, 128, 500), bf16).at[:, :120, :].set(
        slabs.astype(bf16)).reshape(9 * 128, 500)

    prep = {
        'v2a': v2a, 'v2b': v2b, 'b2m': b2m, 'b2f': b2f, 'b2l': b2l,
        'w3cat': w3cat, 'b3': b3, 'w4cat': w4cat, 'b4': b4,
        'wfc1': wfc1, 'bfc1': row(tp['fc1b']),
        'wfc2': wt(tp['fc2w']), 'bfc2': row(tp['fc2b']),
        'wl1': wt(tp['l1w']), 'bl1': row(tp['l1b']),
        'wl2': wt(tp['l2w']), 'bl2': row(tp['l2b']),
        'wl3': wt(tp['l3w']), 'bl3': row(tp['l3b']),
        'wa1a': tp['a1w'].T[:12, :].astype(bf16),   # cat order: logits1 first
        'wa1b': tp['a1w'].T[12:, :].astype(bf16),
        'ba1': row(tp['a1b']),
        'wa2': wt(tp['a2w']), 'ba2': row(tp['a2b']),
        'wa3': wt(tp['a3w']), 'ba3': row(tp['a3b']),
        'ws1a': tp['s1w'].T[:7, :].astype(bf16),    # cat order: aggr output first
        'ws1b': tp['s1w'].T[7:, :].astype(bf16),
        'bs1': row(tp['s1b']),
        # zero-pad the last layer to 128 output lanes (lane-dense store)
        'ws2': jnp.zeros((6, 128), bf16).at[:, :3].set(tp['s2w'].T.astype(bf16)),
        'bs2': jnp.zeros((1, 128), f32).at[:, :3].set(tp['s2b'].astype(f32)),
    }
    return prep


# --------------------------------------------------------------------------
# Forward wrapper: tiny per-call layout plumbing + the fused pallas_call.
# --------------------------------------------------------------------------
def dqn_forward(prep, x0, x1, x2):
    n = x0.shape[0]
    assert n <= _NP, "fused kernel handles batch <= 8; add a batch grid for larger N"
    f32 = jnp.float32
    bf16 = jnp.bfloat16
    pad_b = ((0, _NP - n), (0, 0))

    # Gather the stride-2 conv2 taps of x0 (layout plumbing, runs in XLA):
    #   tap A = orig col 2w-1 (zero at w=0), tap B = orig col 2w (zero at w=16).
    x0w = x0.reshape(n, 32).astype(f32)
    xa = jnp.concatenate([jnp.zeros((n, 1), f32), x0w[:, 1::2]], axis=1)  # (n,17)
    xb = jnp.concatenate([x0w[:, 0::2], jnp.zeros((n, 1), f32)], axis=1)  # (n,17)
    x0a = jnp.pad(xa, pad_b).T.reshape(17 * _NP, 1)     # rows = w*8 + n
    x0b = jnp.pad(xb, pad_b).T.reshape(17 * _NP, 1)
    x1p = jnp.pad(x1.astype(f32), pad_b)                # (8, 27)
    x2p = jnp.pad(x2.astype(f32), pad_b)                # (8, 2)

    args = (x0a, x0b, x1p, x2p) + tuple(prep[k] for k in _PARAM_ORDER)

    vmem_spec = pl.BlockSpec(memory_space=pltpu.MemorySpace.VMEM)
    in_specs = [vmem_spec] * len(args)
    # fc1 weight stays in HBM; the kernel overlaps its DMA with the conv stack.
    in_specs[4 + _PARAM_ORDER.index("wfc1")] = pl.BlockSpec(memory_space=pl.ANY)

    out = pl.pallas_call(
        dqn_kernel,
        out_shape=jax.ShapeDtypeStruct((_NP, 128), f32),
        in_specs=in_specs,
        out_specs=pl.BlockSpec(memory_space=pltpu.MemorySpace.VMEM),
        scratch_shapes=[
            pltpu.VMEM((19 * _NP, 80), f32),     # width-padded conv2 output
            pltpu.VMEM((20 * _NP, 128), f32),    # width-padded conv3 output (lane-padded)
            pltpu.VMEM((19 * _NP, 256), f32),    # fused conv3 matmul result
            pltpu.VMEM((20 * _NP, 256), f32),    # fused conv4 matmul result
            pltpu.VMEM((_NP, 9 * 128), f32),     # pooled+flattened fc1 input (packed K)
            pltpu.VMEM((9 * 128, 500), bf16),    # fc1 weight landing buffer
            pltpu.SemaphoreType.DMA(()),         # fc1 weight DMA completion
        ],
        cost_estimate=pl.CostEstimate(flops=27_000_000,
                                      bytes_accessed=1_400_000,
                                      transcendentals=0),
    )(*args)
    return out[:n, :3]


# --------------------------------------------------------------------------
# Pure-JAX f32 reference mirroring the PyTorch module (for verification).
# --------------------------------------------------------------------------
def torch_reference(tp, x0, x1, x2):
    relu = jax.nn.relu

    def conv(x, w, b, stride, pad_w):
        y = jax.lax.conv_general_dilated(
            x, w, window_strides=stride, padding=[(0, 0), (pad_w, pad_w)],
            dimension_numbers=('NCHW', 'OIHW', 'NCHW'))
        return y + b.reshape(1, -1, 1, 1)

    h = conv(x0, tp['c1w'], tp['c1b'], (1, 1), 0)
    h = conv(h, tp['c2w'], tp['c2b'], (2, 2), 1)
    h = conv(h, tp['c3w'], tp['c3b'], (1, 1), 1)
    h = conv(h, tp['c4w'], tp['c4b'], (1, 1), 1)
    h = jax.lax.reduce_window(h, -jnp.inf, jax.lax.max,
                              (1, 1, 1, 2), (1, 1, 2, 2), 'VALID')
    f = h.reshape(h.shape[0], -1)
    f = relu(f @ tp['fc1w'].T + tp['fc1b'])
    logits2 = relu(f @ tp['fc2w'].T + tp['fc2b'])
    l = relu(x1 @ tp['l1w'].T + tp['l1b'])
    l = relu(l @ tp['l2w'].T + tp['l2b'])
    logits1 = relu(l @ tp['l3w'].T + tp['l3b'])
    cat = jnp.concatenate([logits1, logits2], axis=1)
    g = relu(cat @ tp['a1w'].T + tp['a1b'])
    g = relu(g @ tp['a2w'].T + tp['a2b'])
    g = relu(g @ tp['a3w'].T + tp['a3b'])
    cat1 = jnp.concatenate([g, x2], axis=1)
    s = relu(cat1 @ tp['s1w'].T + tp['s1b'])
    return relu(s @ tp['s2w'].T + tp['s2b'])


if __name__ == "__main__":
    key = jax.random.PRNGKey(0)
    kp, k0, k1, k2 = jax.random.split(key, 4)
    tp = init_torch_params(kp)
    prep = prepare_params(tp)          # one-time host/weight prep (hoisted)

    N = 2
    x0 = jax.random.normal(k0, (N, 1, 1, 32), jnp.float32)   # conv branch (NCHW)
    x1 = jax.random.normal(k1, (N, 27), jnp.float32)         # dense branch
    x2 = jax.random.normal(k2, (N, 2), jnp.float32)          # late concat features

    fwd = jax.jit(dqn_forward)
    out = jax.block_until_ready(fwd(prep, x0, x1, x2))
    ref = jax.block_until_ready(torch_reference(tp, x0, x1, x2))
    # bf16 MXU inputs with f32 accumulation -> bf16-level tolerance vs f32 ref.
    np.testing.assert_allclose(np.asarray(out), np.asarray(ref),
                               rtol=2e-2, atol=2e-2)
    print("KERNEL_OK")
</pallas_src>

<mosaic_0001>
module attributes {stable_mosaic.version = 11 : i64} {
  func.func @dqn_kernel(%arg0: memref<136x1xf32, #tpu.memory_space<vmem>>, %arg1: memref<136x1xf32, #tpu.memory_space<vmem>>, %arg2: memref<8x27xf32, #tpu.memory_space<vmem>>, %arg3: memref<8x2xf32, #tpu.memory_space<vmem>>, %arg4: memref<1x80xf32, #tpu.memory_space<vmem>>, %arg5: memref<1x80xf32, #tpu.memory_space<vmem>>, %arg6: memref<1x80xf32, #tpu.memory_space<vmem>>, %arg7: memref<1x80xf32, #tpu.memory_space<vmem>>, %arg8: memref<1x80xf32, #tpu.memory_space<vmem>>, %arg9: memref<80x256xbf16, #tpu.memory_space<vmem>>, %arg10: memref<1x128xf32, #tpu.memory_space<vmem>>, %arg11: memref<128x256xbf16, #tpu.memory_space<vmem>>, %arg12: memref<1x128xf32, #tpu.memory_space<vmem>>, %arg13: memref<1152x500xbf16, #tpu.memory_space<any>>, %arg14: memref<1x500xf32, #tpu.memory_space<vmem>>, %arg15: memref<500x60xbf16, #tpu.memory_space<vmem>>, %arg16: memref<1x60xf32, #tpu.memory_space<vmem>>, %arg17: memref<27x27xbf16, #tpu.memory_space<vmem>>, %arg18: memref<1x27xf32, #tpu.memory_space<vmem>>, %arg19: memref<27x20xbf16, #tpu.memory_space<vmem>>, %arg20: memref<1x20xf32, #tpu.memory_space<vmem>>, %arg21: memref<20x12xbf16, #tpu.memory_space<vmem>>, %arg22: memref<1x12xf32, #tpu.memory_space<vmem>>, %arg23: memref<12x40xbf16, #tpu.memory_space<vmem>>, %arg24: memref<60x40xbf16, #tpu.memory_space<vmem>>, %arg25: memref<1x40xf32, #tpu.memory_space<vmem>>, %arg26: memref<40x20xbf16, #tpu.memory_space<vmem>>, %arg27: memref<1x20xf32, #tpu.memory_space<vmem>>, %arg28: memref<20x7xbf16, #tpu.memory_space<vmem>>, %arg29: memref<1x7xf32, #tpu.memory_space<vmem>>, %arg30: memref<7x6xbf16, #tpu.memory_space<vmem>>, %arg31: memref<2x6xbf16, #tpu.memory_space<vmem>>, %arg32: memref<1x6xf32, #tpu.memory_space<vmem>>, %arg33: memref<6x128xbf16, #tpu.memory_space<vmem>>, %arg34: memref<1x128xf32, #tpu.memory_space<vmem>>, %arg35: memref<8x128xf32, #tpu.memory_space<vmem>>, %arg36: memref<152x80xf32, #tpu.memory_space<vmem>>, %arg37: memref<160x128xf32, #tpu.memory_space<vmem>>, %arg38: memref<152x256xf32, #tpu.memory_space<vmem>>, %arg39: memref<160x256xf32, #tpu.memory_space<vmem>>, %arg40: memref<8x1152xf32, #tpu.memory_space<vmem>>, %arg41: memref<1152x500xbf16, #tpu.memory_space<vmem>>, %arg42: memref<!tpu.dma_semaphore, #tpu.memory_space<semaphore_mem>>) attributes {dimension_semantics = [], scalar_prefetch = 0 : i64, scratch_operands = 7 : i64, tpu.core_type = #tpu.core_type<tc>} {
    tpu.enqueue_dma source(%arg13 : memref<1152x500xbf16, #tpu.memory_space<any>>) target(%arg41 : memref<1152x500xbf16, #tpu.memory_space<vmem>>) target_semaphore(%arg42 : memref<!tpu.dma_semaphore, #tpu.memory_space<semaphore_mem>>)
    %c0 = arith.constant 0 : index
    %c0_0 = arith.constant 0 : index
    %0 = vector.load %arg0[%c0, %c0_0] : memref<136x1xf32, #tpu.memory_space<vmem>>, vector<136x1xf32>
    %c0_1 = arith.constant 0 : index
    %c0_2 = arith.constant 0 : index
    %1 = vector.load %arg4[%c0_1, %c0_2] : memref<1x80xf32, #tpu.memory_space<vmem>>, vector<1x80xf32>
    %2 = vector.broadcast %0 : vector<136x1xf32> to vector<136x80xf32>
    %3 = vector.broadcast %1 : vector<1x80xf32> to vector<136x80xf32>
    %4 = arith.mulf %2, %3 : vector<136x80xf32>
    %c0_3 = arith.constant 0 : index
    %c0_4 = arith.constant 0 : index
    %5 = vector.load %arg1[%c0_3, %c0_4] : memref<136x1xf32, #tpu.memory_space<vmem>>, vector<136x1xf32>
    %c0_5 = arith.constant 0 : index
    %c0_6 = arith.constant 0 : index
    %6 = vector.load %arg5[%c0_5, %c0_6] : memref<1x80xf32, #tpu.memory_space<vmem>>, vector<1x80xf32>
    %7 = vector.broadcast %5 : vector<136x1xf32> to vector<136x80xf32>
    %8 = vector.broadcast %6 : vector<1x80xf32> to vector<136x80xf32>
    %9 = arith.mulf %7, %8 : vector<136x80xf32>
    %10 = arith.addf %4, %9 : vector<136x80xf32>
    %cst = arith.constant 0.000000e+00 : f32
    %11 = vector.broadcast %cst : f32 to vector<8x80xf32>
    %c0_7 = arith.constant 0 : index
    %c0_8 = arith.constant 0 : index
    %12 = vector.load %arg36[%c0_7, %c0_8] : memref<152x80xf32, #tpu.memory_space<vmem>>, vector<8x80xf32>
    tpu.vector_store %arg36[%c0_7, %c0_8], %11 {strides = array<i32>} : memref<152x80xf32, #tpu.memory_space<vmem>>, vector<8x80xf32>,
    %cst_9 = arith.constant 0.000000e+00 : f32
    %13 = vector.broadcast %cst_9 : f32 to vector<8x80xf32>
    %c144 = arith.constant 144 : index
    %c0_10 = arith.constant 0 : index
    %14 = vector.load %arg36[%c144, %c0_10] : memref<152x80xf32, #tpu.memory_space<vmem>>, vector<8x80xf32>
    tpu.vector_store %arg36[%c144, %c0_10], %13 {strides = array<i32>} : memref<152x80xf32, #tpu.memory_space<vmem>>, vector<8x80xf32>,
    %15 = vector.extract_strided_slice %10 {offsets = [0, 0], sizes = [8, 80], strides = [1, 1]} : vector<136x80xf32> to vector<8x80xf32>
    %c0_11 = arith.constant 0 : index
    %c0_12 = arith.constant 0 : index
    %16 = vector.load %arg7[%c0_11, %c0_12] : memref<1x80xf32, #tpu.memory_space<vmem>>, vector<1x80xf32>
    %17 = vector.broadcast %16 : vector<1x80xf32> to vector<8x80xf32>
    %18 = arith.addf %15, %17 : vector<8x80xf32>
    %c8 = arith.constant 8 : index
    %c0_13 = arith.constant 0 : index
    %19 = vector.load %arg36[%c8, %c0_13] : memref<152x80xf32, #tpu.memory_space<vmem>>, vector<8x80xf32>
    tpu.vector_store %arg36[%c8, %c0_13], %18 {strides = array<i32>} : memref<152x80xf32, #tpu.memory_space<vmem>>, vector<8x80xf32>,
    %20 = vector.extract_strided_slice %10 {offsets = [8, 0], sizes = [120, 80], strides = [1, 1]} : vector<136x80xf32> to vector<120x80xf32>
    %c0_14 = arith.constant 0 : index
    %c0_15 = arith.constant 0 : index
    %21 = vector.load %arg6[%c0_14, %c0_15] : memref<1x80xf32, #tpu.memory_space<vmem>>, vector<1x80xf32>
    %22 = vector.broadcast %21 : vector<1x80xf32> to vector<120x80xf32>
    %23 = arith.addf %20, %22 : vector<120x80xf32>
    %c16 = arith.constant 16 : index
    %c0_16 = arith.constant 0 : index
    %24 = vector.load %arg36[%c16, %c0_16] : memref<152x80xf32, #tpu.memory_space<vmem>>, vector<120x80xf32>
    tpu.vector_store %arg36[%c16, %c0_16], %23 {strides = array<i32>} : memref<152x80xf32, #tpu.memory_space<vmem>>, vector<120x80xf32>,
    %25 = vector.extract_strided_slice %10 {offsets = [128, 0], sizes = [8, 80], strides = [1, 1]} : vector<136x80xf32> to vector<8x80xf32>
    %c0_17 = arith.constant 0 : index
    %c0_18 = arith.constant 0 : index
    %26 = vector.load %arg8[%c0_17, %c0_18] : memref<1x80xf32, #tpu.memory_space<vmem>>, vector<1x80xf32>
    %27 = vector.broadcast %26 : vector<1x80xf32> to vector<8x80xf32>
    %28 = arith.addf %25, %27 : vector<8x80xf32>
    %c136 = arith.constant 136 : index
    %c0_19 = arith.constant 0 : index
    %29 = vector.load %arg36[%c136, %c0_19] : memref<152x80xf32, #tpu.memory_space<vmem>>, vector<8x80xf32>
    tpu.vector_store %arg36[%c136, %c0_19], %28 {strides = array<i32>} : memref<152x80xf32, #tpu.memory_space<vmem>>, vector<8x80xf32>,
    %c0_20 = arith.constant 0 : index
    %c0_21 = arith.constant 0 : index
    %30 = vector.load %arg36[%c0_20, %c0_21] : memref<152x80xf32, #tpu.memory_space<vmem>>, vector<152x80xf32>
    %c0_22 = arith.constant 0 : index
    %c0_23 = arith.constant 0 : index
    %31 = vector.load %arg9[%c0_22, %c0_23] : memref<80x256xbf16, #tpu.memory_space<vmem>>, vector<80x256xbf16>
    %32 = arith.truncf %30 : vector<152x80xf32> to vector<152x80xbf16>
    %cst_24 = arith.constant dense<0.000000e+00> : vector<152x256xf32>
    %33 = tpu.matmul %32, %31, %cst_24 {dimension_numbers = #tpu.dot_dimension_numbers<[1], [0], [0], [1], [0, 0, 1, 1], [], []>} : vector<152x80xbf16>, vector<80x256xbf16>, vector<152x256xf32> -> vector<152x256xf32>
    %c0_25 = arith.constant 0 : index
    %c0_26 = arith.constant 0 : index
    %34 = vector.load %arg38[%c0_25, %c0_26] : memref<152x256xf32, #tpu.memory_space<vmem>>, vector<152x256xf32>
    tpu.vector_store %arg38[%c0_25, %c0_26], %33 {strides = array<i32>} : memref<152x256xf32, #tpu.memory_space<vmem>>, vector<152x256xf32>,
    %cst_27 = arith.constant 0.000000e+00 : f32
    %35 = vector.broadcast %cst_27 : f32 to vector<8x128xf32>
    %c0_28 = arith.constant 0 : index
    %c0_29 = arith.constant 0 : index
    %36 = vector.load %arg37[%c0_28, %c0_29] : memref<160x128xf32, #tpu.memory_space<vmem>>, vector<8x128xf32>
    tpu.vector_store %arg37[%c0_28, %c0_29], %35 {strides = array<i32>} : memref<160x128xf32, #tpu.memory_space<vmem>>, vector<8x128xf32>,
    %cst_30 = arith.constant 0.000000e+00 : f32
    %37 = vector.broadcast %cst_30 : f32 to vector<8x128xf32>
    %c152 = arith.constant 152 : index
    %c0_31 = arith.constant 0 : index
    %38 = vector.load %arg37[%c152, %c0_31] : memref<160x128xf32, #tpu.memory_space<vmem>>, vector<8x128xf32>
    tpu.vector_store %arg37[%c152, %c0_31], %37 {strides = array<i32>} : memref<160x128xf32, #tpu.memory_space<vmem>>, vector<8x128xf32>,
    %c0_32 = arith.constant 0 : index
    %c0_33 = arith.constant 0 : index
    %39 = vector.load %arg38[%c0_32, %c0_33] : memref<152x256xf32, #tpu.memory_space<vmem>>, vector<144x128xf32>
    %c8_34 = arith.constant 8 : index
    %c128 = arith.constant 128 : index
    %40 = vector.load %arg38[%c8_34, %c128] : memref<152x256xf32, #tpu.memory_space<vmem>>, vector<144x128xf32>
    %41 = arith.addf %39, %40 : vector<144x128xf32>
    %c0_35 = arith.constant 0 : index
    %c0_36 = arith.constant 0 : index
    %42 = vector.load %arg10[%c0_35, %c0_36] : memref<1x128xf32, #tpu.memory_space<vmem>>, vector<1x128xf32>
    %43 = vector.broadcast %42 : vector<1x128xf32> to vector<144x128xf32>
    %44 = arith.addf %41, %43 : vector<144x128xf32>
    %c8_37 = arith.constant 8 : index
    %c0_38 = arith.constant 0 : index
    %45 = vector.load %arg37[%c8_37, %c0_38] : memref<160x128xf32, #tpu.memory_space<vmem>>, vector<144x128xf32>
    tpu.vector_store %arg37[%c8_37, %c0_38], %44 {strides = array<i32>} : memref<160x128xf32, #tpu.memory_space<vmem>>, vector<144x128xf32>,
    %c0_39 = arith.constant 0 : index
    %c0_40 = arith.constant 0 : index
    %46 = vector.load %arg37[%c0_39, %c0_40] : memref<160x128xf32, #tpu.memory_space<vmem>>, vector<160x128xf32>
    %c0_41 = arith.constant 0 : index
    %c0_42 = arith.constant 0 : index
    %47 = vector.load %arg11[%c0_41, %c0_42] : memref<128x256xbf16, #tpu.memory_space<vmem>>, vector<128x256xbf16>
    %48 = arith.truncf %46 : vector<160x128xf32> to vector<160x128xbf16>
    %cst_43 = arith.constant dense<0.000000e+00> : vector<160x256xf32>
    %49 = tpu.matmul %48, %47, %cst_43 {dimension_numbers = #tpu.dot_dimension_numbers<[1], [0], [0], [1], [0, 0, 1, 1], [], []>} : vector<160x128xbf16>, vector<128x256xbf16>, vector<160x256xf32> -> vector<160x256xf32>
    %c0_44 = arith.constant 0 : index
    %c0_45 = arith.constant 0 : index
    %50 = vector.load %arg39[%c0_44, %c0_45] : memref<160x256xf32, #tpu.memory_space<vmem>>, vector<160x256xf32>
    tpu.vector_store %arg39[%c0_44, %c0_45], %49 {strides = array<i32>} : memref<160x256xf32, #tpu.memory_space<vmem>>, vector<160x256xf32>,
    %c0_46 = arith.constant 0 : index
    %c0_47 = arith.constant 0 : index
    %51 = vector.load %arg39[%c0_46, %c0_47] : memref<160x256xf32, #tpu.memory_space<vmem>>, vector<8x128xf32>
    %c8_48 = arith.constant 8 : index
    %c128_49 = arith.constant 128 : index
    %52 = vector.load %arg39[%c8_48, %c128_49] : memref<160x256xf32, #tpu.memory_space<vmem>>, vector<8x128xf32>
    %53 = arith.addf %51, %52 : vector<8x128xf32>
    %c8_50 = arith.constant 8 : index
    %c0_51 = arith.constant 0 : index
    %54 = vector.load %arg39[%c8_50, %c0_51] : memref<160x256xf32, #tpu.memory_space<vmem>>, vector<8x128xf32>
    %c16_52 = arith.constant 16 : index
    %c128_53 = arith.constant 128 : index
    %55 = vector.load %arg39[%c16_52, %c128_53] : memref<160x256xf32, #tpu.memory_space<vmem>>, vector<8x128xf32>
    %56 = arith.addf %54, %55 : vector<8x128xf32>
    %57 = arith.maximumf %53, %56 : vector<8x128xf32>
    %c0_54 = arith.constant 0 : index
    %c0_55 = arith.constant 0 : index
    %58 = vector.load %arg12[%c0_54, %c0_55] : memref<1x128xf32, #tpu.memory_space<vmem>>, vector<1x128xf32>
    %59 = vector.broadcast %58 : vector<1x128xf32> to vector<8x128xf32>
    %60 = arith.addf %57, %59 : vector<8x128xf32>
    %c0_56 = arith.constant 0 : index
    %c0_57 = arith.constant 0 : index
    %61 = vector.load %arg40[%c0_56, %c0_57] : memref<8x1152xf32, #tpu.memory_space<vmem>>, vector<8x128xf32>
    tpu.vector_store %arg40[%c0_56, %c0_57], %60 {strides = array<i32>} : memref<8x1152xf32, #tpu.memory_space<vmem>>, vector<8x128xf32>,
    %c16_58 = arith.constant 16 : index
    %c0_59 = arith.constant 0 : index
    %62 = vector.load %arg39[%c16_58, %c0_59] : memref<160x256xf32, #tpu.memory_space<vmem>>, vector<8x128xf32>
    %c24 = arith.constant 24 : index
    %c128_60 = arith.constant 128 : index
    %63 = vector.load %arg39[%c24, %c128_60] : memref<160x256xf32, #tpu.memory_space<vmem>>, vector<8x128xf32>
    %64 = arith.addf %62, %63 : vector<8x128xf32>
    %c24_61 = arith.constant 24 : index
    %c0_62 = arith.constant 0 : index
    %65 = vector.load %arg39[%c24_61, %c0_62] : memref<160x256xf32, #tpu.memory_space<vmem>>, vector<8x128xf32>
    %c32 = arith.constant 32 : index
    %c128_63 = arith.constant 128 : index
    %66 = vector.load %arg39[%c32, %c128_63] : memref<160x256xf32, #tpu.memory_space<vmem>>, vector<8x128xf32>
    %67 = arith.addf %65, %66 : vector<8x128xf32>
    %68 = arith.maximumf %64, %67 : vector<8x128xf32>
    %c0_64 = arith.constant 0 : index
    %c0_65 = arith.constant 0 : index
    %69 = vector.load %arg12[%c0_64, %c0_65] : memref<1x128xf32, #tpu.memory_space<vmem>>, vector<1x128xf32>
    %70 = vector.broadcast %69 : vector<1x128xf32> to vector<8x128xf32>
    %71 = arith.addf %68, %70 : vector<8x128xf32>
    %c0_66 = arith.constant 0 : index
    %c128_67 = arith.constant 128 : index
    %72 = vector.load %arg40[%c0_66, %c128_67] : memref<8x1152xf32, #tpu.memory_space<vmem>>, vector<8x128xf32>
    tpu.vector_store %arg40[%c0_66, %c128_67], %71 {strides = array<i32>} : memref<8x1152xf32, #tpu.memory_space<vmem>>, vector<8x128xf32>,
    %c32_68 = arith.constant 32 : index
    %c0_69 = arith.constant 0 : index
    %73 = vector.load %arg39[%c32_68, %c0_69] : memref<160x256xf32, #tpu.memory_space<vmem>>, vector<8x128xf32>
    %c40 = arith.constant 40 : index
    %c128_70 = arith.constant 128 : index
    %74 = vector.load %arg39[%c40, %c128_70] : memref<160x256xf32, #tpu.memory_space<vmem>>, vector<8x128xf32>
    %75 = arith.addf %73, %74 : vector<8x128xf32>
    %c40_71 = arith.constant 40 : index
    %c0_72 = arith.constant 0 : index
    %76 = vector.load %arg39[%c40_71, %c0_72] : memref<160x256xf32, #tpu.memory_space<vmem>>, vector<8x128xf32>
    %c48 = arith.constant 48 : index
    %c128_73 = arith.constant 128 : index
    %77 = vector.load %arg39[%c48, %c128_73] : memref<160x256xf32, #tpu.memory_space<vmem>>, vector<8x128xf32>
    %78 = arith.addf %76, %77 : vector<8x128xf32>
    %79 = arith.maximumf %75, %78 : vector<8x128xf32>
    %c0_74 = arith.constant 0 : index
    %c0_75 = arith.constant 0 : index
    %80 = vector.load %arg12[%c0_74, %c0_75] : memref<1x128xf32, #tpu.memory_space<vmem>>, vector<1x128xf32>
    %81 = vector.broadcast %80 : vector<1x128xf32> to vector<8x128xf32>
    %82 = arith.addf %79, %81 : vector<8x128xf32>
    %c0_76 = arith.constant 0 : index
    %c256 = arith.constant 256 : index
    %83 = vector.load %arg40[%c0_76, %c256] : memref<8x1152xf32, #tpu.memory_space<vmem>>, vector<8x128xf32>
    tpu.vector_store %arg40[%c0_76, %c256], %82 {strides = array<i32>} : memref<8x1152xf32, #tpu.memory_space<vmem>>, vector<8x128xf32>,
    %c48_77 = arith.constant 48 : index
    %c0_78 = arith.constant 0 : index
    %84 = vector.load %arg39[%c48_77, %c0_78] : memref<160x256xf32, #tpu.memory_space<vmem>>, vector<8x128xf32>
    %c56 = arith.constant 56 : index
    %c128_79 = arith.constant 128 : index
    %85 = vector.load %arg39[%c56, %c128_79] : memref<160x256xf32, #tpu.memory_space<vmem>>, vector<8x128xf32>
    %86 = arith.addf %84, %85 : vector<8x128xf32>
    %c56_80 = arith.constant 56 : index
    %c0_81 = arith.constant 0 : index
    %87 = vector.load %arg39[%c56_80, %c0_81] : memref<160x256xf32, #tpu.memory_space<vmem>>, vector<8x128xf32>
    %c64 = arith.constant 64 : index
    %c128_82 = arith.constant 128 : index
    %88 = vector.load %arg39[%c64, %c128_82] : memref<160x256xf32, #tpu.memory_space<vmem>>, vector<8x128xf32>
    %89 = arith.addf %87, %88 : vector<8x128xf32>
    %90 = arith.maximumf %86, %89 : vector<8x128xf32>
    %c0_83 = arith.constant 0 : index
    %c0_84 = arith.constant 0 : index
    %91 = vector.load %arg12[%c0_83, %c0_84] : memref<1x128xf32, #tpu.memory_space<vmem>>, vector<1x128xf32>
    %92 = vector.broadcast %91 : vector<1x128xf32> to vector<8x128xf32>
    %93 = arith.addf %90, %92 : vector<8x128xf32>
    %c0_85 = arith.constant 0 : index
    %c384 = arith.constant 384 : index
    %94 = vector.load %arg40[%c0_85, %c384] : memref<8x1152xf32, #tpu.memory_space<vmem>>, vector<8x128xf32>
    tpu.vector_store %arg40[%c0_85, %c384], %93 {strides = array<i32>} : memref<8x1152xf32, #tpu.memory_space<vmem>>, vector<8x128xf32>,
    %c64_86 = arith.constant 64 : index
    %c0_87 = arith.constant 0 : index
    %95 = vector.load %arg39[%c64_86, %c0_87] : memref<160x256xf32, #tpu.memory_space<vmem>>, vector<8x128xf32>
    %c72 = arith.constant 72 : index
    %c128_88 = arith.constant 128 : index
    %96 = vector.load %arg39[%c72, %c128_88] : memref<160x256xf32, #tpu.memory_space<vmem>>, vector<8x128xf32>
    %97 = arith.addf %95, %96 : vector<8x128xf32>
    %c72_89 = arith.constant 72 : index
    %c0_90 = arith.constant 0 : index
    %98 = vector.load %arg39[%c72_89, %c0_90] : memref<160x256xf32, #tpu.memory_space<vmem>>, vector<8x128xf32>
    %c80 = arith.constant 80 : index
    %c128_91 = arith.constant 128 : index
    %99 = vector.load %arg39[%c80, %c128_91] : memref<160x256xf32, #tpu.memory_space<vmem>>, vector<8x128xf32>
    %100 = arith.addf %98, %99 : vector<8x128xf32>
    %101 = arith.maximumf %97, %100 : vector<8x128xf32>
    %c0_92 = arith.constant 0 : index
    %c0_93 = arith.constant 0 : index
    %102 = vector.load %arg12[%c0_92, %c0_93] : memref<1x128xf32, #tpu.memory_space<vmem>>, vector<1x128xf32>
    %103 = vector.broadcast %102 : vector<1x128xf32> to vector<8x128xf32>
    %104 = arith.addf %101, %103 : vector<8x128xf32>
    %c0_94 = arith.constant 0 : index
    %c512 = arith.constant 512 : index
    %105 = vector.load %arg40[%c0_94, %c512] : memref<8x1152xf32, #tpu.memory_space<vmem>>, vector<8x128xf32>
    tpu.vector_store %arg40[%c0_94, %c512], %104 {strides = array<i32>} : memref<8x1152xf32, #tpu.memory_space<vmem>>, vector<8x128xf32>,
    %c80_95 = arith.constant 80 : index
    %c0_96 = arith.constant 0 : index
    %106 = vector.load %arg39[%c80_95, %c0_96] : memref<160x256xf32, #tpu.memory_space<vmem>>, vector<8x128xf32>
    %c88 = arith.constant 88 : index
    %c128_97 = arith.constant 128 : index
    %107 = vector.load %arg39[%c88, %c128_97] : memref<160x256xf32, #tpu.memory_space<vmem>>, vector<8x128xf32>
    %108 = arith.addf %106, %107 : vector<8x128xf32>
    %c88_98 = arith.constant 88 : index
    %c0_99 = arith.constant 0 : index
    %109 = vector.load %arg39[%c88_98, %c0_99] : memref<160x256xf32, #tpu.memory_space<vmem>>, vector<8x128xf32>
    %c96 = arith.constant 96 : index
    %c128_100 = arith.constant 128 : index
    %110 = vector.load %arg39[%c96, %c128_100] : memref<160x256xf32, #tpu.memory_space<vmem>>, vector<8x128xf32>
    %111 = arith.addf %109, %110 : vector<8x128xf32>
    %112 = arith.maximumf %108, %111 : vector<8x128xf32>
    %c0_101 = arith.constant 0 : index
    %c0_102 = arith.constant 0 : index
    %113 = vector.load %arg12[%c0_101, %c0_102] : memref<1x128xf32, #tpu.memory_space<vmem>>, vector<1x128xf32>
    %114 = vector.broadcast %113 : vector<1x128xf32> to vector<8x128xf32>
    %115 = arith.addf %112, %114 : vector<8x128xf32>
    %c0_103 = arith.constant 0 : index
    %c640 = arith.constant 640 : index
    %116 = vector.load %arg40[%c0_103, %c640] : memref<8x1152xf32, #tpu.memory_space<vmem>>, vector<8x128xf32>
    tpu.vector_store %arg40[%c0_103, %c640], %115 {strides = array<i32>} : memref<8x1152xf32, #tpu.memory_space<vmem>>, vector<8x128xf32>,
    %c96_104 = arith.constant 96 : index
    %c0_105 = arith.constant 0 : index
    %117 = vector.load %arg39[%c96_104, %c0_105] : memref<160x256xf32, #tpu.memory_space<vmem>>, vector<8x128xf32>
    %c104 = arith.constant 104 : index
    %c128_106 = arith.constant 128 : index
    %118 = vector.load %arg39[%c104, %c128_106] : memref<160x256xf32, #tpu.memory_space<vmem>>, vector<8x128xf32>
    %119 = arith.addf %117, %118 : vector<8x128xf32>
    %c104_107 = arith.constant 104 : index
    %c0_108 = arith.constant 0 : index
    %120 = vector.load %arg39[%c104_107, %c0_108] : memref<160x256xf32, #tpu.memory_space<vmem>>, vector<8x128xf32>
    %c112 = arith.constant 112 : index
    %c128_109 = arith.constant 128 : index
    %121 = vector.load %arg39[%c112, %c128_109] : memref<160x256xf32, #tpu.memory_space<vmem>>, vector<8x128xf32>
    %122 = arith.addf %120, %121 : vector<8x128xf32>
    %123 = arith.maximumf %119, %122 : vector<8x128xf32>
    %c0_110 = arith.constant 0 : index
    %c0_111 = arith.constant 0 : index
    %124 = vector.load %arg12[%c0_110, %c0_111] : memref<1x128xf32, #tpu.memory_space<vmem>>, vector<1x128xf32>
    %125 = vector.broadcast %124 : vector<1x128xf32> to vector<8x128xf32>
    %126 = arith.addf %123, %125 : vector<8x128xf32>
    %c0_112 = arith.constant 0 : index
    %c768 = arith.constant 768 : index
    %127 = vector.load %arg40[%c0_112, %c768] : memref<8x1152xf32, #tpu.memory_space<vmem>>, vector<8x128xf32>
    tpu.vector_store %arg40[%c0_112, %c768], %126 {strides = array<i32>} : memref<8x1152xf32, #tpu.memory_space<vmem>>, vector<8x128xf32>,
    %c112_113 = arith.constant 112 : index
    %c0_114 = arith.constant 0 : index
    %128 = vector.load %arg39[%c112_113, %c0_114] : memref<160x256xf32, #tpu.memory_space<vmem>>, vector<8x128xf32>
    %c120 = arith.constant 120 : index
    %c128_115 = arith.constant 128 : index
    %129 = vector.load %arg39[%c120, %c128_115] : memref<160x256xf32, #tpu.memory_space<vmem>>, vector<8x128xf32>
    %130 = arith.addf %128, %129 : vector<8x128xf32>
    %c120_116 = arith.constant 120 : index
    %c0_117 = arith.constant 0 : index
    %131 = vector.load %arg39[%c120_116, %c0_117] : memref<160x256xf32, #tpu.memory_space<vmem>>, vector<8x128xf32>
    %c128_118 = arith.constant 128 : index
    %c128_119 = arith.constant 128 : index
    %132 = vector.load %arg39[%c128_118, %c128_119] : memref<160x256xf32, #tpu.memory_space<vmem>>, vector<8x128xf32>
    %133 = arith.addf %131, %132 : vector<8x128xf32>
    %134 = arith.maximumf %130, %133 : vector<8x128xf32>
    %c0_120 = arith.constant 0 : index
    %c0_121 = arith.constant 0 : index
    %135 = vector.load %arg12[%c0_120, %c0_121] : memref<1x128xf32, #tpu.memory_space<vmem>>, vector<1x128xf32>
    %136 = vector.broadcast %135 : vector<1x128xf32> to vector<8x128xf32>
    %137 = arith.addf %134, %136 : vector<8x128xf32>
    %c0_122 = arith.constant 0 : index
    %c896 = arith.constant 896 : index
    %138 = vector.load %arg40[%c0_122, %c896] : memref<8x1152xf32, #tpu.memory_space<vmem>>, vector<8x128xf32>
    tpu.vector_store %arg40[%c0_122, %c896], %137 {strides = array<i32>} : memref<8x1152xf32, #tpu.memory_space<vmem>>, vector<8x128xf32>,
    %c128_123 = arith.constant 128 : index
    %c0_124 = arith.constant 0 : index
    %139 = vector.load %arg39[%c128_123, %c0_124] : memref<160x256xf32, #tpu.memory_space<vmem>>, vector<8x128xf32>
    %c136_125 = arith.constant 136 : index
    %c128_126 = arith.constant 128 : index
    %140 = vector.load %arg39[%c136_125, %c128_126] : memref<160x256xf32, #tpu.memory_space<vmem>>, vector<8x128xf32>
    %141 = arith.addf %139, %140 : vector<8x128xf32>
    %c136_127 = arith.constant 136 : index
    %c0_128 = arith.constant 0 : index
    %142 = vector.load %arg39[%c136_127, %c0_128] : memref<160x256xf32, #tpu.memory_space<vmem>>, vector<8x128xf32>
    %c144_129 = arith.constant 144 : index
    %c128_130 = arith.constant 128 : index
    %143 = vector.load %arg39[%c144_129, %c128_130] : memref<160x256xf32, #tpu.memory_space<vmem>>, vector<8x128xf32>
    %144 = arith.addf %142, %143 : vector<8x128xf32>
    %145 = arith.maximumf %141, %144 : vector<8x128xf32>
    %c0_131 = arith.constant 0 : index
    %c0_132 = arith.constant 0 : index
    %146 = vector.load %arg12[%c0_131, %c0_132] : memref<1x128xf32, #tpu.memory_space<vmem>>, vector<1x128xf32>
    %147 = vector.broadcast %146 : vector<1x128xf32> to vector<8x128xf32>
    %148 = arith.addf %145, %147 : vector<8x128xf32>
    %c0_133 = arith.constant 0 : index
    %c1024 = arith.constant 1024 : index
    %149 = vector.load %arg40[%c0_133, %c1024] : memref<8x1152xf32, #tpu.memory_space<vmem>>, vector<8x128xf32>
    tpu.vector_store %arg40[%c0_133, %c1024], %148 {strides = array<i32>} : memref<8x1152xf32, #tpu.memory_space<vmem>>, vector<8x128xf32>,
    %c0_134 = arith.constant 0 : index
    %c0_135 = arith.constant 0 : index
    %150 = vector.load %arg2[%c0_134, %c0_135] : memref<8x27xf32, #tpu.memory_space<vmem>>, vector<8x27xf32>
    %c0_136 = arith.constant 0 : index
    %c0_137 = arith.constant 0 : index
    %151 = vector.load %arg17[%c0_136, %c0_137] : memref<27x27xbf16, #tpu.memory_space<vmem>>, vector<27x27xbf16>
    %152 = arith.truncf %150 : vector<8x27xf32> to vector<8x27xbf16>
    %cst_138 = arith.constant dense<0.000000e+00> : vector<8x27xf32>
    %153 = tpu.matmul %152, %151, %cst_138 {dimension_numbers = #tpu.dot_dimension_numbers<[1], [0], [0], [1], [0, 0, 1, 1], [], []>} : vector<8x27xbf16>, vector<27x27xbf16>, vector<8x27xf32> -> vector<8x27xf32>
    %c0_139 = arith.constant 0 : index
    %c0_140 = arith.constant 0 : index
    %154 = vector.load %arg18[%c0_139, %c0_140] : memref<1x27xf32, #tpu.memory_space<vmem>>, vector<1x27xf32>
    %155 = vector.broadcast %154 : vector<1x27xf32> to vector<8x27xf32>
    %156 = arith.addf %153, %155 : vector<8x27xf32>
    %cst_141 = arith.constant 0.000000e+00 : f32
    %157 = vector.broadcast %cst_141 : f32 to vector<8x27xf32>
    %158 = arith.maximumf %156, %157 : vector<8x27xf32>
    %c0_142 = arith.constant 0 : index
    %c0_143 = arith.constant 0 : index
    %159 = vector.load %arg19[%c0_142, %c0_143] : memref<27x20xbf16, #tpu.memory_space<vmem>>, vector<27x20xbf16>
    %160 = arith.truncf %158 : vector<8x27xf32> to vector<8x27xbf16>
    %cst_144 = arith.constant dense<0.000000e+00> : vector<8x20xf32>
    %161 = tpu.matmul %160, %159, %cst_144 {dimension_numbers = #tpu.dot_dimension_numbers<[1], [0], [0], [1], [0, 0, 1, 1], [], []>} : vector<8x27xbf16>, vector<27x20xbf16>, vector<8x20xf32> -> vector<8x20xf32>
    %c0_145 = arith.constant 0 : index
    %c0_146 = arith.constant 0 : index
    %162 = vector.load %arg20[%c0_145, %c0_146] : memref<1x20xf32, #tpu.memory_space<vmem>>, vector<1x20xf32>
    %163 = vector.broadcast %162 : vector<1x20xf32> to vector<8x20xf32>
    %164 = arith.addf %161, %163 : vector<8x20xf32>
    %cst_147 = arith.constant 0.000000e+00 : f32
    %165 = vector.broadcast %cst_147 : f32 to vector<8x20xf32>
    %166 = arith.maximumf %164, %165 : vector<8x20xf32>
    %c0_148 = arith.constant 0 : index
    %c0_149 = arith.constant 0 : index
    %167 = vector.load %arg21[%c0_148, %c0_149] : memref<20x12xbf16, #tpu.memory_space<vmem>>, vector<20x12xbf16>
    %168 = arith.truncf %166 : vector<8x20xf32> to vector<8x20xbf16>
    %cst_150 = arith.constant dense<0.000000e+00> : vector<8x12xf32>
    %169 = tpu.matmul %168, %167, %cst_150 {dimension_numbers = #tpu.dot_dimension_numbers<[1], [0], [0], [1], [0, 0, 1, 1], [], []>} : vector<8x20xbf16>, vector<20x12xbf16>, vector<8x12xf32> -> vector<8x12xf32>
    %c0_151 = arith.constant 0 : index
    %c0_152 = arith.constant 0 : index
    %170 = vector.load %arg22[%c0_151, %c0_152] : memref<1x12xf32, #tpu.memory_space<vmem>>, vector<1x12xf32>
    %171 = vector.broadcast %170 : vector<1x12xf32> to vector<8x12xf32>
    %172 = arith.addf %169, %171 : vector<8x12xf32>
    %cst_153 = arith.constant 0.000000e+00 : f32
    %173 = vector.broadcast %cst_153 : f32 to vector<8x12xf32>
    %174 = arith.maximumf %172, %173 : vector<8x12xf32>
    tpu.wait_dma2 semaphore(%arg42 : memref<!tpu.dma_semaphore, #tpu.memory_space<semaphore_mem>>) src(%arg13 : memref<1152x500xbf16, #tpu.memory_space<any>>) dst(%arg41 : memref<1152x500xbf16, #tpu.memory_space<vmem>>)
    %c0_154 = arith.constant 0 : index
    %c0_155 = arith.constant 0 : index
    %175 = vector.load %arg40[%c0_154, %c0_155] : memref<8x1152xf32, #tpu.memory_space<vmem>>, vector<8x1152xf32>
    %c0_156 = arith.constant 0 : index
    %c0_157 = arith.constant 0 : index
    %176 = vector.load %arg41[%c0_156, %c0_157] : memref<1152x500xbf16, #tpu.memory_space<vmem>>, vector<1152x500xbf16>
    %177 = arith.truncf %175 : vector<8x1152xf32> to vector<8x1152xbf16>
    %cst_158 = arith.constant dense<0.000000e+00> : vector<8x500xf32>
    %178 = tpu.matmul %177, %176, %cst_158 {dimension_numbers = #tpu.dot_dimension_numbers<[1], [0], [0], [1], [0, 0, 1, 1], [], []>} : vector<8x1152xbf16>, vector<1152x500xbf16>, vector<8x500xf32> -> vector<8x500xf32>
    %c0_159 = arith.constant 0 : index
    %c0_160 = arith.constant 0 : index
    %179 = vector.load %arg14[%c0_159, %c0_160] : memref<1x500xf32, #tpu.memory_space<vmem>>, vector<1x500xf32>
    %180 = vector.broadcast %179 : vector<1x500xf32> to vector<8x500xf32>
    %181 = arith.addf %178, %180 : vector<8x500xf32>
    %cst_161 = arith.constant 0.000000e+00 : f32
    %182 = vector.broadcast %cst_161 : f32 to vector<8x500xf32>
    %183 = arith.maximumf %181, %182 : vector<8x500xf32>
    %c0_162 = arith.constant 0 : index
    %c0_163 = arith.constant 0 : index
    %184 = vector.load %arg15[%c0_162, %c0_163] : memref<500x60xbf16, #tpu.memory_space<vmem>>, vector<500x60xbf16>
    %185 = arith.truncf %183 : vector<8x500xf32> to vector<8x500xbf16>
    %cst_164 = arith.constant dense<0.000000e+00> : vector<8x60xf32>
    %186 = tpu.matmul %185, %184, %cst_164 {dimension_numbers = #tpu.dot_dimension_numbers<[1], [0], [0], [1], [0, 0, 1, 1], [], []>} : vector<8x500xbf16>, vector<500x60xbf16>, vector<8x60xf32> -> vector<8x60xf32>
    %c0_165 = arith.constant 0 : index
    %c0_166 = arith.constant 0 : index
    %187 = vector.load %arg16[%c0_165, %c0_166] : memref<1x60xf32, #tpu.memory_space<vmem>>, vector<1x60xf32>
    %188 = vector.broadcast %187 : vector<1x60xf32> to vector<8x60xf32>
    %189 = arith.addf %186, %188 : vector<8x60xf32>
    %cst_167 = arith.constant 0.000000e+00 : f32
    %190 = vector.broadcast %cst_167 : f32 to vector<8x60xf32>
    %191 = arith.maximumf %189, %190 : vector<8x60xf32>
    %c0_168 = arith.constant 0 : index
    %c0_169 = arith.constant 0 : index
    %192 = vector.load %arg23[%c0_168, %c0_169] : memref<12x40xbf16, #tpu.memory_space<vmem>>, vector<12x40xbf16>
    %193 = arith.truncf %174 : vector<8x12xf32> to vector<8x12xbf16>
    %cst_170 = arith.constant dense<0.000000e+00> : vector<8x40xf32>
    %194 = tpu.matmul %193, %192, %cst_170 {dimension_numbers = #tpu.dot_dimension_numbers<[1], [0], [0], [1], [0, 0, 1, 1], [], []>} : vector<8x12xbf16>, vector<12x40xbf16>, vector<8x40xf32> -> vector<8x40xf32>
    %c0_171 = arith.constant 0 : index
    %c0_172 = arith.constant 0 : index
    %195 = vector.load %arg24[%c0_171, %c0_172] : memref<60x40xbf16, #tpu.memory_space<vmem>>, vector<60x40xbf16>
    %196 = arith.truncf %191 : vector<8x60xf32> to vector<8x60xbf16>
    %cst_173 = arith.constant dense<0.000000e+00> : vector<8x40xf32>
    %197 = tpu.matmul %196, %195, %cst_173 {dimension_numbers = #tpu.dot_dimension_numbers<[1], [0], [0], [1], [0, 0, 1, 1], [], []>} : vector<8x60xbf16>, vector<60x40xbf16>, vector<8x40xf32> -> vector<8x40xf32>
    %198 = arith.addf %194, %197 : vector<8x40xf32>
    %c0_174 = arith.constant 0 : index
    %c0_175 = arith.constant 0 : index
    %199 = vector.load %arg25[%c0_174, %c0_175] : memref<1x40xf32, #tpu.memory_space<vmem>>, vector<1x40xf32>
    %200 = vector.broadcast %199 : vector<1x40xf32> to vector<8x40xf32>
    %201 = arith.addf %198, %200 : vector<8x40xf32>
    %cst_176 = arith.constant 0.000000e+00 : f32
    %202 = vector.broadcast %cst_176 : f32 to vector<8x40xf32>
    %203 = arith.maximumf %201, %202 : vector<8x40xf32>
    %c0_177 = arith.constant 0 : index
    %c0_178 = arith.constant 0 : index
    %204 = vector.load %arg26[%c0_177, %c0_178] : memref<40x20xbf16, #tpu.memory_space<vmem>>, vector<40x20xbf16>
    %205 = arith.truncf %203 : vector<8x40xf32> to vector<8x40xbf16>
    %cst_179 = arith.constant dense<0.000000e+00> : vector<8x20xf32>
    %206 = tpu.matmul %205, %204, %cst_179 {dimension_numbers = #tpu.dot_dimension_numbers<[1], [0], [0], [1], [0, 0, 1, 1], [], []>} : vector<8x40xbf16>, vector<40x20xbf16>, vector<8x20xf32> -> vector<8x20xf32>
    %c0_180 = arith.constant 0 : index
    %c0_181 = arith.constant 0 : index
    %207 = vector.load %arg27[%c0_180, %c0_181] : memref<1x20xf32, #tpu.memory_space<vmem>>, vector<1x20xf32>
    %208 = vector.broadcast %207 : vector<1x20xf32> to vector<8x20xf32>
    %209 = arith.addf %206, %208 : vector<8x20xf32>
    %cst_182 = arith.constant 0.000000e+00 : f32
    %210 = vector.broadcast %cst_182 : f32 to vector<8x20xf32>
    %211 = arith.maximumf %209, %210 : vector<8x20xf32>
    %c0_183 = arith.constant 0 : index
    %c0_184 = arith.constant 0 : index
    %212 = vector.load %arg28[%c0_183, %c0_184] : memref<20x7xbf16, #tpu.memory_space<vmem>>, vector<20x7xbf16>
    %213 = arith.truncf %211 : vector<8x20xf32> to vector<8x20xbf16>
    %cst_185 = arith.constant dense<0.000000e+00> : vector<8x7xf32>
    %214 = tpu.matmul %213, %212, %cst_185 {dimension_numbers = #tpu.dot_dimension_numbers<[1], [0], [0], [1], [0, 0, 1, 1], [], []>} : vector<8x20xbf16>, vector<20x7xbf16>, vector<8x7xf32> -> vector<8x7xf32>
    %c0_186 = arith.constant 0 : index
    %c0_187 = arith.constant 0 : index
    %215 = vector.load %arg29[%c0_186, %c0_187] : memref<1x7xf32, #tpu.memory_space<vmem>>, vector<1x7xf32>
    %216 = vector.broadcast %215 : vector<1x7xf32> to vector<8x7xf32>
    %217 = arith.addf %214, %216 : vector<8x7xf32>
    %cst_188 = arith.constant 0.000000e+00 : f32
    %218 = vector.broadcast %cst_188 : f32 to vector<8x7xf32>
    %219 = arith.maximumf %217, %218 : vector<8x7xf32>
    %c0_189 = arith.constant 0 : index
    %c0_190 = arith.constant 0 : index
    %220 = vector.load %arg30[%c0_189, %c0_190] : memref<7x6xbf16, #tpu.memory_space<vmem>>, vector<7x6xbf16>
    %221 = arith.truncf %219 : vector<8x7xf32> to vector<8x7xbf16>
    %cst_191 = arith.constant dense<0.000000e+00> : vector<8x6xf32>
    %222 = tpu.matmul %221, %220, %cst_191 {dimension_numbers = #tpu.dot_dimension_numbers<[1], [0], [0], [1], [0, 0, 1, 1], [], []>} : vector<8x7xbf16>, vector<7x6xbf16>, vector<8x6xf32> -> vector<8x6xf32>
    %c0_192 = arith.constant 0 : index
    %c0_193 = arith.constant 0 : index
    %223 = vector.load %arg3[%c0_192, %c0_193] : memref<8x2xf32, #tpu.memory_space<vmem>>, vector<8x2xf32>
    %c0_194 = arith.constant 0 : index
    %c0_195 = arith.constant 0 : index
    %224 = vector.load %arg31[%c0_194, %c0_195] : memref<2x6xbf16, #tpu.memory_space<vmem>>, vector<2x6xbf16>
    %225 = arith.truncf %223 : vector<8x2xf32> to vector<8x2xbf16>
    %cst_196 = arith.constant dense<0.000000e+00> : vector<8x6xf32>
    %226 = tpu.matmul %225, %224, %cst_196 {dimension_numbers = #tpu.dot_dimension_numbers<[1], [0], [0], [1], [0, 0, 1, 1], [], []>} : vector<8x2xbf16>, vector<2x6xbf16>, vector<8x6xf32> -> vector<8x6xf32>
    %227 = arith.addf %222, %226 : vector<8x6xf32>
    %c0_197 = arith.constant 0 : index
    %c0_198 = arith.constant 0 : index
    %228 = vector.load %arg32[%c0_197, %c0_198] : memref<1x6xf32, #tpu.memory_space<vmem>>, vector<1x6xf32>
    %229 = vector.broadcast %228 : vector<1x6xf32> to vector<8x6xf32>
    %230 = arith.addf %227, %229 : vector<8x6xf32>
    %cst_199 = arith.constant 0.000000e+00 : f32
    %231 = vector.broadcast %cst_199 : f32 to vector<8x6xf32>
    %232 = arith.maximumf %230, %231 : vector<8x6xf32>
    %c0_200 = arith.constant 0 : index
    %c0_201 = arith.constant 0 : index
    %233 = vector.load %arg33[%c0_200, %c0_201] : memref<6x128xbf16, #tpu.memory_space<vmem>>, vector<6x128xbf16>
    %234 = arith.truncf %232 : vector<8x6xf32> to vector<8x6xbf16>
    %cst_202 = arith.constant dense<0.000000e+00> : vector<8x128xf32>
    %235 = tpu.matmul %234, %233, %cst_202 {dimension_numbers = #tpu.dot_dimension_numbers<[1], [0], [0], [1], [0, 0, 1, 1], [], []>} : vector<8x6xbf16>, vector<6x128xbf16>, vector<8x128xf32> -> vector<8x128xf32>
    %c0_203 = arith.constant 0 : index
    %c0_204 = arith.constant 0 : index
    %236 = vector.load %arg34[%c0_203, %c0_204] : memref<1x128xf32, #tpu.memory_space<vmem>>, vector<1x128xf32>
    %237 = vector.broadcast %236 : vector<1x128xf32> to vector<8x128xf32>
    %238 = arith.addf %235, %237 : vector<8x128xf32>
    %cst_205 = arith.constant 0.000000e+00 : f32
    %239 = vector.broadcast %cst_205 : f32 to vector<8x128xf32>
    %240 = arith.maximumf %238, %239 : vector<8x128xf32>
    %c0_206 = arith.constant 0 : index
    %c0_207 = arith.constant 0 : index
    %241 = vector.load %arg35[%c0_206, %c0_207] : memref<8x128xf32, #tpu.memory_space<vmem>>, vector<8x128xf32>
    tpu.vector_store %arg35[%c0_206, %c0_207], %240 {strides = array<i32>} : memref<8x128xf32, #tpu.memory_space<vmem>>, vector<8x128xf32>,
    return
  }
}

</mosaic_0001>

<bundles_post_ra>
// kernel: dqn_forward.1
= control target key start
LH: loop header
LB: loop body
LE: loop exit
PB: predicated region body
PF: predicated region fallthrough
CT: control target
= control target key end

     0   :  { %s5868_s6 = smov 1   ;;  %s5869_s10 = smov 2   ;;  %vm1031_vm0 = vcmask 654336   ;;  %s7964_s0 = inlined_call_operand.smem [shape: u32[36], index: -1, kind: input, shape index: {}] }
   0x1   :  { %s5915_s5 = sld [smem:[%s7964_s0]]   ;;  %s5870_s14 = smov 3  }
   0x2   :  { %s5920_s9 = sld [smem:[%s7964_s0 + %s5868_s6]]   ;;  %s5871_s18 = smov 4  }
   0x3   :  { %s5925_s13 = sld [smem:[%s7964_s0 + %s5869_s10]]   ;;  %s5872_s22 = smov 5  }
   0x4   :  { %s5930_s17 = sld [smem:[%s7964_s0 + %s5870_s14]]   ;;  %s5873_s26 = smov 6  }
   0x5   :  { %s5935_s21 = sld [smem:[%s7964_s0 + %s5871_s18]]   ;;  %s5874_s30 = smov 7  }
   0x6   :  { %s5940_s25 = sld [smem:[%s7964_s0 + %s5872_s22]]   ;;  %s5875_s4 = smov 8  }
   0x7   :  { %s5945_s29 = sld [smem:[%s7964_s0 + %s5873_s26]]   ;;  %s5876_s10 = smov 9  }
   0x8   :  { %s5950_s3 = sld [smem:[%s7964_s0 + %s5874_s30]]   ;;  %s5877_s15 = smov 10  }
   0x9   :  { %s5955_s8 = sld [smem:[%s7964_s0 + %s5875_s4]]   ;;  %s5878_s20 = smov 11  }
   0xa   :  { %8222 = sst [smem:[#allocation11_spill]] %s5930_s17  ;;  %s5879_s26 = smov 12  }
   0xb   :  { %s5960_s14 = sld [smem:[%s7964_s0 + %s5876_s10]]   ;;  %s5880_s1 = smov 13  }
   0xc   :  { %s5965_s19 = sld [smem:[%s7964_s0 + %s5877_s15]]   ;;  %s5881_s7 = smov 14  }
   0xd   :  { %s5970_s24 = sld [smem:[%s7964_s0 + %s5878_s20]]   ;;  %s5882_s15 = smov 15  }
   0xe   :  { %s5975_s30 = sld [smem:[%s7964_s0 + %s5879_s26]]   ;;  %s5883_s22 = smov 16  }
   0xf   :  { %s5980_s6 = sld [smem:[%s7964_s0 + %s5880_s1]]   ;;  %s5884_s28 = smov 17  }
  0x10   :  { %s5985_s12 = sld [smem:[%s7964_s0 + %s5881_s7]]   ;;  %s5885_s7 = smov 18  }
  0x11   :  { %s5990_s20 = sld [smem:[%s7964_s0 + %s5882_s15]]   ;;  %s5886_s16 = smov 19  }
  0x12   :  { %s5995_s27 = sld [smem:[%s7964_s0 + %s5883_s22]]   ;;  %s5887_s26 = smov 20  }
  0x13   :  { %s6000_s4 = sld [smem:[%s7964_s0 + %s5884_s28]]   ;;  %s5889_s18 = smov 22  }
  0x14   :  { %s6005_s15 = sld [smem:[%s7964_s0 + %s5885_s7]]   ;;  %s5888_s7 = smov 21  }
  0x15   :  { %s6010_s22 = sld [smem:[%s7964_s0 + %s5886_s16]]   ;;  %v6013_v0 = vld [vmem:[%s5980_s6] sm:$0xff]  ;;  %v6016_v1 = vld [vmem:[%s5980_s6 + $0x8] sm:$0xff]  ;;  %v6019_v2 = vld [vmem:[%s5980_s6 + $0x10] sm:$0xff]  ;;  %s5890_s1 = smov 23  }
  0x16   :  { %8224 = vst [vmem:[#allocation13_spill] sm:$0xff] %v6016_v1  ;;  %s6024_s2 = sld [smem:[%s7964_s0 + %s5887_s26]]   ;;  %v6027_v3 = vld [vmem:[%s5980_s6 + $0x18] sm:$0xff]  ;;  %v6030_v4 = vld [vmem:[%s5980_s6 + $0x20] sm:$0xff]  ;;  %v6033_v5 = vld [vmem:[%s5980_s6 + $0x28] sm:$0xff] }
  0x17   :  { %8225 = vst [vmem:[#allocation14_spill] sm:$0xff] %v6027_v3  ;;  %8226 = vst [vmem:[#allocation15_spill] sm:$0xff] %v6033_v5  ;;  %s6038_s16 = sld [smem:[%s7964_s0 + %s5888_s7]]   ;;  %v6041_v6 = vld [vmem:[%s5980_s6 + $0x30] sm:$0xff]  ;;  %v6044_v7 = vld [vmem:[%s5980_s6 + $0x38] sm:$0xff] }
  0x18   :  { %8223 = sst [smem:[#allocation12_spill]] %s5995_s27  ;;  %8227 = vst [vmem:[#allocation16_spill] sm:$0xff] %v6044_v7  ;;  %v6047_v8 = vld [vmem:[%s5980_s6 + $0x40] sm:$0xff]  ;;  %v6055_v9 = vld [vmem:[%s5980_s6 + $0x48] sm:$0xff]  ;;  %v6058_v10 = vld [vmem:[%s5980_s6 + $0x50] sm:$0xff] }
  0x19   :  { %s6052_s28 = sld [smem:[%s7964_s0 + %s5889_s18]]   ;;  %8228 = vst [vmem:[#allocation17_spill] sm:$0xff] %v6055_v9  ;;  %v6061_v11 = vld [vmem:[%s5980_s6 + $0x58] sm:$0xff]  ;;  %v6069_v12 = vld [vmem:[%s5980_s6 + $0x60] sm:$0xff]  ;;  %v6072_v13 = vld [vmem:[%s5980_s6 + $0x68] sm:$0xff]  ;;  %s5891_s18 = smov 24  }
  0x1a   :  { %8229 = vst [vmem:[#allocation18_spill] sm:$0xff] %v6061_v11  ;;  %s6066_s11 = sld [smem:[%s7964_s0 + %s5890_s1]]   ;;  %8231 = vst [vmem:[#allocation20_spill] sm:$0xff] %v6072_v13  ;;  %v6075_v14 = vld [vmem:[%s5980_s6 + $0x70] sm:$0xff]  ;;  %v6083_v15 = vld [vmem:[%s5980_s6 + $0x78] sm:$0xff]  ;;  %s5892_s1 = smov 25  }
  0x1b   :  { %s6080_s17 = sld [smem:[%s7964_s0 + %s5891_s18]]   ;;  %8232 = vst [vmem:[#allocation21_spill] sm:$0xff] %v6083_v15  ;;  %v6086_v16 = vld [vmem:[%s5980_s6 + $0x80] sm:$0xff]  ;;  %v6089_v17 = vld [vmem:[%s5980_s6 + $0x88] sm:$0xff]  ;;  %v6097_v18 = vld [vmem:[%s5980_s6 + $0x90] sm:$0xff]  ;;  %s5893_s18 = smov 26  }
  0x1c   :  { %8233 = vst [vmem:[#allocation22_spill] sm:$0xff] %v6089_v17  ;;  %s6094_s27 = sld [smem:[%s7964_s0 + %s5892_s1]]   ;;  %v6100_v19 = vld [vmem:[%s5980_s6 + $0x98] sm:$0xff]  ;;  %v6103_v20 = vld [vmem:[%s5980_s6 + $0xa0] sm:$0xff]  ;;  %v6111_v21 = vld [vmem:[%s5980_s6 + $0xa8] sm:$0xff]  ;;  %s5894_s1 = smov 27  }
  0x1d   :  { %8235 = vst [vmem:[#allocation24_spill] sm:$0xff] %v6100_v19  ;;  %8237 = vst [vmem:[#allocation26_spill] sm:$0xff] %v6111_v21  ;;  %v6114_v22 = vld [vmem:[%s5980_s6 + $0xb0] sm:$0xff]  ;;  %v6117_v23 = vld [vmem:[%s5980_s6 + $0xb8] sm:$0xff] }
  0x1e   :  { %8238 = vst [vmem:[#allocation27_spill] sm:$0xff] %v6117_v23  ;;  %v6125_v24 = vld [vmem:[%s5980_s6 + $0xc0] sm:$0xff]  ;;  %v6128_v25 = vld [vmem:[%s5980_s6 + $0xc8] sm:$0xff]  ;;  %v6131_v26 = vld [vmem:[%s5980_s6 + $0xd0] sm:$0xff] }
  0x1f   :  { %8240 = vst [vmem:[#allocation29_spill] sm:$0xff] %v6128_v25  ;;  %v6139_v27 = vld [vmem:[%s5980_s6 + $0xd8] sm:$0xff]  ;;  %v6142_v28 = vld [vmem:[%s5980_s6 + $0xe0] sm:$0xff]  ;;  %v6145_v29 = vld [vmem:[%s5980_s6 + $0xe8] sm:$0xff] }
  0x20   :  { %8230 = sst [smem:[#allocation19_spill]] %s6066_s11  ;;  %8242 = vst [vmem:[#allocation31_spill] sm:$0xff] %v6139_v27  ;;  %8243 = vst [vmem:[#allocation32_spill] sm:$0xff] %v6145_v29  ;;  %v6153_v30 = vld [vmem:[%s5980_s6 + $0xf0] sm:$0xff]  ;;  %v6156_v31 = vld [vmem:[%s5980_s6 + $0xf8] sm:$0xff] }
  0x21   :  { %s6108_s11 = sld [smem:[%s7964_s0 + %s5893_s18]]   ;;  %s5895_s18 = smov 28   ;;  %8245 = vst [vmem:[#allocation34_spill] sm:$0xff] %v6156_v31  ;;  %v6159_v32 = vld [vmem:[%s5980_s6 + $0x100] sm:$0xff]  ;;  %v6167_v33 = vld [vmem:[%s5980_s6 + $0x108] sm:$0xff]  ;;  %v6170_v34 = vld [vmem:[%s5980_s6 + $0x110] sm:$0xff] }
  0x22   :  { %8234 = sst [smem:[#allocation23_spill]] %s6094_s27  ;;  %8246 = vst [vmem:[#allocation35_spill] sm:$0xff] %v6159_v32  ;;  %8248 = vst [vmem:[#allocation37_spill] sm:$0xff] %v6167_v33  ;;  %v6173_v35 = vld [vmem:[%s5980_s6 + $0x118] sm:$0xff]  ;;  %v6181_v36 = vld [vmem:[%s5980_s6 + $0x120] sm:$0xff] }
  0x23   :  { %s6122_s27 = sld [smem:[%s7964_s0 + %s5894_s1]]   ;;  %s5896_s1 = smov 29   ;;  %8249 = vst [vmem:[#allocation38_spill] sm:$0xff] %v6170_v34  ;;  %8250 = vst [vmem:[#allocation39_spill] sm:$0xff] %v6173_v35  ;;  %v6184_v37 = vld [vmem:[%s5980_s6 + $0x128] sm:$0xff]  ;;  %v6187_v38 = vld [vmem:[%s5980_s6 + $0x130] sm:$0xff] }
  0x24   :  { %8252 = vst [vmem:[#allocation41_spill] sm:$0xff] %v6181_v36  ;;  %8253 = vst [vmem:[#allocation42_spill] sm:$0xff] %v6184_v37  ;;  %v6195_v39 = vld [vmem:[%s5980_s6 + $0x138] sm:$0xff]  ;;  %v6198_v40 = vld [vmem:[%s5980_s6 + $0x140] sm:$0xff] }
  0x25   :  { %8254 = vst [vmem:[#allocation43_spill] sm:$0xff] %v6187_v38  ;;  %8256 = vst [vmem:[#allocation45_spill] sm:$0xff] %v6195_v39  ;;  %v6201_v41 = vld [vmem:[%s5980_s6 + $0x148] sm:$0xff]  ;;  %v6209_v42 = vld [vmem:[%s5980_s6 + $0x150] sm:$0xff] }
  0x26   :  { %8257 = vst [vmem:[#allocation46_spill] sm:$0xff] %v6198_v40  ;;  %8258 = vst [vmem:[#allocation47_spill] sm:$0xff] %v6201_v41  ;;  %v6212_v43 = vld [vmem:[%s5980_s6 + $0x158] sm:$0xff]  ;;  %v6215_v44 = vld [vmem:[%s5980_s6 + $0x160] sm:$0xff] }
  0x27   :  { %8236 = sst [smem:[#allocation25_spill]] %s6108_s11  ;;  %8260 = vst [vmem:[#allocation49_spill] sm:$0xff] %v6209_v42  ;;  %8261 = vst [vmem:[#allocation50_spill] sm:$0xff] %v6212_v43  ;;  %v6223_v45 = vld [vmem:[%s5980_s6 + $0x168] sm:$0xff]  ;;  %v6226_v46 = vld [vmem:[%s5980_s6 + $0x170] sm:$0xff] }
  0x28   :  { %s6136_s11 = sld [smem:[%s7964_s0 + %s5895_s18]]   ;;  %s5897_s18 = smov 30   ;;  %8262 = vst [vmem:[#allocation51_spill] sm:$0xff] %v6215_v44  ;;  %8263 = vst [vmem:[#allocation52_spill] sm:$0xff] %v6223_v45  ;;  %v6229_v47 = vld [vmem:[%s5980_s6 + $0x178] sm:$0xff]  ;;  %v6237_v48 = vld [vmem:[%s5980_s6 + $0x180] sm:$0xff] }
  0x29   :  { %8239 = sst [smem:[#allocation28_spill]] %s6122_s27  ;;  %8264 = vst [vmem:[#allocation53_spill] sm:$0xff] %v6226_v46  ;;  %8265 = vst [vmem:[#allocation54_spill] sm:$0xff] %v6229_v47  ;;  %v6240_v49 = vld [vmem:[%s5980_s6 + $0x188] sm:$0xff]  ;;  %v6243_v50 = vld [vmem:[%s5980_s6 + $0x190] sm:$0xff] }
  0x2a   :  { %s6150_s27 = sld [smem:[%s7964_s0 + %s5896_s1]]   ;;  %s5898_s1 = smov 31   ;;  %8266 = vst [vmem:[#allocation55_spill] sm:$0xff] %v6237_v48  ;;  %8267 = vst [vmem:[#allocation56_spill] sm:$0xff] %v6240_v49  ;;  %v6246_v51 = vld [vmem:[%s5980_s6 + $0x198] sm:$0xff]  ;;  %v6249_v52 = vld [vmem:[%s5980_s6 + $0x1a0] sm:$0xff] }
  0x2b   :  { %8268 = vst [vmem:[#allocation57_spill] sm:$0xff] %v6243_v50  ;;  %8269 = vst [vmem:[#allocation58_spill] sm:$0xff] %v6246_v51  ;;  %v6252_v53 = vld [vmem:[%s5980_s6 + $0x1a8] sm:$0xff]  ;;  %v6255_v54 = vld [vmem:[%s5980_s6 + $0x1b0] sm:$0xff] }
  0x2c   :  { %8270 = vst [vmem:[#allocation59_spill] sm:$0xff] %v6249_v52  ;;  %8271 = vst [vmem:[#allocation60_spill] sm:$0xff] %v6252_v53  ;;  %v6258_v55 = vld [vmem:[%s5980_s6 + $0x1b8] sm:$0xff]  ;;  %v6261_v56 = vld [vmem:[%s5980_s6 + $0x1c0] sm:$0xff] }
  0x2d   :  { %8272 = vst [vmem:[#allocation61_spill] sm:$0xff] %v6255_v54  ;;  %8273 = vst [vmem:[#allocation62_spill] sm:$0xff] %v6258_v55  ;;  %v6264_v57 = vld [vmem:[%s5980_s6 + $0x1c8] sm:$0xff]  ;;  %v6267_v58 = vld [vmem:[%s5980_s6 + $0x1d0] sm:$0xff] }
  0x2e   :  { %8241 = sst [smem:[#allocation30_spill]] %s6136_s11  ;;  %8274 = vst [vmem:[#allocation63_spill] sm:$0xff] %v6264_v57  ;;  %v6270_v59 = vld [vmem:[%s5980_s6 + $0x1d8] sm:$0xff]  ;;  %v6273_v60 = vld [vmem:[%s5980_s6 + $0x1e0] sm:$0xff]  ;;  %v6276_v61 = vld [vmem:[%s5980_s6 + $0x1e8] sm:$0xff] }
  0x2f   :  { %s6164_s11 = sld [smem:[%s7964_s0 + %s5897_s18]]   ;;  %s5899_s18 = smov 32   ;;  %8275 = vst [vmem:[#allocation64_spill] sm:$0xff] %v6270_v59  ;;  %8276 = vst [vmem:[#allocation65_spill] sm:$0xff] %v6276_v61  ;;  %v6279_v62 = vld [vmem:[%s5980_s6 + $0x1f0] sm:$0xff]  ;;  %v6282_v63 = vld [vmem:[%s5980_s6 + $0x1f8] sm:$0xff] }
  0x30   :  { %8244 = sst [smem:[#allocation33_spill]] %s6150_s27  ;;  %8277 = vst [vmem:[#allocation66_spill] sm:$0xff] %v6282_v63  ;;  %v6285_v33 = vld [vmem:[%s5980_s6 + $0x200] sm:$0xff]  ;;  %v6288_v35 = vld [vmem:[%s5980_s6 + $0x208] sm:$0xff]  ;;  %v6291_v37 = vld [vmem:[%s5980_s6 + $0x210] sm:$0xff] }
  0x31   :  { %s6178_s27 = sld [smem:[%s7964_s0 + %s5898_s1]]   ;;  %s5900_s1 = smov 33   ;;  %8278 = vst [vmem:[#allocation67_spill] sm:$0xff] %v6288_v35  ;;  %v6294_v39 = vld [vmem:[%s5980_s6 + $0x218] sm:$0xff]  ;;  %v6297_v41 = vld [vmem:[%s5980_s6 + $0x220] sm:$0xff]  ;;  %v6300_v43 = vld [vmem:[%s5980_s6 + $0x228] sm:$0xff] }
  0x32   :  { %8279 = vst [vmem:[#allocation68_spill] sm:$0xff] %v6294_v39  ;;  %8280 = vst [vmem:[#allocation69_spill] sm:$0xff] %v6300_v43  ;;  %v6303_v45 = vld [vmem:[%s5980_s6 + $0x230] sm:$0xff]  ;;  %v6306_v47 = vld [vmem:[%s5980_s6 + $0x238] sm:$0xff] }
  0x33   :  { %8281 = vst [vmem:[#allocation70_spill] sm:$0xff] %v6306_v47  ;;  %v6309_v35 = vld [vmem:[%s5980_s6 + $0x240] sm:$0xff]  ;;  %v6312_v49 = vld [vmem:[%s5980_s6 + $0x248] sm:$0xff]  ;;  %v6315_v39 = vld [vmem:[%s5980_s6 + $0x250] sm:$0xff] }
  0x34   :  { %8282 = vst [vmem:[#allocation71_spill] sm:$0xff] %v6312_v49  ;;  %v6318_v51 = vld [vmem:[%s5980_s6 + $0x258] sm:$0xff]  ;;  %v6321_v43 = vld [vmem:[%s5980_s6 + $0x260] sm:$0xff]  ;;  %v6324_v53 = vld [vmem:[%s5980_s6 + $0x268] sm:$0xff] }
  0x35   :  { %8247 = sst [smem:[#allocation36_spill]] %s6164_s11  ;;  %8283 = vst [vmem:[#allocation72_spill] sm:$0xff] %v6318_v51  ;;  %8284 = vst [vmem:[#allocation73_spill] sm:$0xff] %v6324_v53  ;;  %v6327_v47 = vld [vmem:[%s5980_s6 + $0x270] sm:$0xff]  ;;  %v6330_v55 = vld [vmem:[%s5980_s6 + $0x278] sm:$0xff] }
  0x36   :  { %s6192_s11 = sld [smem:[%s7964_s0 + %s5899_s18]]   ;;  %s5901_s18 = smov 34   ;;  %8285 = vst [vmem:[#allocation74_spill] sm:$0xff] %v6330_v55  ;;  %v6333_v49 = vld [vmem:[%s5980_s6 + $0x280] sm:$0xff]  ;;  %v6336_v57 = vld [vmem:[%s5980_s6 + $0x288] sm:$0xff]  ;;  %v6339_v51 = vld [vmem:[%s5980_s6 + $0x290] sm:$0xff] }
  0x37   :  { %8251 = sst [smem:[#allocation40_spill]] %s6178_s27  ;;  %8286 = vst [vmem:[#allocation75_spill] sm:$0xff] %v6336_v57  ;;  %v6342_v59 = vld [vmem:[%s5980_s6 + $0x298] sm:$0xff]  ;;  %v6345_v53 = vld [vmem:[%s5980_s6 + $0x2a0] sm:$0xff]  ;;  %v6348_v61 = vld [vmem:[%s5980_s6 + $0x2a8] sm:$0xff] }
  0x38   :  { %s6206_s27 = sld [smem:[%s7964_s0 + %s5900_s1]]   ;;  %s5902_s1 = smov 35   ;;  %8287 = vst [vmem:[#allocation76_spill] sm:$0xff] %v6342_v59  ;;  %8288 = vst [vmem:[#allocation77_spill] sm:$0xff] %v6348_v61  ;;  %v6351_v55 = vld [vmem:[%s5980_s6 + $0x2b0] sm:$0xff]  ;;  %v6354_v63 = vld [vmem:[%s5980_s6 + $0x2b8] sm:$0xff] }
  0x39   :  { %8289 = vst [vmem:[#allocation78_spill] sm:$0xff] %v6354_v63  ;;  %v6357_v57 = vld [vmem:[%s5980_s6 + $0x2c0] sm:$0xff]  ;;  %v6360_v1 = vld [vmem:[%s5980_s6 + $0x2c8] sm:$0xff]  ;;  %v6363_v59 = vld [vmem:[%s5980_s6 + $0x2d0] sm:$0xff] }
  0x3a   :  { %8290 = vst [vmem:[#allocation79_spill] sm:$0xff] %v6360_v1  ;;  %v6366_v3 = vld [vmem:[%s5980_s6 + $0x2d8] sm:$0xff]  ;;  %v6369_v61 = vld [vmem:[%s5980_s6 + $0x2e0] sm:$0xff]  ;;  %v6372_v5 = vld [vmem:[%s5980_s6 + $0x2e8] sm:$0xff] }
  0x3b   :  { %8291 = vst [vmem:[#allocation80_spill] sm:$0xff] %v6366_v3  ;;  %8292 = vst [vmem:[#allocation81_spill] sm:$0xff] %v6372_v5  ;;  %v6375_v63 = vld [vmem:[%s5980_s6 + $0x2f0] sm:$0xff]  ;;  %v6378_v7 = vld [vmem:[%s5980_s6 + $0x2f8] sm:$0xff] }
  0x3c   :  { %8255 = sst [smem:[#allocation44_spill]] %s6192_s11  ;;  %8293 = vst [vmem:[#allocation82_spill] sm:$0xff] %v6378_v7  ;;  %v6381_v1 = vld [vmem:[%s5980_s6 + $0x300] sm:$0xff]  ;;  %v6384_v9 = vld [vmem:[%s5980_s6 + $0x308] sm:$0xff]  ;;  %v6387_v3 = vld [vmem:[%s5980_s6 + $0x310] sm:$0xff] }
  0x3d   :  { %s6220_s11 = sld [smem:[%s7964_s0 + %s5901_s18]]   ;;  %8294 = vst [vmem:[#allocation83_spill] sm:$0xff] %v6381_v1  ;;  %8295 = vst [vmem:[#allocation84_spill] sm:$0xff] %v6384_v9  ;;  %v6390_v11 = vld [vmem:[%s5980_s6 + $0x318] sm:$0xff]  ;;  %v6393_v5 = vld [vmem:[%s5980_s6 + $0x320] sm:$0xff] }
  0x3e   :  { %8259 = sst [smem:[#allocation48_spill]] %s6206_s27  ;;  %8296 = vst [vmem:[#allocation85_spill] sm:$0xff] %v6387_v3  ;;  %8297 = vst [vmem:[#allocation86_spill] sm:$0xff] %v6390_v11  ;;  %v6396_v13 = vld [vmem:[%s5980_s6 + $0x328] sm:$0xff]  ;;  %v6399_v7 = vld [vmem:[%s5980_s6 + $0x330] sm:$0xff] }
  0x3f   :  { %s6234_s27 = sld [smem:[%s7964_s0 + %s5902_s1]]   ;;  %8298 = vst [vmem:[#allocation87_spill] sm:$0xff] %v6393_v5  ;;  %8299 = vst [vmem:[#allocation88_spill] sm:$0xff] %v6396_v13  ;;  %v6402_v15 = vld [vmem:[%s5980_s6 + $0x338] sm:$0xff]  ;;  %v6405_v9 = vld [vmem:[%s5980_s6 + $0x340] sm:$0xff] }
  0x40   :  { %8300 = vst [vmem:[#allocation89_spill] sm:$0xff] %v6399_v7  ;;  %8301 = vst [vmem:[#allocation90_spill] sm:$0xff] %v6402_v15  ;;  %v6408_v17 = vld [vmem:[%s5980_s6 + $0x348] sm:$0xff]  ;;  %v6411_v11 = vld [vmem:[%s5980_s6 + $0x350] sm:$0xff] }
  0x41   :  { %8302 = vst [vmem:[#allocation91_spill] sm:$0xff] %v6405_v9  ;;  %8303 = vst [vmem:[#allocation92_spill] sm:$0xff] %v6408_v17  ;;  %v6414_v19 = vld [vmem:[%s5980_s6 + $0x358] sm:$0xff]  ;;  %v6417_v13 = vld [vmem:[%s5980_s6 + $0x360] sm:$0xff] }
  0x42   :  { %8304 = vst [vmem:[#allocation93_spill] sm:$0xff] %v6411_v11  ;;  %8305 = vst [vmem:[#allocation94_spill] sm:$0xff] %v6414_v19  ;;  %v6420_v21 = vld [vmem:[%s5980_s6 + $0x368] sm:$0xff]  ;;  %v6423_v15 = vld [vmem:[%s5980_s6 + $0x370] sm:$0xff] }
  0x43   :  { %8306 = vst [vmem:[#allocation95_spill] sm:$0xff] %v6417_v13  ;;  %8307 = vst [vmem:[#allocation96_spill] sm:$0xff] %v6420_v21  ;;  %v6426_v23 = vld [vmem:[%s5980_s6 + $0x378] sm:$0xff]  ;;  %v6429_v17 = vld [vmem:[%s5980_s6 + $0x380] sm:$0xff] }
  0x44   :  { %8308 = vst [vmem:[#allocation97_spill] sm:$0xff] %v6423_v15  ;;  %8309 = vst [vmem:[#allocation98_spill] sm:$0xff] %v6426_v23  ;;  %v6432_v25 = vld [vmem:[%s5980_s6 + $0x388] sm:$0xff]  ;;  %v6435_v19 = vld [vmem:[%s5980_s6 + $0x390] sm:$0xff] }
  0x45   :  { %8310 = vst [vmem:[#allocation99_spill] sm:$0xff] %v6429_v17  ;;  %8311 = vst [vmem:[#allocation100_spill] sm:$0xff] %v6432_v25  ;;  %v6438_v27 = vld [vmem:[%s5980_s6 + $0x398] sm:$0xff]  ;;  %v6441_v21 = vld [vmem:[%s5980_s6 + $0x3a0] sm:$0xff] }
  0x46   :  { %8312 = vst [vmem:[#allocation101_spill] sm:$0xff] %v6435_v19  ;;  %8313 = vst [vmem:[#allocation102_spill] sm:$0xff] %v6438_v27  ;;  %v6444_v29 = vld [vmem:[%s5980_s6 + $0x3a8] sm:$0xff]  ;;  %v6447_v23 = vld [vmem:[%s5980_s6 + $0x3b0] sm:$0xff] }
  0x47   :  { %8314 = vst [vmem:[#allocation103_spill] sm:$0xff] %v6441_v21  ;;  %8315 = vst [vmem:[#allocation104_spill] sm:$0xff] %v6444_v29  ;;  %v6450_v31 = vld [vmem:[%s5980_s6 + $0x3b8] sm:$0xff]  ;;  %v6453_v25 = vld [vmem:[%s5980_s6 + $0x3c0] sm:$0xff] }
  0x48   :  { %8316 = vst [vmem:[#allocation105_spill] sm:$0xff] %v6447_v23  ;;  %8317 = vst [vmem:[#allocation106_spill] sm:$0xff] %v6450_v31  ;;  %v6456_v1 = vld [vmem:[%s5980_s6 + $0x3c8] sm:$0xff]  ;;  %v6459_v27 = vld [vmem:[%s5980_s6 + $0x3d0] sm:$0xff] }
  0x49   :  { %8318 = vst [vmem:[#allocation107_spill] sm:$0xff] %v6456_v1  ;;  %v6462_v3 = vld [vmem:[%s5980_s6 + $0x3d8] sm:$0xff]  ;;  %v6465_v29 = vld [vmem:[%s5980_s6 + $0x3e0] sm:$0xff]  ;;  %v6468_v32 = vld [vmem:[%s5980_s6 + $0x3e8] sm:$0xff] }
  0x4a   :  { %8319 = vst [vmem:[#allocation108_spill] sm:$0xff] %v6462_v3  ;;  %8320 = vst [vmem:[#allocation109_spill] sm:$0xff] %v6468_v32  ;;  %v6471_v31 = vld [vmem:[%s5980_s6 + $0x3f0] sm:$0xff]  ;;  %v6474_v34 = vld [vmem:[%s5980_s6 + $0x3f8] sm:$0xff] }
  0x4b   :  { %8321 = vst [vmem:[#allocation110_spill] sm:$0xff] %v6474_v34  ;;  %v6477_v1 = vld [vmem:[%s5980_s6 + $0x400] sm:$0xff]  ;;  %v6480_v5 = vld [vmem:[%s5980_s6 + $0x408] sm:$0xff]  ;;  %v6483_v3 = vld [vmem:[%s5980_s6 + $0x410] sm:$0xff] }
  0x4c   :  { %8322 = vst [vmem:[#allocation111_spill] sm:$0xff] %v6477_v1  ;;  %8323 = vst [vmem:[#allocation112_spill] sm:$0xff] %v6480_v5  ;;  %v6486_v7 = vld [vmem:[%s5980_s6 + $0x418] sm:$0xff]  ;;  %v6489_v32 = vld [vmem:[%s5980_s6 + $0x420] sm:$0xff] }
  0x4d   :  { %8324 = vst [vmem:[#allocation113_spill] sm:$0xff] %v6483_v3  ;;  %8325 = vst [vmem:[#allocation114_spill] sm:$0xff] %v6486_v7  ;;  %v6492_v36 = vld [vmem:[%s5980_s6 + $0x428] sm:$0xff]  ;;  %v6495_v34 = vld [vmem:[%s5980_s6 + $0x430] sm:$0xff] }
  0x4e   :  { %8326 = vst [vmem:[#allocation115_spill] sm:$0xff] %v6489_v32  ;;  %8327 = vst [vmem:[#allocation116_spill] sm:$0xff] %v6492_v36  ;;  %v6498_v1 = vld [vmem:[%s5980_s6 + $0x438] sm:$0xff]  ;;  %v6501_v5 = vld [vmem:[%s5980_s6 + $0x440] sm:$0xff] }
  0x4f   :  { %8328 = vst [vmem:[#allocation117_spill] sm:$0xff] %v6495_v34  ;;  %8329 = vst [vmem:[#allocation118_spill] sm:$0xff] %v6498_v1  ;;  %v6504_v3 = vld [vmem:[%s5980_s6 + $0x448] sm:$0xff]  ;;  %v6507_v7 = vld [vmem:[%s5980_s6 + $0x450] sm:$0xff] }
  0x50   :  { %8330 = vst [vmem:[#allocation119_spill] sm:$0xff] %v6501_v5  ;;  %8331 = vst [vmem:[#allocation120_spill] sm:$0xff] %v6504_v3  ;;  %v6510_v32 = vld [vmem:[%s5980_s6 + $0x458] sm:$0xff]  ;;  %v6513_v36 = vld [vmem:[%s5980_s6 + $0x460] sm:$0xff] }
  0x51   :  { %8332 = vst [vmem:[#allocation121_spill] sm:$0xff] %v6507_v7  ;;  %8333 = vst [vmem:[#allocation122_spill] sm:$0xff] %v6510_v32  ;;  %v6516_v34 = vld [vmem:[%s5980_s6 + $0x468] sm:$0xff]  ;;  %v6519_v1 = vld [vmem:[%s5980_s6 + $0x470] sm:$0xff] }
  0x52   :  { %8334 = vst [vmem:[#allocation123_spill] sm:$0xff] %v6513_v36  ;;  %8335 = vst [vmem:[#allocation124_spill] sm:$0xff] %v6516_v34  ;;  %v6522_v5 = vld [vmem:[%s5980_s6 + $0x478] sm:$0xff]  ;;  %v6525_v3 = vld [vmem:[%s5980_s6 + $0x480] sm:$0xff] }
  0x53   :  { %8336 = vst [vmem:[#allocation125_spill] sm:$0xff] %v6519_v1  ;;  %8337 = vst [vmem:[#allocation126_spill] sm:$0xff] %v6522_v5  ;;  %v6528_v7 = vld [vmem:[%s5980_s6 + $0x488] sm:$0xff]  ;;  %v6531_v32 = vld [vmem:[%s5980_s6 + $0x490] sm:$0xff] }
  0x54   :  { %8338 = vst [vmem:[#allocation127_spill] sm:$0xff] %v6525_v3  ;;  %8339 = vst [vmem:[#allocation128_spill] sm:$0xff] %v6528_v7  ;;  %v6534_v36 = vld [vmem:[%s5980_s6 + $0x498] sm:$0xff]  ;;  %v6537_v34 = vld [vmem:[%s5980_s6 + $0x4a0] sm:$0xff] }
  0x55   :  { %8340 = vst [vmem:[#allocation129_spill] sm:$0xff] %v6531_v32  ;;  %8341 = vst [vmem:[#allocation130_spill] sm:$0xff] %v6534_v36  ;;  %v6540_v1 = vld [vmem:[%s5980_s6 + $0x4a8] sm:$0xff]  ;;  %v6543_v5 = vld [vmem:[%s5980_s6 + $0x4b0] sm:$0xff] }
  0x56   :  { %8342 = vst [vmem:[#allocation131_spill] sm:$0xff] %v6537_v34  ;;  %8343 = vst [vmem:[#allocation132_spill] sm:$0xff] %v6540_v1  ;;  %v6546_v3 = vld [vmem:[%s5980_s6 + $0x4b8] sm:$0xff]  ;;  %v6549_v7 = vld [vmem:[%s5980_s6 + $0x4c0] sm:$0xff] }
  0x57   :  { %8344 = vst [vmem:[#allocation133_spill] sm:$0xff] %v6543_v5  ;;  %8345 = vst [vmem:[#allocation134_spill] sm:$0xff] %v6546_v3  ;;  %v6552_v32 = vld [vmem:[%s5980_s6 + $0x4c8] sm:$0xff]  ;;  %v6555_v36 = vld [vmem:[%s5980_s6 + $0x4d0] sm:$0xff] }
  0x58   :  { %8346 = vst [vmem:[#allocation135_spill] sm:$0xff] %v6549_v7  ;;  %8347 = vst [vmem:[#allocation136_spill] sm:$0xff] %v6552_v32  ;;  %v6558_v34 = vld [vmem:[%s5980_s6 + $0x4d8] sm:$0xff]  ;;  %v6561_v1 = vld [vmem:[%s5980_s6 + $0x4e0] sm:$0xff] }
  0x59   :  { %8348 = vst [vmem:[#allocation137_spill] sm:$0xff] %v6555_v36  ;;  %8349 = vst [vmem:[#allocation138_spill] sm:$0xff] %v6558_v34  ;;  %v6564_v5 = vld [vmem:[%s5980_s6 + $0x4e8] sm:$0xff]  ;;  %v6567_v3 = vld [vmem:[%s5980_s6 + $0x4f0] sm:$0xff] }
  0x5a   :  { %8350 = vst [vmem:[#allocation139_spill] sm:$0xff] %v6561_v1  ;;  %8351 = vst [vmem:[#allocation140_spill] sm:$0xff] %v6564_v5  ;;  %v6570_v7 = vld [vmem:[%s5980_s6 + $0x4f8] sm:$0xff]  ;;  %v6573_v32 = vld [vmem:[%s5980_s6 + $0x500] sm:$0xff] }
  0x5b   :  { %8352 = vst [vmem:[#allocation141_spill] sm:$0xff] %v6567_v3  ;;  %8353 = vst [vmem:[#allocation142_spill] sm:$0xff] %v6570_v7  ;;  %v6576_v36 = vld [vmem:[%s5980_s6 + $0x508] sm:$0xff]  ;;  %v6579_v34 = vld [vmem:[%s5980_s6 + $0x510] sm:$0xff] }
  0x5c   :  { %8354 = vst [vmem:[#allocation143_spill] sm:$0xff] %v6573_v32  ;;  %8355 = vst [vmem:[#allocation144_spill] sm:$0xff] %v6576_v36  ;;  %v6582_v1 = vld [vmem:[%s5980_s6 + $0x518] sm:$0xff]  ;;  %v6585_v5 = vld [vmem:[%s5980_s6 + $0x520] sm:$0xff] }
  0x5d   :  { %8356 = vst [vmem:[#allocation145_spill] sm:$0xff] %v6579_v34  ;;  %8357 = vst [vmem:[#allocation146_spill] sm:$0xff] %v6582_v1  ;;  %v6588_v3 = vld [vmem:[%s5980_s6 + $0x528] sm:$0xff]  ;;  %v6591_v7 = vld [vmem:[%s5980_s6 + $0x530] sm:$0xff] }
  0x5e   :  { %8358 = vst [vmem:[#allocation147_spill] sm:$0xff] %v6585_v5  ;;  %8359 = vst [vmem:[#allocation148_spill] sm:$0xff] %v6588_v3  ;;  %v6594_v32 = vld [vmem:[%s5980_s6 + $0x538] sm:$0xff]  ;;  %v6597_v36 = vld [vmem:[%s5980_s6 + $0x540] sm:$0xff] }
  0x5f   :  { %8360 = vst [vmem:[#allocation149_spill] sm:$0xff] %v6591_v7  ;;  %8361 = vst [vmem:[#allocation150_spill] sm:$0xff] %v6594_v32  ;;  %v6600_v34 = vld [vmem:[%s5980_s6 + $0x548] sm:$0xff]  ;;  %v6603_v1 = vld [vmem:[%s5980_s6 + $0x550] sm:$0xff] }
  0x60   :  { %8362 = vst [vmem:[#allocation151_spill] sm:$0xff] %v6597_v36  ;;  %8363 = vst [vmem:[#allocation152_spill] sm:$0xff] %v6600_v34  ;;  %v6606_v5 = vld [vmem:[%s5980_s6 + $0x558] sm:$0xff]  ;;  %v6609_v3 = vld [vmem:[%s5980_s6 + $0x560] sm:$0xff] }
  0x61   :  { %8364 = vst [vmem:[#allocation153_spill] sm:$0xff] %v6603_v1  ;;  %8365 = vst [vmem:[#allocation154_spill] sm:$0xff] %v6606_v5  ;;  %v6612_v7 = vld [vmem:[%s5980_s6 + $0x568] sm:$0xff]  ;;  %v6615_v32 = vld [vmem:[%s5980_s6 + $0x570] sm:$0xff] }
  0x62   :  { %8366 = vst [vmem:[#allocation155_spill] sm:$0xff] %v6609_v3  ;;  %8367 = vst [vmem:[#allocation156_spill] sm:$0xff] %v6612_v7  ;;  %v6618_v36 = vld [vmem:[%s5980_s6 + $0x578] sm:$0xff]  ;;  %v6621_v34 = vld [vmem:[%s5980_s6 + $0x580] sm:$0xff] }
  0x63   :  { %8368 = vst [vmem:[#allocation157_spill] sm:$0xff] %v6615_v32  ;;  %8369 = vst [vmem:[#allocation158_spill] sm:$0xff] %v6618_v36  ;;  %v6624_v1 = vld [vmem:[%s5980_s6 + $0x588] sm:$0xff]  ;;  %v6627_v5 = vld [vmem:[%s5980_s6 + $0x590] sm:$0xff] }
  0x64   :  { %8370 = vst [vmem:[#allocation159_spill] sm:$0xff] %v6621_v34  ;;  %8371 = vst [vmem:[#allocation160_spill] sm:$0xff] %v6624_v1  ;;  %v6630_v3 = vld [vmem:[%s5980_s6 + $0x598] sm:$0xff]  ;;  %v6633_v7 = vld [vmem:[%s5980_s6 + $0x5a0] sm:$0xff] }
  0x65   :  { %8372 = vst [vmem:[#allocation161_spill] sm:$0xff] %v6627_v5  ;;  %8373 = vst [vmem:[#allocation162_spill] sm:$0xff] %v6630_v3  ;;  %v6636_v32 = vld [vmem:[%s5980_s6 + $0x5a8] sm:$0xff]  ;;  %v6639_v36 = vld [vmem:[%s5980_s6 + $0x5b0] sm:$0xff] }
  0x66   :  { %8374 = vst [vmem:[#allocation163_spill] sm:$0xff] %v6633_v7  ;;  %8375 = vst [vmem:[#allocation164_spill] sm:$0xff] %v6636_v32  ;;  %v6642_v34 = vld [vmem:[%s5980_s6 + $0x5b8] sm:$0xff]  ;;  %v6645_v1 = vld [vmem:[%s5980_s6 + $0x5c0] sm:$0xff] }
  0x67   :  { %8376 = vst [vmem:[#allocation165_spill] sm:$0xff] %v6639_v36  ;;  %8377 = vst [vmem:[#allocation166_spill] sm:$0xff] %v6642_v34  ;;  %v6648_v5 = vld [vmem:[%s5980_s6 + $0x5c8] sm:$0xff]  ;;  %v6651_v3 = vld [vmem:[%s5980_s6 + $0x5d0] sm:$0xff] }
  0x68   :  { %8378 = vst [vmem:[#allocation167_spill] sm:$0xff] %v6645_v1  ;;  %8379 = vst [vmem:[#allocation168_spill] sm:$0xff] %v6648_v5  ;;  %v6654_v7 = vld [vmem:[%s5980_s6 + $0x5d8] sm:$0xff]  ;;  %v6657_v32 = vld [vmem:[%s5980_s6 + $0x5e0] sm:$0xff] }
  0x69   :  { %8380 = vst [vmem:[#allocation169_spill] sm:$0xff] %v6651_v3  ;;  %8381 = vst [vmem:[#allocation170_spill] sm:$0xff] %v6654_v7  ;;  %v6660_v36 = vld [vmem:[%s5980_s6 + $0x5e8] sm:$0xff]  ;;  %v6663_v34 = vld [vmem:[%s5980_s6 + $0x5f0] sm:$0xff] }
  0x6a   :  { %8382 = vst [vmem:[#allocation171_spill] sm:$0xff] %v6657_v32  ;;  %8383 = vst [vmem:[#allocation172_spill] sm:$0xff] %v6660_v36  ;;  %v6666_v1 = vld [vmem:[%s5980_s6 + $0x5f8] sm:$0xff]  ;;  %v6669_v5 = vld [vmem:[%s5980_s6 + $0x600] sm:$0xff] }
  0x6b   :  { %8384 = vst [vmem:[#allocation173_spill] sm:$0xff] %v6663_v34  ;;  %8385 = vst [vmem:[#allocation174_spill] sm:$0xff] %v6666_v1  ;;  %v6672_v3 = vld [vmem:[%s5980_s6 + $0x608] sm:$0xff]  ;;  %v6675_v7 = vld [vmem:[%s5980_s6 + $0x610] sm:$0xff] }
  0x6c   :  { %8386 = vst [vmem:[#allocation175_spill] sm:$0xff] %v6669_v5  ;;  %8387 = vst [vmem:[#allocation176_spill] sm:$0xff] %v6672_v3  ;;  %v6678_v32 = vld [vmem:[%s5980_s6 + $0x618] sm:$0xff]  ;;  %v6681_v36 = vld [vmem:[%s5980_s6 + $0x620] sm:$0xff] }
  0x6d   :  { %8388 = vst [vmem:[#allocation177_spill] sm:$0xff] %v6675_v7  ;;  %8389 = vst [vmem:[#allocation178_spill] sm:$0xff] %v6678_v32  ;;  %v6684_v34 = vld [vmem:[%s5980_s6 + $0x628] sm:$0xff]  ;;  %v6687_v1 = vld [vmem:[%s5980_s6 + $0x630] sm:$0xff] }
  0x6e   :  { %8390 = vst [vmem:[#allocation179_spill] sm:$0xff] %v6681_v36  ;;  %8391 = vst [vmem:[#allocation180_spill] sm:$0xff] %v6684_v34  ;;  %v6690_v5 = vld [vmem:[%s5980_s6 + $0x638] sm:$0xff]  ;;  %v6693_v3 = vld [vmem:[%s5980_s6 + $0x640] sm:$0xff] }
  0x6f   :  { %8392 = vst [vmem:[#allocation181_spill] sm:$0xff] %v6687_v1  ;;  %8393 = vst [vmem:[#allocation182_spill] sm:$0xff] %v6690_v5  ;;  %v6696_v7 = vld [vmem:[%s5980_s6 + $0x648] sm:$0xff]  ;;  %v6699_v32 = vld [vmem:[%s5980_s6 + $0x650] sm:$0xff] }
  0x70   :  { %8394 = vst [vmem:[#allocation183_spill] sm:$0xff] %v6693_v3  ;;  %8395 = vst [vmem:[#allocation184_spill] sm:$0xff] %v6696_v7  ;;  %v6702_v36 = vld [vmem:[%s5980_s6 + $0x658] sm:$0xff]  ;;  %v6705_v34 = vld [vmem:[%s5980_s6 + $0x660] sm:$0xff] }
  0x71   :  { %8396 = vst [vmem:[#allocation185_spill] sm:$0xff] %v6699_v32  ;;  %8397 = vst [vmem:[#allocation186_spill] sm:$0xff] %v6702_v36  ;;  %v6708_v1 = vld [vmem:[%s5980_s6 + $0x668] sm:$0xff]  ;;  %v6711_v5 = vld [vmem:[%s5980_s6 + $0x670] sm:$0xff] }
  0x72   :  { %8398 = vst [vmem:[#allocation187_spill] sm:$0xff] %v6705_v34  ;;  %8399 = vst [vmem:[#allocation188_spill] sm:$0xff] %v6708_v1  ;;  %v6714_v3 = vld [vmem:[%s5980_s6 + $0x678] sm:$0xff]  ;;  %v6717_v7 = vld [vmem:[%s5980_s6 + $0x680] sm:$0xff] }
  0x73   :  { %8400 = vst [vmem:[#allocation189_spill] sm:$0xff] %v6711_v5  ;;  %8401 = vst [vmem:[#allocation190_spill] sm:$0xff] %v6714_v3  ;;  %v6720_v32 = vld [vmem:[%s5980_s6 + $0x688] sm:$0xff]  ;;  %v6723_v36 = vld [vmem:[%s5980_s6 + $0x690] sm:$0xff] }
  0x74   :  { %8402 = vst [vmem:[#allocation191_spill] sm:$0xff] %v6717_v7  ;;  %8403 = vst [vmem:[#allocation192_spill] sm:$0xff] %v6720_v32  ;;  %v6726_v34 = vld [vmem:[%s5980_s6 + $0x698] sm:$0xff]  ;;  %v6729_v1 = vld [vmem:[%s5980_s6 + $0x6a0] sm:$0xff] }
  0x75   :  { %8404 = vst [vmem:[#allocation193_spill] sm:$0xff] %v6723_v36  ;;  %8405 = vst [vmem:[#allocation194_spill] sm:$0xff] %v6726_v34  ;;  %v6732_v5 = vld [vmem:[%s5980_s6 + $0x6a8] sm:$0xff]  ;;  %v6735_v3 = vld [vmem:[%s5980_s6 + $0x6b0] sm:$0xff] }
  0x76   :  { %8406 = vst [vmem:[#allocation195_spill] sm:$0xff] %v6729_v1  ;;  %8407 = vst [vmem:[#allocation196_spill] sm:$0xff] %v6732_v5  ;;  %v6738_v7 = vld [vmem:[%s5980_s6 + $0x6b8] sm:$0xff]  ;;  %v6741_v32 = vld [vmem:[%s5980_s6 + $0x6c0] sm:$0xff] }
  0x77   :  { %8408 = vst [vmem:[#allocation197_spill] sm:$0xff] %v6735_v3  ;;  %8409 = vst [vmem:[#allocation198_spill] sm:$0xff] %v6738_v7  ;;  %v6744_v36 = vld [vmem:[%s5980_s6 + $0x6c8] sm:$0xff]  ;;  %v6747_v34 = vld [vmem:[%s5980_s6 + $0x6d0] sm:$0xff] }
  0x78   :  { %8410 = vst [vmem:[#allocation199_spill] sm:$0xff] %v6741_v32  ;;  %8411 = vst [vmem:[#allocation200_spill] sm:$0xff] %v6744_v36  ;;  %v6750_v1 = vld [vmem:[%s5980_s6 + $0x6d8] sm:$0xff]  ;;  %v6753_v5 = vld [vmem:[%s5980_s6 + $0x6e0] sm:$0xff] }
  0x79   :  { %8412 = vst [vmem:[#allocation201_spill] sm:$0xff] %v6747_v34  ;;  %8413 = vst [vmem:[#allocation202_spill] sm:$0xff] %v6750_v1  ;;  %v6756_v3 = vld [vmem:[%s5980_s6 + $0x6e8] sm:$0xff]  ;;  %v6759_v7 = vld [vmem:[%s5980_s6 + $0x6f0] sm:$0xff] }
  0x7a   :  { %8414 = vst [vmem:[#allocation203_spill] sm:$0xff] %v6753_v5  ;;  %8415 = vst [vmem:[#allocation204_spill] sm:$0xff] %v6756_v3  ;;  %v6762_v32 = vld [vmem:[%s5980_s6 + $0x6f8] sm:$0xff]  ;;  %v6765_v36 = vld [vmem:[%s5980_s6 + $0x700] sm:$0xff] }
  0x7b   :  { %8416 = vst [vmem:[#allocation205_spill] sm:$0xff] %v6759_v7  ;;  %8417 = vst [vmem:[#allocation206_spill] sm:$0xff] %v6762_v32  ;;  %v6768_v34 = vld [vmem:[%s5980_s6 + $0x708] sm:$0xff]  ;;  %v6771_v1 = vld [vmem:[%s5980_s6 + $0x710] sm:$0xff] }
  0x7c   :  { %8418 = vst [vmem:[#allocation207_spill] sm:$0xff] %v6765_v36  ;;  %8419 = vst [vmem:[#allocation208_spill] sm:$0xff] %v6768_v34  ;;  %v6774_v5 = vld [vmem:[%s5980_s6 + $0x718] sm:$0xff]  ;;  %v6777_v3 = vld [vmem:[%s5980_s6 + $0x720] sm:$0xff] }
  0x7d   :  { %8420 = vst [vmem:[#allocation209_spill] sm:$0xff] %v6771_v1  ;;  %8421 = vst [vmem:[#allocation210_spill] sm:$0xff] %v6774_v5  ;;  %v6780_v7 = vld [vmem:[%s5980_s6 + $0x728] sm:$0xff]  ;;  %v6783_v32 = vld [vmem:[%s5980_s6 + $0x730] sm:$0xff] }
  0x7e   :  { %8422 = vst [vmem:[#allocation211_spill] sm:$0xff] %v6777_v3  ;;  %8423 = vst [vmem:[#allocation212_spill] sm:$0xff] %v6780_v7  ;;  %v6786_v36 = vld [vmem:[%s5980_s6 + $0x738] sm:$0xff]  ;;  %v6789_v34 = vld [vmem:[%s5980_s6 + $0x740] sm:$0xff] }
  0x7f   :  { %8424 = vst [vmem:[#allocation213_spill] sm:$0xff] %v6783_v32  ;;  %8425 = vst [vmem:[#allocation214_spill] sm:$0xff] %v6786_v36  ;;  %v6792_v1 = vld [vmem:[%s5980_s6 + $0x748] sm:$0xff]  ;;  %v6795_v5 = vld [vmem:[%s5980_s6 + $0x750] sm:$0xff] }
  0x80   :  { %8426 = vst [vmem:[#allocation215_spill] sm:$0xff] %v6789_v34  ;;  %8427 = vst [vmem:[#allocation216_spill] sm:$0xff] %v6792_v1  ;;  %v6798_v3 = vld [vmem:[%s5980_s6 + $0x758] sm:$0xff]  ;;  %v6801_v7 = vld [vmem:[%s5980_s6 + $0x760] sm:$0xff] }
  0x81   :  { %8428 = vst [vmem:[#allocation217_spill] sm:$0xff] %v6795_v5  ;;  %8429 = vst [vmem:[#allocation218_spill] sm:$0xff] %v6798_v3  ;;  %v6804_v32 = vld [vmem:[%s5980_s6 + $0x768] sm:$0xff]  ;;  %v6807_v36 = vld [vmem:[%s5980_s6 + $0x770] sm:$0xff] }
  0x82   :  { %8430 = vst [vmem:[#allocation219_spill] sm:$0xff] %v6801_v7  ;;  %8431 = vst [vmem:[#allocation220_spill] sm:$0xff] %v6804_v32  ;;  %v6810_v34 = vld [vmem:[%s5980_s6 + $0x778] sm:$0xff]  ;;  %v6813_v1 = vld [vmem:[%s5980_s6 + $0x780] sm:$0xff] }
  0x83   :  { %8432 = vst [vmem:[#allocation221_spill] sm:$0xff] %v6807_v36  ;;  %8433 = vst [vmem:[#allocation222_spill] sm:$0xff] %v6810_v34  ;;  %v6816_v5 = vld [vmem:[%s5980_s6 + $0x788] sm:$0xff]  ;;  %v6819_v3 = vld [vmem:[%s5980_s6 + $0x790] sm:$0xff] }
  0x84   :  { %8434 = vst [vmem:[#allocation223_spill] sm:$0xff] %v6813_v1  ;;  %8435 = vst [vmem:[#allocation224_spill] sm:$0xff] %v6816_v5  ;;  %v6822_v7 = vld [vmem:[%s5980_s6 + $0x798] sm:$0xff]  ;;  %v6825_v32 = vld [vmem:[%s5980_s6 + $0x7a0] sm:$0xff] }
  0x85   :  { %8436 = vst [vmem:[#allocation225_spill] sm:$0xff] %v6819_v3  ;;  %8437 = vst [vmem:[#allocation226_spill] sm:$0xff] %v6822_v7  ;;  %v6828_v36 = vld [vmem:[%s5980_s6 + $0x7a8] sm:$0xff]  ;;  %v6831_v34 = vld [vmem:[%s5980_s6 + $0x7b0] sm:$0xff] }
  0x86   :  { %8438 = vst [vmem:[#allocation227_spill] sm:$0xff] %v6825_v32  ;;  %8439 = vst [vmem:[#allocation228_spill] sm:$0xff] %v6828_v36  ;;  %v6834_v1 = vld [vmem:[%s5980_s6 + $0x7b8] sm:$0xff]  ;;  %v6837_v5 = vld [vmem:[%s5980_s6 + $0x7c0] sm:$0xff] }
  0x87   :  { %8440 = vst [vmem:[#allocation229_spill] sm:$0xff] %v6831_v34  ;;  %8441 = vst [vmem:[#allocation230_spill] sm:$0xff] %v6834_v1  ;;  %v6840_v3 = vld [vmem:[%s5980_s6 + $0x7c8] sm:$0xff]  ;;  %v6843_v7 = vld [vmem:[%s5980_s6 + $0x7d0] sm:$0xff] }
  0x88   :  { %8442 = vst [vmem:[#allocation231_spill] sm:$0xff] %v6837_v5  ;;  %8443 = vst [vmem:[#allocation232_spill] sm:$0xff] %v6840_v3  ;;  %v6846_v32 = vld [vmem:[%s5980_s6 + $0x7d8] sm:$0xff]  ;;  %v6849_v36 = vld [vmem:[%s5980_s6 + $0x7e0] sm:$0xff] }
  0x89   :  { %8444 = vst [vmem:[#allocation233_spill] sm:$0xff] %v6843_v7  ;;  %8445 = vst [vmem:[#allocation234_spill] sm:$0xff] %v6846_v32  ;;  %v6852_v34 = vld [vmem:[%s5980_s6 + $0x7e8] sm:$0xff]  ;;  %v6855_v1 = vld [vmem:[%s5980_s6 + $0x7f0] sm:$0xff] }
  0x8a   :  { %8446 = vst [vmem:[#allocation235_spill] sm:$0xff] %v6849_v36  ;;  %8447 = vst [vmem:[#allocation236_spill] sm:$0xff] %v6852_v34  ;;  %v6858_v5 = vld [vmem:[%s5980_s6 + $0x7f8] sm:$0xff]  ;;  %v6861_v3 = vld [vmem:[%s5980_s6 + $0x800] sm:$0xff] }
  0x8b   :  { %8448 = vst [vmem:[#allocation237_spill] sm:$0xff] %v6855_v1  ;;  %8449 = vst [vmem:[#allocation238_spill] sm:$0xff] %v6858_v5  ;;  %v6864_v7 = vld [vmem:[%s5980_s6 + $0x808] sm:$0xff]  ;;  %v6867_v32 = vld [vmem:[%s5980_s6 + $0x810] sm:$0xff] }
  0x8c   :  { %8450 = vst [vmem:[#allocation239_spill] sm:$0xff] %v6861_v3  ;;  %8451 = vst [vmem:[#allocation240_spill] sm:$0xff] %v6864_v7  ;;  %v6870_v36 = vld [vmem:[%s5980_s6 + $0x818] sm:$0xff]  ;;  %v6873_v34 = vld [vmem:[%s5980_s6 + $0x820] sm:$0xff] }
  0x8d   :  { %8452 = vst [vmem:[#allocation241_spill] sm:$0xff] %v6867_v32  ;;  %8453 = vst [vmem:[#allocation242_spill] sm:$0xff] %v6870_v36  ;;  %v6876_v1 = vld [vmem:[%s5980_s6 + $0x828] sm:$0xff]  ;;  %v6879_v5 = vld [vmem:[%s5980_s6 + $0x830] sm:$0xff] }
  0x8e   :  { %8454 = vst [vmem:[#allocation243_spill] sm:$0xff] %v6873_v34  ;;  %8455 = vst [vmem:[#allocation244_spill] sm:$0xff] %v6876_v1  ;;  %v6882_v3 = vld [vmem:[%s5980_s6 + $0x838] sm:$0xff]  ;;  %v6885_v7 = vld [vmem:[%s5980_s6 + $0x840] sm:$0xff] }
  0x8f   :  { %8456 = vst [vmem:[#allocation245_spill] sm:$0xff] %v6879_v5  ;;  %8457 = vst [vmem:[#allocation246_spill] sm:$0xff] %v6882_v3  ;;  %v6888_v32 = vld [vmem:[%s5980_s6 + $0x848] sm:$0xff]  ;;  %v6891_v36 = vld [vmem:[%s5980_s6 + $0x850] sm:$0xff] }
  0x90   :  { %8458 = vst [vmem:[#allocation247_spill] sm:$0xff] %v6885_v7  ;;  %8459 = vst [vmem:[#allocation248_spill] sm:$0xff] %v6888_v32  ;;  %v6894_v34 = vld [vmem:[%s5980_s6 + $0x858] sm:$0xff]  ;;  %v6897_v1 = vld [vmem:[%s5980_s6 + $0x860] sm:$0xff] }
  0x91   :  { %8460 = vst [vmem:[#allocation249_spill] sm:$0xff] %v6891_v36  ;;  %8461 = vst [vmem:[#allocation250_spill] sm:$0xff] %v6894_v34  ;;  %v6900_v5 = vld [vmem:[%s5980_s6 + $0x868] sm:$0xff]  ;;  %v6903_v3 = vld [vmem:[%s5980_s6 + $0x870] sm:$0xff] }
  0x92   :  { %8462 = vst [vmem:[#allocation251_spill] sm:$0xff] %v6897_v1  ;;  %8463 = vst [vmem:[#allocation252_spill] sm:$0xff] %v6900_v5  ;;  %v6906_v7 = vld [vmem:[%s5980_s6 + $0x878] sm:$0xff]  ;;  %v6909_v32 = vld [vmem:[%s5980_s6 + $0x880] sm:$0xff] }
  0x93   :  { %8464 = vst [vmem:[#allocation253_spill] sm:$0xff] %v6903_v3  ;;  %8465 = vst [vmem:[#allocation254_spill] sm:$0xff] %v6906_v7  ;;  %v6912_v36 = vld [vmem:[%s5980_s6 + $0x888] sm:$0xff]  ;;  %v6915_v34 = vld [vmem:[%s5980_s6 + $0x890] sm:$0xff] }
  0x94   :  { %8466 = vst [vmem:[#allocation255_spill] sm:$0xff] %v6909_v32  ;;  %8467 = vst [vmem:[#allocation256_spill] sm:$0xff] %v6912_v36  ;;  %v6918_v38 = vld [vmem:[%s5980_s6 + $0x898] sm:$0xff]  ;;  %v6921_v1 = vld [vmem:[%s5980_s6 + $0x8a0] sm:$0xff] }
  0x95   :  { %8468 = vst [vmem:[#allocation257_spill] sm:$0xff] %v6915_v34  ;;  %8469 = vst [vmem:[#allocation258_spill] sm:$0xff] %v6918_v38  ;;  %v6924_v5 = vld [vmem:[%s5980_s6 + $0x8a8] sm:$0xff]  ;;  %v6927_v9 = vld [vmem:[%s5980_s6 + $0x8b0] sm:$0xff] }
  0x96   :  { %8470 = vst [vmem:[#allocation259_spill] sm:$0xff] %v6921_v1  ;;  %8471 = vst [vmem:[#allocation260_spill] sm:$0xff] %v6924_v5  ;;  %v6930_v3 = vld [vmem:[%s5980_s6 + $0x8b8] sm:$0xff]  ;;  %v6933_v7 = vld [vmem:[%s5980_s6 + $0x8c0] sm:$0xff] }
  0x97   :  { %8472 = vst [vmem:[#allocation261_spill] sm:$0xff] %v6927_v9  ;;  %8473 = vst [vmem:[#allocation262_spill] sm:$0xff] %v6930_v3  ;;  %v6936_v32 = vld [vmem:[%s5980_s6 + $0x8c8] sm:$0xff]  ;;  %v6939_v36 = vld [vmem:[%s5980_s6 + $0x8d0] sm:$0xff] }
  0x98   :  { %8474 = vst [vmem:[#allocation263_spill] sm:$0xff] %v6933_v7  ;;  %8475 = vst [vmem:[#allocation264_spill] sm:$0xff] %v6936_v32  ;;  %v6942_v11 = vld [vmem:[%s5980_s6 + $0x8d8] sm:$0xff]  ;;  %v6945_v34 = vld [vmem:[%s5980_s6 + $0x8e0] sm:$0xff]  ;;  %v8199_v7 = vmov 0  }
  0x99   :  { %8476 = vst [vmem:[#allocation265_spill] sm:$0xff] %v6939_v36  ;;  %8477 = vst [vmem:[#allocation266_spill] sm:$0xff] %v6942_v11  ;;  %v6948_v38 = vld [vmem:[%s5980_s6 + $0x8e8] sm:$0xff]  ;;  %v6951_v1 = vld [vmem:[%s5980_s6 + $0x8f0] sm:$0xff]  ;;  %5781 = vset.pattern.permute.xlu1 %v8199_v7  ;;  %5780 = vset.pattern.permute.xlu0 %v8199_v7  ;;  %v8201_v36 = vmov 0.0  }
  0x9a   :  { %8478 = vst [vmem:[#allocation267_spill] sm:$0xff] %v6945_v34  ;;  %8479 = vst [vmem:[#allocation268_spill] sm:$0xff] %v6948_v38  ;;  %v6954_v5 = vld [vmem:[%s5980_s6 + $0x8f8] sm:$0xff]  ;;  %v763_v3 = vld [vmem:[%s5915_s5 + $0x8] sm:$0xff]  ;;  %1240 = vmatprep.mubr.bf16.mxu0 %v8199_v7  ;;  %1634 = vmatprep.mubr.bf16.mxu1 %v8199_v7 }
  0x9b   :  { %8480 = vst [vmem:[#allocation269_spill] sm:$0xff] %v6951_v1  ;;  %8481 = vst [vmem:[#allocation270_spill] sm:$0xff] %v6954_v5  ;;  %v762_v9 = vld [vmem:[%s5915_s5] sm:$0xff]  ;;  %787 = vperm.xlu1 %5781, %v763_v3   ;;  %v764_v32 = vld [vmem:[%s5915_s5 + $0x10] sm:$0xff] }
  0x9c   :  { %782 = vperm.xlu0 %5780, %v762_v9   ;;  %v888_v11 = vld [vmem:[%s5920_s9] sm:$0xff]  ;;  %v890_v38 = vld [vmem:[%s5920_s9 + $0x10] sm:$0xff]  ;;  %v889_v5 = vld [vmem:[%s5920_s9 + $0x8] sm:$0xff]  ;;  %1032 = vst.msk [vmem:[#allocation2] sm:$0xff] %vm1031_vm0, %v8201_v36 }
  0x9d   :  { %1033 = vst.msk [vmem:[#allocation2 + $0x90] sm:$0xff] %vm1031_vm0, %v8201_v36  ;;  %v766_v3 = vld [vmem:[%s5915_s5 + $0x20] sm:$0xff]  ;;  %v765_v9 = vld [vmem:[%s5915_s5 + $0x18] sm:$0xff] }
  0x9f   :  { %792 = vperm.xlu1 %5781, %v764_v32  }
  0xa0   :  { %908 = vperm.xlu0 %5780, %v888_v11  }
  0xa3   :  { %918 = vperm.xlu1 %5781, %v890_v38  }
  0xa4   :  { %913 = vperm.xlu0 %5780, %v889_v5  }
  0xa5   :  { %761 = vsyncadd [#allocation8], 36864  ;;  %v5782_v11 = vld [vmem:[%s5960_s14 + $0x44] ss:$8 sps:$4 sm:$0xff]   ;;  %v5784_v32 = vld [vmem:[%s5960_s14 + $0x40] ss:$8 sps:$4 sm:$0xff]  }
  0xa6   :  { %v1114_v7 = vld [vmem:[%s5960_s14 + $0x30] sm:$0xff]  ;;  %v1115_v36 = vld [vmem:[%s5960_s14 + $0x38] sm:$0xff]  ;;  %v892_v38 = vld [vmem:[%s5920_s9 + $0x20] sm:$0xff]  ;;  %1214 = vmatprep.subr.bf16.mxu0 %v5782_v11  ;;  %vm1947_vm1 = vcmask 1044480   ;;  %vm1948_vm2 = vcmask 1045504   ;;  %vm5906_vm3 = vmmov 0  }
  0xa7   :  { %802 = vperm.xlu1 %5781, %v766_v3   ;;  %v5785_v5 = vld [vmem:[%s5960_s14 + $0x34] ss:$8 sps:$4 sm:$0xff]   ;;  %1215 = vmatpush1.bf16.msra.mxu0 %v5784_v32  ;;  %v5192_v1 = vcombine.low %v1114_v7, %v1115_v36  ;;  %v1112_v40 = vld [vmem:[%s5960_s14 + $0x20] sm:$0xff]  ;;  %v1113_v42 = vld [vmem:[%s5960_s14 + $0x28] sm:$0xff]  ;;  %vm1943_vm4 = vcmask 220160   ;;  %vm2089_vm5 = vcmask 1041408  }
  0xa8   :  { %797 = vperm.xlu0 %5780, %v765_v9   ;;  %v891_v34 = vld [vmem:[%s5920_s9 + $0x18] sm:$0xff]  ;;  %1216 = vmatprep.subr.bf16.mxu0 %v5785_v5  ;;  %v5787_v13 = vld [vmem:[%s5960_s14 + $0x24] ss:$8 sps:$4 sm:$0xff]   ;;  %v768_v3 = vld [vmem:[%s5915_s5 + $0x30] sm:$0xff]  ;;  %v5190_v15 = vcombine.low %v1112_v40, %v1113_v42  ;;  %vm2085_vm6 = vcmask 162816  }
  0xa9   :  { %v767_v9 = vld [vmem:[%s5915_s5 + $0x28] sm:$0xff]  ;;  %v5789_v44 = vld [vmem:[%s5960_s14 + $0x14] ss:$8 sps:$4 sm:$0xff]   ;;  %v5791_v7 = vld [vmem:[%s5960_s14 + $0x10] ss:$8 sps:$4 sm:$0xff]  }
  0xaa   :  { %v894_v11 = vld [vmem:[%s5920_s9 + $0x30] sm:$0xff]  ;;  %v893_v32 = vld [vmem:[%s5920_s9 + $0x28] sm:$0xff]  ;;  %v1108_v36 = vld [vmem:[%s5960_s14] sm:$0xff] }
  0xab   :  { %928 = vperm.xlu1 %5781, %v892_v38   ;;  %1217 = vmatpush1.bf16.msra.mxu0 %v5192_v1  ;;  %v1109_v5 = vld [vmem:[%s5960_s14 + $0x8] sm:$0xff]  ;;  %v769_v38 = vld [vmem:[%s5915_s5 + $0x38] sm:$0xff]  ;;  %v772_v42 = vld [vmem:[%s5915_s5 + $0x50] sm:$0xff] }
  0xac   :  { %923 = vperm.xlu0 %5780, %v891_v34   ;;  %1218 = vmatprep.subr.bf16.mxu0 %v5787_v13  ;;  %v5792_v46 = vld [vmem:[%s5960_s14 + $0x4] ss:$8 sps:$4 sm:$0xff]   ;;  %v5186_v1 = vcombine.low %v1108_v36, %v1109_v5  ;;  %v895_v40 = vld [vmem:[%s5920_s9 + $0x38] sm:$0xff]  ;;  %v776_v36 = vld [vmem:[%s5915_s5 + $0x70] sm:$0xff] }
  0xad   :  { %v770_v34 = vld [vmem:[%s5915_s5 + $0x40] sm:$0xff]  ;;  %v775_v5 = vld [vmem:[%s5915_s5 + $0x68] sm:$0xff] }
  0xae   :  { %v896_v13 = vld [vmem:[%s5920_s9 + $0x40] sm:$0xff] }
  0xaf   :  { %812 = vperm.xlu1 %5781, %v768_v3   ;;  %1219 = vmatpush1.bf16.msra.mxu0 %v5190_v15  ;;  %v8482_v15 = vmov 0.0   ;;  %v897_v3 = vld [vmem:[%s5920_s9 + $0x48] sm:$0xff]  ;;  %v7036_v48 = vld [vmem:[%s5945_s29] ss:$0 sm:$0xff] }
  0xb0   :  { %807 = vperm.xlu0 %5780, %v767_v9   ;;  %1220 = vmatprep.subr.bf16.mxu0 %v5789_v44  ;;  %v771_v44 = vld [vmem:[%s5915_s5 + $0x48] sm:$0xff]  ;;  %v774_v9 = vld [vmem:[%s5915_s5 + $0x60] sm:$0xff] }
  0xb3   :  { %938 = vperm.xlu1 %5781, %v894_v11   ;;  %1221 = vmatpush1.bf16.msra.mxu0 %v5791_v7  ;;  %v773_v11 = vld [vmem:[%s5915_s5 + $0x58] sm:$0xff] }
  0xb4   :  { %933 = vperm.xlu0 %5780, %v893_v32   ;;  %1222 = vmatprep.subr.bf16.mxu0 %v5792_v46  ;;  %v898_v46 = vld [vmem:[%s5920_s9 + $0x50] sm:$0xff]  ;;  %v900_v32 = vld [vmem:[%s5920_s9 + $0x60] sm:$0xff]  ;;  %v899_v7 = vld [vmem:[%s5920_s9 + $0x58] sm:$0xff] }
  0xb7   :  { %822 = vperm.xlu1 %5781, %v770_v34   ;;  %1223 = vmatpush1.bf16.msra.mxu0 %v5186_v1  ;;  %v902_v34 = vld [vmem:[%s5920_s9 + $0x70] sm:$0xff]  ;;  %v778_v1 = vld [vmem:[%s5915_s5 + $0x80] sm:$0xff] }
  0xb8   :  { %817 = vperm.xlu0 %5780, %v769_v38   ;;  %5662 = vmatprep.subr.bf16.mxu0 %v8482_v15  ;;  %v901_v38 = vld [vmem:[%s5920_s9 + $0x68] sm:$0xff] }
  0xbb   :  { %948 = vperm.xlu1 %5781, %v896_v13   ;;  %v777_v13 = vld [vmem:[%s5915_s5 + $0x78] sm:$0xff] }
  0xbc   :  { %943 = vperm.xlu0 %5780, %v895_v40   ;;  %v904_v40 = vld [vmem:[%s5920_s9 + $0x80] sm:$0xff] }
  0xbf   :  { %832 = vperm.xlu1 %5781, %v772_v42   ;;  %v903_v42 = vld [vmem:[%s5920_s9 + $0x78] sm:$0xff] }
  0xc0   :  { %827 = vperm.xlu0 %5780, %v771_v44   ;;  %v5796_v44 = vld [vmem:[%s5970_s24 + $0x74] ss:$8 sps:$4 sm:$0xff]  }
  0xc1   :  { %1602 = vmatprep.subr.bf16.mxu1 %v5796_v44 }
  0xc3   :  { %958 = vperm.xlu1 %5781, %v898_v46   ;;  %v5798_v46 = vld [vmem:[%s5970_s24 + $0x70] ss:$8 sps:$4 sm:$0xff]  }
  0xc4   :  { %953 = vperm.xlu0 %5780, %v897_v3   ;;  %v5799_v3 = vld [vmem:[%s5970_s24 + $0x64] ss:$8 sps:$4 sm:$0xff]   ;;  %1603 = vmatpush1.bf16.msra.mxu1 %v5798_v46 }
  0xc5   :  { %1604 = vmatprep.subr.bf16.mxu1 %v5799_v3 }
  0xc7   :  { %842 = vperm.xlu1 %5781, %v774_v9   ;;  %v5801_v9 = vld [vmem:[%s5970_s24 + $0x60] ss:$8 sps:$4 sm:$0xff]  }
  0xc8   :  { %837 = vperm.xlu0 %5780, %v773_v11   ;;  %v5802_v11 = vld [vmem:[%s5970_s24 + $0x54] ss:$8 sps:$4 sm:$0xff]   ;;  %1605 = vmatpush1.bf16.msra.mxu1 %v5801_v9  ;;  %v5183_v9 = vld [vmem:[%s5950_s3] ss:$0 sm:$0xff] }
  0xc9   :  { %1606 = vmatprep.subr.bf16.mxu1 %v5802_v11 }
  0xcb   :  { %968 = vperm.xlu1 %5781, %v900_v32   ;;  %v5804_v32 = vld [vmem:[%s5970_s24 + $0x50] ss:$8 sps:$4 sm:$0xff]  }
  0xcc   :  { %963 = vperm.xlu0 %5780, %v899_v7   ;;  %v5805_v7 = vld [vmem:[%s5970_s24 + $0x44] ss:$8 sps:$4 sm:$0xff]   ;;  %1607 = vmatpush1.bf16.msra.mxu1 %v5804_v32 }
  0xcd   :  { %1608 = vmatprep.subr.bf16.mxu1 %v5805_v7 }
  0xcf   :  { %852 = vperm.xlu1 %5781, %v776_v36   ;;  %v5807_v36 = vld [vmem:[%s5970_s24 + $0x40] ss:$8 sps:$4 sm:$0xff]  }
  0xd0   :  { %847 = vperm.xlu0 %5780, %v775_v5   ;;  %v5808_v5 = vld [vmem:[%s5970_s24 + $0x34] ss:$8 sps:$4 sm:$0xff]   ;;  %1609 = vmatpush1.bf16.msra.mxu1 %v5807_v36 }
  0xd1   :  { %1610 = vmatprep.subr.bf16.mxu1 %v5808_v5 }
  0xd3   :  { %978 = vperm.xlu1 %5781, %v902_v34   ;;  %v5810_v34 = vld [vmem:[%s5970_s24 + $0x30] ss:$8 sps:$4 sm:$0xff]  }
  0xd4   :  { %973 = vperm.xlu0 %5780, %v901_v38   ;;  %1611 = vmatpush1.bf16.msra.mxu1 %v5810_v34 }
  0xd7   :  { %862 = vperm.xlu1 %5781, %v778_v1  }
  0xd8   :  { %857 = vperm.xlu0 %5780, %v777_v13   ;;  %v7023_v13 = vld [vmem:[%s5935_s21] ss:$0 sm:$0xff] }
  0xdb   :  { %988 = vperm.xlu1 %5781, %v904_v40   ;;  %v7026_v40 = vld [vmem:[%s5940_s25] ss:$0 sm:$0xff] }
  0xdc   :  { %983 = vperm.xlu0 %5780, %v903_v42  }
 0x116   :  { %v788_v38 = vpop.permute.xlu1 %787 }
 0x117   :  { %v783_v1 = vpop.permute.xlu0 %782  ;;  %v872_v32 = vmul.f32 %v7023_v13, %v788_v38  ;;  %v8216_v38 = vmov 65535  }
 0x118   :  { %v871_v46 = vmul.f32 %v7023_v13, %v783_v1  ;;  %v1949_v50 = vsel %vm1947_vm1, 4294967295, %v8216_v38 }
 0x11a   :  { %v793_v42 = vpop.permute.xlu1 %792 }
 0x11b   :  { %v909_v44 = vpop.permute.xlu0 %908  ;;  %v873_v5 = vmul.f32 %v7023_v13, %v793_v42 }
 0x11c   :  { %v997_v3 = vmul.f32 %v7026_v40, %v909_v44 }
 0x11e   :  { %v1014_v11 = vadd.f32 %v997_v3, %v871_v46  ;;  %v919_v7 = vpop.permute.xlu1 %918 }
 0x11f   :  { %v914_v36 = vpop.permute.xlu0 %913  ;;  %v999_v17 = vmul.f32 %v7026_v40, %v919_v7 }
 0x120   :  { %v1041_v34 = vadd.f32 %v5183_v9, %v1014_v11  ;;  %v998_v19 = vmul.f32 %v7026_v40, %v914_v36  ;;  %v5794_v9 = vld [vmem:[%s6000_s4 + $0x8] sm:$0x3f]   ;;  %v7046_v11 = vsel %vm1948_vm2, %v1949_v50, 0 }
 0x121   :  { %v1016_v1 = vadd.f32 %v999_v17, %v873_v5 }
 0x122   :  { %1042 = vst.msk [vmem:[#allocation2 + $0x8] sm:$0xff] %vm1031_vm0, %v1041_v34  ;;  %v1015_v44 = vadd.f32 %v998_v19, %v872_v32  ;;  %v803_v46 = vpop.permute.xlu1 %802  ;;  %v1089_v32 = vld [vmem:[#allocation2] sm:$0xff] }
 0x123   :  { %v798_v3 = vpop.permute.xlu0 %797  ;;  %v1051_v21 = vadd.f32 %v7036_v48, %v1016_v1  ;;  %v875_v7 = vmul.f32 %v7023_v13, %v803_v46  ;;  %v8483_v46 = vmov 0  }
 0x124   :  { %v1050_v42 = vadd.f32 %v7036_v48, %v1015_v44  ;;  %v874_v36 = vmul.f32 %v7023_v13, %v798_v3  ;;  %v5795_v3 = vld [vmem:[%s6000_s4] sm:$0xff]  }
 0x125   :  { %1066 = vst.msk [vmem:[#allocation2 + $0x18] sm:$0xff] %vm1031_vm0, %v1051_v21  ;;  %v1952_v21 = vand.u32 %v5794_v9, %v7046_v11 }
 0x126   :  { %1065 = vst.msk [vmem:[#allocation2 + $0x10] sm:$0xff] %vm1031_vm0, %v1050_v42  ;;  %v929_v17 = vpop.permute.xlu1 %928 }
 0x127   :  { %v924_v19 = vpop.permute.xlu0 %923  ;;  %v1001_v5 = vmul.f32 %v7026_v40, %v929_v17 }
 0x128   :  { %v1000_v34 = vmul.f32 %v7026_v40, %v924_v19 }
 0x129   :  { %v1090_v1 = vld [vmem:[#allocation2 + $0x8] sm:$0xff]  ;;  %v1018_v44 = vadd.f32 %v1001_v5, %v875_v7 }
 0x12a   :  { %v1017_v42 = vadd.f32 %v1000_v34, %v874_v36  ;;  %v1118_v38 = vpack.c.bf16 %v1090_v1, %v1089_v32  ;;  %v813_v50 = vpop.permute.xlu1 %812 }
 0x12b   :  { %v808_v23 = vpop.permute.xlu0 %807  ;;  %v1053_v52 = vadd.f32 %v7036_v48, %v1018_v44  ;;  %v877_v7 = vmul.f32 %v7023_v13, %v813_v50 }
 0x12c   :  { %v1052_v54 = vadd.f32 %v7036_v48, %v1017_v42  ;;  %5196 = vmatmul.mubr.msk.bf16.vlgmr.msra.gmra.mxu0 %vm1031_vm0, %v1118_v38  ;;  %v1092_v32 = vld [vmem:[#allocation2 + $0x18] sm:$0xff]  ;;  %v876_v36 = vmul.f32 %v7023_v13, %v808_v23 }
 0x12d   :  { %5663 = vmatpush3.bf16.msra.mxu0 %v1952_v21  ;;  %1250 = vmatprep.mubr.bf16.mxu0 %v8483_v46  ;;  %1068 = vst.msk [vmem:[#allocation2 + $0x28] sm:$0xff] %vm1031_vm0, %v1053_v52  ;;  %v1091_v19 = vld [vmem:[#allocation2 + $0x10] sm:$0xff] }
 0x12e   :  { %1067 = vst.msk [vmem:[#allocation2 + $0x20] sm:$0xff] %vm1031_vm0, %v1052_v54  ;;  %5664 = vmatprep.subr.bf16.mxu0 %v8482_v15  ;;  %v939_v9 = vpop.permute.xlu1 %938  ;;  %v1119_v52 = vpack.c.bf16 %v1092_v32, %v1091_v19 }
 0x12f   :  { %v934_v17 = vpop.permute.xlu0 %933  ;;  %v1003_v38 = vmul.f32 %v7026_v40, %v939_v9 }
 0x130   :  { %v1002_v5 = vmul.f32 %v7026_v40, %v934_v17 }
 0x131   :  { %5665 = vmatpush3.bf16.msra.mxu0 %v5795_v3  ;;  %v1020_v34 = vadd.f32 %v1003_v38, %v877_v7 }
 0x132   :  { %v1019_v1 = vadd.f32 %v1002_v5, %v876_v36  ;;  %5670 = vmatprep.subr.bf16.mxu0 %v8482_v15  ;;  %v823_v54 = vpop.permute.xlu1 %822 }
 0x133   :  { %v818_v21 = vpop.permute.xlu0 %817  ;;  %v1055_v44 = vadd.f32 %v7036_v48, %v1020_v34  ;;  %v879_v17 = vmul.f32 %v7023_v13, %v823_v54 }
 0x134   :  { %v1054_v42 = vadd.f32 %v7036_v48, %v1019_v1  ;;  %5197 = vmatmul.mubr.msk.bf16.gmra.mxu0 %vm1031_vm0, %v1119_v52  ;;  %v1094_v9 = vld [vmem:[#allocation2 + $0x28] sm:$0xff]  ;;  %v878_v19 = vmul.f32 %v7023_v13, %v818_v21 }
 0x135   :  { %1260 = vmatprep.mubr.bf16.mxu0 %v8483_v46  ;;  %1070 = vst.msk [vmem:[#allocation2 + $0x38] sm:$0xff] %vm1031_vm0, %v1055_v44  ;;  %v1093_v3 = vld [vmem:[#allocation2 + $0x20] sm:$0xff] }
 0x136   :  { %1069 = vst.msk [vmem:[#allocation2 + $0x30] sm:$0xff] %vm1031_vm0, %v1054_v42  ;;  %v949_v23 = vpop.permute.xlu1 %948  ;;  %v1120_v5 = vpack.c.bf16 %v1094_v9, %v1093_v3 }
 0x137   :  { %v944_v50 = vpop.permute.xlu0 %943  ;;  %v1005_v32 = vmul.f32 %v7026_v40, %v949_v23 }
 0x138   :  { %v1004_v7 = vmul.f32 %v7026_v40, %v944_v50 }
 0x139   :  { %v1022_v36 = vadd.f32 %v1005_v32, %v879_v17 }
 0x13a   :  { %v1021_v38 = vadd.f32 %v1004_v7, %v878_v19  ;;  %v833_v34 = vpop.permute.xlu1 %832 }
 0x13b   :  { %v828_v1 = vpop.permute.xlu0 %827  ;;  %v1057_v52 = vadd.f32 %v7036_v48, %v1022_v36  ;;  %v881_v50 = vmul.f32 %v7023_v13, %v833_v34 }
 0x13c   :  { %v1056_v44 = vadd.f32 %v7036_v48, %v1021_v38  ;;  %5198 = vmatmul.mubr.msk.bf16.gmra.mxu0 %vm1031_vm0, %v1120_v5  ;;  %v1096_v23 = vld [vmem:[#allocation2 + $0x38] sm:$0xff]  ;;  %v880_v3 = vmul.f32 %v7023_v13, %v828_v1 }
 0x13d   :  { %1270 = vmatprep.mubr.bf16.mxu0 %v8483_v46  ;;  %1072 = vst.msk [vmem:[#allocation2 + $0x48] sm:$0xff] %vm1031_vm0, %v1057_v52  ;;  %v1095_v42 = vld [vmem:[#allocation2 + $0x30] sm:$0xff] }
 0x13e   :  { %1071 = vst.msk [vmem:[#allocation2 + $0x40] sm:$0xff] %vm1031_vm0, %v1056_v44  ;;  %v959_v54 = vpop.permute.xlu1 %958  ;;  %v1121_v7 = vpack.c.bf16 %v1096_v23, %v1095_v42 }
 0x13f   :  { %v954_v21 = vpop.permute.xlu0 %953  ;;  %v1007_v9 = vmul.f32 %v7026_v40, %v959_v54 }
 0x140   :  { %v1006_v17 = vmul.f32 %v7026_v40, %v954_v21 }
 0x141   :  { %v1024_v19 = vadd.f32 %v1007_v9, %v881_v50 }
 0x142   :  { %v1023_v32 = vadd.f32 %v1006_v17, %v880_v3  ;;  %v843_v36 = vpop.permute.xlu1 %842 }
 0x143   :  { %v838_v38 = vpop.permute.xlu0 %837  ;;  %v1059_v5 = vadd.f32 %v7036_v48, %v1024_v19  ;;  %v883_v21 = vmul.f32 %v7023_v13, %v843_v36 }
 0x144   :  { %v1058_v52 = vadd.f32 %v7036_v48, %v1023_v32  ;;  %5199 = vmatmul.mubr.msk.bf16.gmra.mxu0 %vm1031_vm0, %v1121_v7  ;;  %v1098_v54 = vld [vmem:[#allocation2 + $0x48] sm:$0xff]  ;;  %v882_v42 = vmul.f32 %v7023_v13, %v838_v38 }
 0x145   :  { %1280 = vmatprep.mubr.bf16.mxu0 %v8483_v46  ;;  %1074 = vst.msk [vmem:[#allocation2 + $0x58] sm:$0xff] %vm1031_vm0, %v1059_v5  ;;  %v1097_v44 = vld [vmem:[#allocation2 + $0x40] sm:$0xff] }
 0x146   :  { %1073 = vst.msk [vmem:[#allocation2 + $0x50] sm:$0xff] %vm1031_vm0, %v1058_v52  ;;  %v969_v34 = vpop.permute.xlu1 %968  ;;  %v1122_v17 = vpack.c.bf16 %v1098_v54, %v1097_v44 }
 0x147   :  { %v964_v1 = vpop.permute.xlu0 %963  ;;  %v1009_v23 = vmul.f32 %v7026_v40, %v969_v34 }
 0x148   :  { %v1008_v50 = vmul.f32 %v7026_v40, %v964_v1 }
 0x149   :  { %v1026_v3 = vadd.f32 %v1009_v23, %v883_v21 }
 0x14a   :  { %v1025_v9 = vadd.f32 %v1008_v50, %v882_v42  ;;  %v853_v19 = vpop.permute.xlu1 %852 }
 0x14b   :  { %v848_v32 = vpop.permute.xlu0 %847  ;;  %v1061_v7 = vadd.f32 %v7036_v48, %v1026_v3  ;;  %v885_v1 = vmul.f32 %v7023_v13, %v853_v19 }
 0x14c   :  { %v1060_v5 = vadd.f32 %v7036_v48, %v1025_v9  ;;  %5200 = vmatmul.mubr.msk.bf16.gmra.mxu0 %vm1031_vm0, %v1122_v17  ;;  %v1100_v34 = vld [vmem:[#allocation2 + $0x58] sm:$0xff]  ;;  %v884_v44 = vmul.f32 %v7023_v13, %v848_v32 }
 0x14d   :  { %1290 = vmatprep.mubr.bf16.mxu0 %v8483_v46  ;;  %1076 = vst.msk [vmem:[#allocation2 + $0x68] sm:$0xff] %vm1031_vm0, %v1061_v7  ;;  %v1099_v52 = vld [vmem:[#allocation2 + $0x50] sm:$0xff] }
 0x14e   :  { %1075 = vst.msk [vmem:[#allocation2 + $0x60] sm:$0xff] %vm1031_vm0, %v1060_v5  ;;  %v979_v36 = vpop.permute.xlu1 %978  ;;  %v1123_v50 = vpack.c.bf16 %v1100_v34, %v1099_v52 }
 0x14f   :  { %v974_v38 = vpop.permute.xlu0 %973  ;;  %v1011_v54 = vmul.f32 %v7026_v40, %v979_v36 }
 0x150   :  { %v1010_v21 = vmul.f32 %v7026_v40, %v974_v38 }
 0x151   :  { %v1028_v42 = vadd.f32 %v1011_v54, %v885_v1 }
 0x152   :  { %v1027_v23 = vadd.f32 %v1010_v21, %v884_v44  ;;  %v863_v3 = vpop.permute.xlu1 %862  ;;  %v5185_v44 = vld [vmem:[%s5955_s8] ss:$0 sm:$0xff] }
 0x153   :  { %v858_v9 = vpop.permute.xlu0 %857  ;;  %v1063_v17 = vadd.f32 %v7036_v48, %v1028_v42  ;;  %v887_v38 = vmul.f32 %v7023_v13, %v863_v3 }
 0x154   :  { %v1062_v7 = vadd.f32 %v7036_v48, %v1027_v23  ;;  %5201 = vmatmul.mubr.msk.bf16.gmra.mxu0 %vm1031_vm0, %v1123_v50  ;;  %v1102_v36 = vld [vmem:[#allocation2 + $0x68] sm:$0xff]  ;;  %v886_v52 = vmul.f32 %v7023_v13, %v858_v9 }
 0x155   :  { %1300 = vmatprep.mubr.bf16.mxu0 %v8483_v46  ;;  %1078 = vst.msk [vmem:[#allocation2 + $0x78] sm:$0xff] %vm1031_vm0, %v1063_v17  ;;  %v1101_v5 = vld [vmem:[#allocation2 + $0x60] sm:$0xff] }
 0x156   :  { %1077 = vst.msk [vmem:[#allocation2 + $0x70] sm:$0xff] %vm1031_vm0, %v1062_v7  ;;  %v989_v19 = vpop.permute.xlu1 %988  ;;  %v1124_v42 = vpack.c.bf16 %v1102_v36, %v1101_v5  ;;  %v5811_v7 = vld [vmem:[%s5970_s24 + $0x24] ss:$8 sps:$4 sm:$0xff]   ;;  %v5814_v5 = vld [vmem:[%s5970_s24 + $0x14] ss:$8 sps:$4 sm:$0xff]  }
 0x157   :  { %v984_v32 = vpop.permute.xlu0 %983  ;;  %v1013_v34 = vmul.f32 %v7026_v40, %v989_v19  ;;  %v5813_v19 = vld [vmem:[%s5970_s24 + $0x20] ss:$8 sps:$4 sm:$0xff]   ;;  %1612 = vmatprep.subr.bf16.mxu1 %v5811_v7 }
 0x158   :  { %v1012_v1 = vmul.f32 %v7026_v40, %v984_v32  ;;  %v1107_v32 = vld [vmem:[#allocation2 + $0x90] sm:$0xff]  ;;  %1613 = vmatpush1.bf16.msra.mxu1 %v5813_v19 }
 0x159   :  { %v1030_v54 = vadd.f32 %v1013_v34, %v887_v38  ;;  %v1127_v36 = vpack.c.bf16 %v1107_v32, %v1107_v32  ;;  %v5816_v38 = vld [vmem:[%s5970_s24 + $0x10] ss:$8 sps:$4 sm:$0xff]   ;;  %1614 = vmatprep.subr.bf16.mxu1 %v5814_v5  ;;  %v5819_v34 = vld [vmem:[%s5970_s24] ss:$8 sps:$4 sm:$0xff]  }
 0x15a   :  { %v1029_v21 = vadd.f32 %v1012_v1, %v886_v52  ;;  %v5817_v52 = vld [vmem:[%s5970_s24 + $0x4] ss:$8 sps:$4 sm:$0xff]  }
 0x15b   :  { %v1087_v23 = vadd.f32 %v5185_v44, %v1030_v54  ;;  %v1919_v1 = vld [vmem:[%s5925_s13] sm:$0xff]  ;;  %v5820_v54 = vld [vmem:[%s6010_s22 + $0x8] sm:$0x3f]  }
 0x15c   :  { %v1064_v50 = vadd.f32 %v7036_v48, %v1029_v21  ;;  %5202 = vmatmul.mubr.msk.bf16.gmra.mxu0 %vm1031_vm0, %v1124_v42  ;;  %v1104_v40 = vld [vmem:[#allocation2 + $0x78] sm:$0xff]  ;;  %1615 = vmatpush1.bf16.msra.mxu1 %v5816_v38  ;;  %v1924_v44 = vpack.c.bf16 %v1919_v1, %v1919_v1  ;;  %v2022_v21 = vand.u32 %v5820_v54, %v7046_v11  ;;  %v5821_v42 = vld [vmem:[%s6010_s22] sm:$0xff]  }
 0x15d   :  { %1310 = vmatprep.mubr.bf16.mxu0 %v8483_v46  ;;  %1088 = vst.msk [vmem:[#allocation2 + $0x88] sm:$0xff] %vm1031_vm0, %v1087_v23  ;;  %v1103_v13 = vld [vmem:[#allocation2 + $0x70] sm:$0xff]  ;;  %1616 = vmatprep.subr.bf16.mxu1 %v5817_v52 }
 0x15e   :  { %1079 = vst.msk [vmem:[#allocation2 + $0x80] sm:$0xff] %vm1031_vm0, %v1064_v50  ;;  %v1125_v3 = vpack.c.bf16 %v1104_v40, %v1103_v13 }
 0x160   :  { %1617 = vmatpush1.bf16.msra.mxu1 %v5819_v34 }
 0x161   :  { %5678 = vmatprep.subr.bf16.mxu1 %v8482_v15 }
 0x164   :  { %5203 = vmatmul.mubr.msk.bf16.gmra.mxu0 %vm1031_vm0, %v1125_v3  ;;  %v1106_v48 = vld [vmem:[#allocation2 + $0x88] sm:$0xff]  ;;  %v7145_v3 = vld [vmem:[%s5965_s19] ss:$0 sm:$0xff] }
 0x165   :  { %1320 = vmatprep.mubr.bf16.mxu0 %v8483_v46  ;;  %v1105_v9 = vld [vmem:[#allocation2 + $0x80] sm:$0xff] }
 0x166   :  { %v1126_v17 = vpack.c.bf16 %v1106_v48, %v1105_v9 }
 0x16c   :  { %5204 = vmatmul.mubr.msk.bf16.gmra.mxu0 %vm1031_vm0, %v1126_v17 }
 0x16d   :  { %1330 = vmatprep.mubr.bf16.mxu0 %v8483_v46 }
 0x174   :  { %5205 = vmatmul.mubr.msk.bf16.gmra.mxu0 %vm1031_vm0, %v1127_v36 }
 0x175   :  { %5666 = vmatprep.mubr.msk.bf16.mxu0 %vm5906_vm3, %v8482_v15 }
 0x17c   :  { %5667 = vmatmul.mubr.msk.bf16.vlgmr.msra.gmra.mxu0 %vm1943_vm4, %v1924_v44 }
 0x17d   :  { %5674 = vmatprep.mubr.msk.bf16.mxu0 %vm5906_vm3, %v8482_v15  ;;  %5671 = vmatpush3.bf16.msra.mxu0 %v2022_v21 }
 0x17e   :  { %5672 = vmatprep.subr.bf16.mxu0 %v8482_v15 }
 0x181   :  { %5673 = vmatpush3.bf16.msra.mxu0 %v5821_v42 }
 0x1ec   :  { %v1242_v23 = vpop.f32.mrf.mxu0 }
 0x1ee   :  { %v1244_v50 = vpop.f32.mrf.mxu0 }
 0x1f0   :  { %v1246_v13 = vpop.f32.mrf.mxu0 }
 0x1f2   :  { %v1248_v40 = vpop.f32.mrf.mxu0 }
 0x1f3   :  { %v1415_v9 = vadd.f32 %v1248_v40, %v1242_v23 }
 0x1f4   :  { %v1252_v48 = vpop.f32.mrf.mxu0 }
 0x1f5   :  { %v1440_v17 = vadd.f32 %v7145_v3, %v1415_v9 }
 0x1f6   :  { %v1254_v7 = vpop.f32.mrf.mxu0 }
 0x1f7   :  { %v1512_v19 = vpack.c.bf16 %v1440_v17, %v8482_v15  ;;  %v1416_v11 = vadd.f32 %v1254_v7, %v1246_v13 }
 0x1f8   :  { %v1256_v32 = vpop.f32.mrf.mxu0 }
 0x1f9   :  { %1635 = vmatmul.mubr.bf16.vlgmr.msra.gmra.mxu1 %v1512_v19  ;;  %v1441_v52 = vadd.f32 %v7145_v3, %v1416_v11 }
 0x1fa   :  { %v1258_v5 = vpop.f32.mrf.mxu0  ;;  %1644 = vmatprep.mubr.bf16.mxu1 %v8483_v46 }
 0x1fb   :  { %v1417_v36 = vadd.f32 %v1258_v5, %v1252_v48 }
 0x1fc   :  { %v1262_v38 = vpop.f32.mrf.mxu0 }
 0x1fd   :  { %v1442_v34 = vadd.f32 %v7145_v3, %v1417_v36 }
 0x1fe   :  { %v1264_v1 = vpop.f32.mrf.mxu0 }
 0x1ff   :  { %v1513_v44 = vpack.c.bf16 %v1442_v34, %v1441_v52  ;;  %v1418_v21 = vadd.f32 %v1264_v1, %v1256_v32 }
 0x200   :  { %v1266_v54 = vpop.f32.mrf.mxu0 }
 0x201   :  { %1645 = vmatmul.mubr.bf16.gmra.mxu1 %v1513_v44  ;;  %v1443_v13 = vadd.f32 %v7145_v3, %v1418_v21 }
 0x202   :  { %v1268_v42 = vpop.f32.mrf.mxu0  ;;  %1654 = vmatprep.mubr.bf16.mxu1 %v8483_v46 }
 0x203   :  { %v1419_v23 = vadd.f32 %v1268_v42, %v1262_v38 }
 0x204   :  { %v1272_v50 = vpop.f32.mrf.mxu0 }
 0x205   :  { %v1444_v40 = vadd.f32 %v7145_v3, %v1419_v23 }
 0x206   :  { %v1274_v9 = vpop.f32.mrf.mxu0 }
 0x207   :  { %v1514_v48 = vpack.c.bf16 %v1444_v40, %v1443_v13  ;;  %v1420_v7 = vadd.f32 %v1274_v9, %v1266_v54 }
 0x208   :  { %v1276_v17 = vpop.f32.mrf.mxu0 }
 0x209   :  { %1655 = vmatmul.mubr.bf16.gmra.mxu1 %v1514_v48  ;;  %v1445_v5 = vadd.f32 %v7145_v3, %v1420_v7 }
 0x20a   :  { %v1278_v19 = vpop.f32.mrf.mxu0  ;;  %1664 = vmatprep.mubr.bf16.mxu1 %v8483_v46 }
 0x20b   :  { %v1421_v11 = vadd.f32 %v1278_v19, %v1272_v50 }
 0x20c   :  { %v1282_v32 = vpop.f32.mrf.mxu0 }
 0x20d   :  { %v1446_v36 = vadd.f32 %v7145_v3, %v1421_v11 }
 0x20e   :  { %v1284_v38 = vpop.f32.mrf.mxu0 }
 0x20f   :  { %v1515_v52 = vpack.c.bf16 %v1446_v36, %v1445_v5  ;;  %v1422_v1 = vadd.f32 %v1284_v38, %v1276_v17 }
 0x210   :  { %v1286_v34 = vpop.f32.mrf.mxu0 }
 0x211   :  { %1665 = vmatmul.mubr.bf16.gmra.mxu1 %v1515_v52  ;;  %v1447_v42 = vadd.f32 %v7145_v3, %v1422_v1 }
 0x212   :  { %v1288_v44 = vpop.f32.mrf.mxu0  ;;  %1674 = vmatprep.mubr.bf16.mxu1 %v8483_v46 }
 0x213   :  { %v1423_v21 = vadd.f32 %v1288_v44, %v1282_v32 }
 0x214   :  { %v1292_v54 = vpop.f32.mrf.mxu0 }
 0x215   :  { %v1448_v23 = vadd.f32 %v7145_v3, %v1423_v21 }
 0x216   :  { %v1294_v50 = vpop.f32.mrf.mxu0 }
 0x217   :  { %v1516_v13 = vpack.c.bf16 %v1448_v23, %v1447_v42  ;;  %v1424_v9 = vadd.f32 %v1294_v50, %v1286_v34 }
 0x218   :  { %v1296_v40 = vpop.f32.mrf.mxu0 }
 0x219   :  { %1675 = vmatmul.mubr.bf16.gmra.mxu1 %v1516_v13  ;;  %v1449_v19 = vadd.f32 %v7145_v3, %v1424_v9 }
 0x21a   :  { %v1298_v48 = vpop.f32.mrf.mxu0  ;;  %1684 = vmatprep.mubr.bf16.mxu1 %v8483_v46 }
 0x21b   :  { %v1425_v7 = vadd.f32 %v1298_v48, %v1292_v54 }
 0x21c   :  { %v1302_v17 = vpop.f32.mrf.mxu0 }
 0x21d   :  { %v1450_v11 = vadd.f32 %v7145_v3, %v1425_v7 }
 0x21e   :  { %v1304_v32 = vpop.f32.mrf.mxu0 }
 0x21f   :  { %v1517_v5 = vpack.c.bf16 %v1450_v11, %v1449_v19  ;;  %v1426_v38 = vadd.f32 %v1304_v32, %v1296_v40 }
 0x220   :  { %v1306_v36 = vpop.f32.mrf.mxu0 }
 0x221   :  { %1685 = vmatmul.mubr.bf16.gmra.mxu1 %v1517_v5  ;;  %v1451_v44 = vadd.f32 %v7145_v3, %v1426_v38 }
 0x222   :  { %v1308_v52 = vpop.f32.mrf.mxu0  ;;  %1694 = vmatprep.mubr.bf16.mxu1 %v8483_v46 }
 0x223   :  { %v1427_v1 = vadd.f32 %v1308_v52, %v1302_v17 }
 0x224   :  { %v1312_v34 = vpop.f32.mrf.mxu0 }
 0x225   :  { %v1452_v21 = vadd.f32 %v7145_v3, %v1427_v1 }
 0x226   :  { %v1314_v54 = vpop.f32.mrf.mxu0 }
 0x227   :  { %v1518_v42 = vpack.c.bf16 %v1452_v21, %v1451_v44  ;;  %v1428_v50 = vadd.f32 %v1314_v54, %v1306_v36 }
 0x228   :  { %v1316_v23 = vpop.f32.mrf.mxu0 }
 0x229   :  { %1695 = vmatmul.mubr.bf16.gmra.mxu1 %v1518_v42  ;;  %v1453_v48 = vadd.f32 %v7145_v3, %v1428_v50  ;;  %v5822_v42 = vld [vmem:[%s6038_s16 + $0x8] ss:$0 sps:$4 sm:$0x33]  }
 0x22a   :  { %v1318_v13 = vpop.f32.mrf.mxu0  ;;  %1704 = vmatprep.mubr.bf16.mxu1 %v8483_v46 }
 0x22b   :  { %v1429_v9 = vadd.f32 %v1318_v13, %v1312_v34 }
 0x22c   :  { %v1322_v40 = vpop.f32.mrf.mxu0 }
 0x22d   :  { %v1454_v7 = vadd.f32 %v7145_v3, %v1429_v9  ;;  %v2091_v9 = vsel %vm2089_vm5, %v5822_v42, 0  ;;  %v7185_v42 = vld [vmem:[%s5975_s30] ss:$0 sm:$0xff] }
 0x22e   :  { %v1324_v17 = vpop.f32.mrf.mxu0  ;;  %5679 = vmatpush3.bf16.msra.mxu1 %v2091_v9 }
 0x22f   :  { %v1519_v19 = vpack.c.bf16 %v1454_v7, %v1453_v48  ;;  %v1430_v32 = vadd.f32 %v1324_v17, %v1316_v23  ;;  %v5232_v23 = vld [vmem:[%s6005_s15] ss:$0 sm:$0xff]  ;;  %5680 = vmatprep.subr.bf16.mxu1 %v8482_v15 }
 0x230   :  { %v1326_v11 = vpop.f32.mrf.mxu0 }
 0x231   :  { %1705 = vmatmul.mubr.bf16.gmra.mxu1 %v1519_v19  ;;  %v1455_v52 = vadd.f32 %v7145_v3, %v1430_v32 }
 0x232   :  { %v1328_v5 = vpop.f32.mrf.mxu0  ;;  %1714 = vmatprep.mubr.bf16.mxu1 %v8483_v46 }
 0x233   :  { %v1431_v36 = vadd.f32 %v1328_v5, %v1322_v40 }
 0x234   :  { %v1332_v38 = vpop.f32.mrf.mxu0 }
 0x235   :  { %v1456_v1 = vadd.f32 %v7145_v3, %v1431_v36 }
 0x236   :  { %v1334_v34 = vpop.f32.mrf.mxu0 }
 0x237   :  { %v1432_v44 = vadd.f32 %v1334_v34, %v1326_v11  ;;  %v1520_v21 = vpack.c.bf16 %v1456_v1, %v1455_v52 }
 0x238   :  { %v1336_v54 = vpop.f32.mrf.mxu0 }
 0x239   :  { %1715 = vmatmul.mubr.bf16.gmra.mxu1 %v1520_v21  ;;  %v1457_v13 = vadd.f32 %v7145_v3, %v1432_v44  ;;  %v5823_v3 = vld [vmem:[%s6038_s16] sm:$0xff]  }
 0x23a   :  { %v1337_v50 = vpop.f32.mrf.mxu0  ;;  %1724 = vmatprep.mubr.bf16.mxu1 %v8483_v46  ;;  %5681 = vmatpush3.bf16.msra.mxu1 %v5823_v3 }
 0x23b   :  { %v1521_v19 = vpack.c.bf16 %v8482_v15, %v1457_v13 }
 0x23c   :  { %v1988_v40 = vpop.f32.mrf.mxu0 }
 0x23d   :  { %v1989_v48 = vadd.f32 %v5232_v23, %v1988_v40 }
 0x23e   :  { %v5668_v7 = vpop.f32.mrf.mxu0 }
 0x23f   :  { %v1994_v17 = vmax.f32 %v1989_v48, 0.0 }
 0x240   :  { %v1991_v11 = vpop.f32.mrf.mxu0 }
 0x241   :  { %v1999_v32 = vpack.c.bf16 %v1994_v17, %v1994_v17  ;;  %1725 = vmatmul.mubr.bf16.gmra.mxu1 %v1521_v19 }
 0x242   :  { %v5669_v5 = vpop.f32.mrf.mxu0  ;;  %5682 = vmatprep.mubr.msk.bf16.mxu1 %vm5906_vm3, %v8482_v15 }
 0x243   :  { %5675 = vmatmul.mubr.msk.bf16.vlgmr.msra.gmra.mxu0 %vm1943_vm4, %v1999_v32 }
 0x2b9   :  { %v1636_v36 = vpop.f32.mrf.mxu1 }
 0x2bb   :  { %v1638_v38 = vpop.f32.mrf.mxu1 }
 0x2bd   :  { %v1640_v52 = vpop.f32.mrf.mxu1 }
 0x2bf   :  { %v1642_v1 = vpop.f32.mrf.mxu1 }
 0x2c0   :  { %v1777_v34 = vadd.f32 %v1642_v1, %v1636_v36 }
 0x2c1   :  { %v1646_v44 = vpop.f32.mrf.mxu1 }
 0x2c3   :  { %v1648_v21 = vpop.f32.mrf.mxu1 }
 0x2c4   :  { %v1780_v54 = vadd.f32 %v1648_v21, %v1640_v52 }
 0x2c5   :  { %v1650_v50 = vpop.f32.mrf.mxu1 }
 0x2c6   :  { %v1781_v23 = vmax.f32 %v1777_v34, %v1780_v54 }
 0x2c7   :  { %v1652_v13 = vpop.f32.mrf.mxu1 }
 0x2c8   :  { %v7188_v9 = vadd.f32 %v7185_v42, %v1781_v23  ;;  %v1793_v40 = vadd.f32 %v1652_v13, %v1646_v44 }
 0x2c9   :  { %v1656_v48 = vpop.f32.mrf.mxu1 }
 0x2ca   :  { %8484 = vst [vmem:[#allocation271_spill] sm:$0xff] %v7188_v9 }
 0x2cb   :  { %v1658_v7 = vpop.f32.mrf.mxu1 }
 0x2cc   :  { %v1796_v17 = vadd.f32 %v1658_v7, %v1650_v50 }
 0x2cd   :  { %v1660_v19 = vpop.f32.mrf.mxu1 }
 0x2ce   :  { %v1797_v11 = vmax.f32 %v1793_v40, %v1796_v17 }
 0x2cf   :  { %v1662_v32 = vpop.f32.mrf.mxu1 }
 0x2d0   :  { %v7191_v5 = vadd.f32 %v7185_v42, %v1797_v11  ;;  %v1809_v3 = vadd.f32 %v1662_v32, %v1656_v48 }
 0x2d1   :  { %v1666_v36 = vpop.f32.mrf.mxu1 }
 0x2d3   :  { %v1668_v38 = vpop.f32.mrf.mxu1 }
 0x2d4   :  { %v1812_v52 = vadd.f32 %v1668_v38, %v1660_v19 }
 0x2d5   :  { %v1670_v1 = vpop.f32.mrf.mxu1 }
 0x2d6   :  { %v1813_v34 = vmax.f32 %v1809_v3, %v1812_v52 }
 0x2d7   :  { %v1672_v21 = vpop.f32.mrf.mxu1 }
 0x2d8   :  { %v7194_v54 = vadd.f32 %v7185_v42, %v1813_v34  ;;  %v1825_v44 = vadd.f32 %v1672_v21, %v1666_v36 }
 0x2d9   :  { %v1676_v23 = vpop.f32.mrf.mxu1 }
 0x2da   :  { %8485 = vst [vmem:[#allocation272_spill] sm:$0xff] %v7194_v54 }
 0x2db   :  { %v1678_v13 = vpop.f32.mrf.mxu1 }
 0x2dc   :  { %v1828_v50 = vadd.f32 %v1678_v13, %v1670_v1 }
 0x2dd   :  { %v1680_v7 = vpop.f32.mrf.mxu1 }
 0x2de   :  { %v1829_v40 = vmax.f32 %v1825_v44, %v1828_v50 }
 0x2df   :  { %v1682_v17 = vpop.f32.mrf.mxu1 }
 0x2e0   :  { %v7197_v11 = vadd.f32 %v7185_v42, %v1829_v40  ;;  %v1841_v48 = vadd.f32 %v1682_v17, %v1676_v23 }
 0x2e1   :  { %v1686_v32 = vpop.f32.mrf.mxu1 }
 0x2e3   :  { %v1688_v15 = vpop.f32.mrf.mxu1 }
 0x2e4   :  { %v1844_v19 = vadd.f32 %v1688_v15, %v1680_v7 }
 0x2e5   :  { %v1690_v38 = vpop.f32.mrf.mxu1 }
 0x2e6   :  { %v1845_v3 = vmax.f32 %v1841_v48, %v1844_v19 }
 0x2e7   :  { %v1692_v52 = vpop.f32.mrf.mxu1 }
 0x2e8   :  { %v7200_v34 = vadd.f32 %v7185_v42, %v1845_v3  ;;  %v1857_v36 = vadd.f32 %v1692_v52, %v1686_v32 }
 0x2e9   :  { %v1696_v21 = vpop.f32.mrf.mxu1 }
 0x2ea   :  { %8486 = vst [vmem:[#allocation273_spill] sm:$0xff] %v7200_v34 }
 0x2eb   :  { %v1698_v46 = vpop.f32.mrf.mxu1 }
 0x2ec   :  { %v1860_v1 = vadd.f32 %v1698_v46, %v1690_v38 }
 0x2ed   :  { %v1700_v13 = vpop.f32.mrf.mxu1 }
 0x2ee   :  { %v1861_v44 = vmax.f32 %v1857_v36, %v1860_v1 }
 0x2ef   :  { %v1702_v50 = vpop.f32.mrf.mxu1 }
 0x2f0   :  { %v7203_v40 = vadd.f32 %v7185_v42, %v1861_v44  ;;  %v1873_v23 = vadd.f32 %v1702_v50, %v1696_v21 }
 0x2f1   :  { %v1706_v17 = vpop.f32.mrf.mxu1 }
 0x2f2   :  { %8487 = vst [vmem:[#allocation274_spill] sm:$0xff] %v7203_v40  ;;  %v5236_v40 = vld [vmem:[%s6024_s2] ss:$0 sm:$0xff] }
 0x2f3   :  { %v1708_v54 = vpop.f32.mrf.mxu1 }
 0x2f4   :  { %v1876_v15 = vadd.f32 %v1708_v54, %v1700_v13 }
 0x2f5   :  { %v1710_v7 = vpop.f32.mrf.mxu1 }
 0x2f6   :  { %v1877_v48 = vmax.f32 %v1873_v23, %v1876_v15 }
 0x2f7   :  { %v1712_v19 = vpop.f32.mrf.mxu1 }
 0x2f8   :  { %v7206_v3 = vadd.f32 %v7185_v42, %v1877_v48  ;;  %v1889_v32 = vadd.f32 %v1712_v19, %v1706_v17 }
 0x2f9   :  { %v1716_v52 = vpop.f32.mrf.mxu1 }
 0x2fa   :  { %8488 = vst [vmem:[#allocation275_spill] sm:$0xff] %v7206_v3 }
 0x2fb   :  { %v1718_v46 = vpop.f32.mrf.mxu1 }
 0x2fc   :  { %v1892_v38 = vadd.f32 %v1718_v46, %v1710_v7 }
 0x2fd   :  { %v1720_v36 = vpop.f32.mrf.mxu1 }
 0x2fe   :  { %v1893_v1 = vmax.f32 %v1889_v32, %v1892_v38 }
 0x2ff   :  { %v1722_v34 = vpop.f32.mrf.mxu1 }
 0x300   :  { %v7209_v44 = vadd.f32 %v7185_v42, %v1893_v1  ;;  %v1905_v21 = vadd.f32 %v1722_v34, %v1716_v52  ;;  %v5240_v34 = vld [vmem:[%s6052_s28] ss:$0 sm:$0xff] }
 0x301   :  { %v1726_v50 = vpop.f32.mrf.mxu1 }
 0x302   :  { %v5272_v50 = vcombine.low %v6142_v28, %v6153_v30 }
 0x303   :  { %v1728_v54 = vpop.f32.mrf.mxu1  ;;  %v2058_v13 = vpop.f32.mrf.mxu0 }
 0x304   :  { %v1908_v23 = vadd.f32 %v1728_v54, %v1720_v36  ;;  %v2059_v15 = vadd.f32 %v5236_v40, %v2058_v13  ;;  %v5336_v54 = vcombine.low %v6369_v61, %v6375_v63 }
 0x305   :  { %v1730_v48 = vpop.f32.mrf.mxu1  ;;  %v5676_v3 = vpop.f32.mrf.mxu0 }
 0x306   :  { %v1909_v17 = vmax.f32 %v1905_v21, %v1908_v23  ;;  %v2064_v19 = vmax.f32 %v2059_v15, 0.0 }
 0x307   :  { %v1732_v9 = vpop.f32.mrf.mxu1  ;;  %v2061_v7 = vpop.f32.mrf.mxu0 }
 0x308   :  { %v7213_v32 = vadd.f32 %v7185_v42, %v1909_v17  ;;  %v2068_v46 = vpack.c.bf16 %v2064_v19, %v2064_v19  ;;  %v5273_v9 = vcombine.high %v6142_v28, %v6153_v30  ;;  %v5337_v42 = vcombine.high %v6369_v61, %v6375_v63 }
 0x309   :  { %v5677_v38 = vpop.f32.mrf.mxu0 }
 0x30a   :  { %5683 = vmatmul.mubr.msk.bf16.vlgmr.msra.gmra.mxu1 %vm2085_vm6, %v2068_v46 }
 0x3ca   :  { %v2127_v52 = vpop.f32.mrf.mxu1 }
 0x3cb   :  { %v7217_v1 = vadd.f32 %v5240_v34, %v2127_v52 }
 0x3cc   :  { %v5684_v36 = vpop.f32.mrf.mxu1 }
 0x3cd   :  { %v2133_v40 = vmax.f32 %v7217_v1, 0.0 }
 0x3ce   :  { %v2130_v3 = vpop.f32.mrf.mxu1 }
 0x3d0   :  { %v5685_v21 = vpop.f32.mrf.mxu1 }
 0x3d1   :  { %5866 = dma.done.wait [#allocation8], 36864 }
 0x3d2   :  { %5867 = vsyncadd [#allocation8], 4294930432  ;;  %v5269_v13 = vcombine.high %v6125_v24, %v6131_v26  ;;  %v5333_v23 = vcombine.high %v6357_v57, %v6363_v59  ;;  %3906 = vmatprep.subr.bf16.mxu0 %v5273_v9  ;;  %3947 = vmatprep.subr.bf16.mxu1 %v5337_v42  ;;  %v5268_v15 = vcombine.low %v6125_v24, %v6131_v26  ;;  %v8492_v17 = vld [vmem:[#allocation103_spill] sm:$0xff]  ;;  %v8497_v3 = vld [vmem:[#allocation53_spill] sm:$0xff]  ;;  %s8744_s0 = sld [smem:[#allocation19_spill]]  ;;  %vm4583_vm7 = vcmask 949248  }
 0x3d3   :  { %3907 = vmatpush1.bf16.msra.mxu0 %v5272_v50  ;;  %3948 = vmatpush1.bf16.msra.mxu1 %v5336_v54  ;;  %v5332_v28 = vcombine.low %v6357_v57, %v6363_v59  ;;  %v5265_v30 = vcombine.high %v6103_v20, %v6114_v22  ;;  %v5329_v61 = vcombine.high %v6345_v53, %v6351_v55  ;;  %v8496_v38 = vld [vmem:[#allocation99_spill] sm:$0xff]  ;;  %v8499_v42 = vld [vmem:[#allocation97_spill] sm:$0xff]  ;;  %s8745_s5 = sld [smem:[#allocation25_spill]]  ;;  %vm4758_vm8 = vcmask 97280  }
 0x3d4   :  { %3908 = vmatprep.subr.bf16.mxu0 %v5269_v13  ;;  %3949 = vmatprep.subr.bf16.mxu1 %v5333_v23  ;;  %v5264_v63 = vcombine.low %v6103_v20, %v6114_v22  ;;  %v5328_v48 = vcombine.low %v6345_v53, %v6351_v55  ;;  %v5261_v24 = vcombine.high %v6086_v16, %v6097_v18  ;;  %v8498_v21 = vld [vmem:[#allocation51_spill] sm:$0xff]  ;;  %s8746_s9 = sld [smem:[#allocation12_spill]]  ;;  %vm4846_vm9 = vcmask 1043456  }
 0x3d5   :  { %v5325_v26 = vcombine.high %v6333_v49, %v6339_v51  ;;  %v5260_v57 = vcombine.low %v6086_v16, %v6097_v18  ;;  %v5324_v59 = vcombine.low %v6333_v49, %v6339_v51  ;;  %v5257_v20 = vcombine.high %v6069_v12, %v6075_v14  ;;  %v8500_v50 = vld [vmem:[#allocation95_spill] sm:$0xff]  ;;  %s8747_s13 = sld [smem:[#allocation30_spill]] }
 0x3d6   :  { %v5321_v22 = vcombine.high %v6321_v43, %v6327_v47  ;;  %v5256_v53 = vcombine.low %v6069_v12, %v6075_v14  ;;  %v5320_v55 = vcombine.low %v6321_v43, %v6327_v47  ;;  %v5253_v16 = vcombine.high %v6047_v8, %v6058_v10  ;;  %s8749_s21 = sld [smem:[#allocation36_spill]] }
 0x3d7   :  { %3909 = vmatpush1.bf16.msra.mxu0 %v5268_v15  ;;  %3950 = vmatpush1.bf16.msra.mxu1 %v5332_v28  ;;  %v5317_v18 = vcombine.high %v6309_v35, %v6315_v39  ;;  %v7266_v49 = vpack.c.bf16 %v7191_v5, %v7191_v5  ;;  %v7270_v51 = vpack.c.bf16 %v7197_v11, %v7197_v11  ;;  %v8501_v15 = vld [vmem:[#allocation49_spill] sm:$0xff]  ;;  %v8502_v28 = vld [vmem:[#allocation46_spill] sm:$0xff]  ;;  %vm4706_vm10 = vcmask 490496   ;;  %s8751_s25 = sld [smem:[#allocation28_spill]] }
 0x3d8   :  { %3910 = vmatprep.subr.bf16.mxu0 %v5265_v30  ;;  %3951 = vmatprep.subr.bf16.mxu1 %v5329_v61  ;;  %v5252_v12 = vcombine.low %v6047_v8, %v6058_v10  ;;  %v5316_v14 = vcombine.low %v6309_v35, %v6315_v39  ;;  %v5249_v43 = vcombine.high %v6030_v4, %v6041_v6  ;;  %v8503_v61 = vld [vmem:[#allocation93_spill] sm:$0xff]  ;;  %vm5015_vm11 = vcmask 1042432   ;;  %s8752_s29 = sld [smem:[#allocation40_spill]] }
 0x3d9   :  { %v5313_v47 = vcombine.high %v6297_v41, %v6303_v45  ;;  %3938 = vmatprep.mubr.bf16.mxu0 %v7266_v49  ;;  %3979 = vmatprep.mubr.bf16.mxu1 %v7270_v51  ;;  %v5248_v8 = vcombine.low %v6030_v4, %v6041_v6  ;;  %v5312_v10 = vcombine.low %v6297_v41, %v6303_v45  ;;  %vm4842_vm12 = vcmask 326656   ;;  %s8753_s3 = sld [smem:[#allocation11_spill]] }
 0x3da   :  { %v5245_v35 = vcombine.high %v6013_v0, %v6019_v2  ;;  %v5309_v39 = vcombine.high %v6285_v33, %v6291_v37  ;;  %v5244_v5 = vcombine.low %v6013_v0, %v6019_v2  ;;  %v5308_v11 = vcombine.low %v6285_v33, %v6291_v37  ;;  %s8754_s8 = sld [smem:[#allocation33_spill]] }
 0x3db   :  { %3911 = vmatpush1.bf16.msra.mxu0 %v5264_v63  ;;  %3952 = vmatpush1.bf16.msra.mxu1 %v5328_v48  ;;  %v5305_v4 = vcombine.high %v6273_v60, %v6279_v62  ;;  %v5369_v6 = vcombine.high %v6465_v29, %v6471_v31  ;;  %v5304_v41 = vcombine.low %v6273_v60, %v6279_v62  ;;  %v8489_v60 = vld [vmem:[#allocation61_spill] sm:$0xff]  ;;  %v8504_v63 = vld [vmem:[#allocation91_spill] sm:$0xff]  ;;  %vm4967_vm13 = vcmask 1040384   ;;  %s8755_s14 = sld [smem:[#allocation48_spill]] }
 0x3dc   :  { %3912 = vmatprep.subr.bf16.mxu0 %v5261_v24  ;;  %3953 = vmatprep.subr.bf16.mxu1 %v5325_v26  ;;  %v5368_v45 = vcombine.low %v6465_v29, %v6471_v31  ;;  %v5301_v0 = vcombine.high %v6261_v56, %v6267_v58  ;;  %v5365_v2 = vcombine.high %v6453_v25, %v6459_v27  ;;  %v8490_v29 = vld [vmem:[#allocation59_spill] sm:$0xff]  ;;  %v8491_v62 = vld [vmem:[#allocation105_spill] sm:$0xff]  ;;  %vm4963_vm14 = vcmask 15360   ;;  %s8756_s19 = sld [smem:[#allocation44_spill]] }
 0x3dd   :  { %v5300_v33 = vcombine.low %v6261_v56, %v6267_v58  ;;  %v5364_v37 = vcombine.low %v6453_v25, %v6459_v27  ;;  %v5297_v31 = vcombine.high %v8490_v29, %v8489_v60  ;;  %v5361_v19 = vcombine.high %v8492_v17, %v8491_v62  ;;  %v8493_v56 = vld [vmem:[#allocation57_spill] sm:$0xff]  ;;  %v8494_v25 = vld [vmem:[#allocation55_spill] sm:$0xff] }
 0x3de   :  { %v5296_v7 = vcombine.low %v8490_v29, %v8489_v60  ;;  %v5360_v46 = vcombine.low %v8492_v17, %v8491_v62  ;;  %v5293_v27 = vcombine.high %v8494_v25, %v8493_v56  ;;  %v8495_v58 = vld [vmem:[#allocation101_spill] sm:$0xff]  ;;  %v5292_v52 = vcombine.low %v8494_v25, %v8493_v56  ;;  %v8520_v62 = vld [vmem:[#allocation135_spill] sm:$0xff]  ;;  %v8523_v56 = vld [vmem:[#allocation274_spill] sm:$0xff] }
 0x3df   :  { %3913 = vmatpush1.bf16.msra.mxu0 %v5260_v57  ;;  %3954 = vmatpush1.bf16.msra.mxu1 %v5324_v59  ;;  %v5357_v34 = vcombine.high %v8496_v38, %v8495_v58  ;;  %v5356_v36 = vcombine.low %v8496_v38, %v8495_v58  ;;  %v5289_v9 = vcombine.high %v8498_v21, %v8497_v3  ;;  %v8505_v57 = vld [vmem:[#allocation43_spill] sm:$0xff]  ;;  %v8506_v59 = vld [vmem:[#allocation41_spill] sm:$0xff]  ;;  %vm5011_vm15 = vcmask 56320  }
 0x3e0   :  { %3914 = vmatprep.subr.bf16.mxu0 %v5257_v20  ;;  %3955 = vmatprep.subr.bf16.mxu1 %v5321_v22  ;;  %v5353_v54 = vcombine.high %v8500_v50, %v8499_v42  ;;  %v5288_v13 = vcombine.low %v8498_v21, %v8497_v3  ;;  %v5352_v23 = vcombine.low %v8500_v50, %v8499_v42  ;;  %v8507_v22 = vld [vmem:[#allocation89_spill] sm:$0xff]  ;;  %vm5079_vm0 = vcmask 48128  }
 0x3e1   :  { %v5285_v30 = vcombine.high %v8502_v28, %v8501_v15  ;;  %v5349_v48 = vcombine.high %v8504_v63, %v8503_v61  ;;  %v5284_v24 = vcombine.low %v8502_v28, %v8501_v15  ;;  %v5348_v26 = vcombine.low %v8504_v63, %v8503_v61  ;;  %v8526_v3 = vld [vmem:[#allocation197_spill] sm:$0xff]  ;;  %v8531_v15 = vld [vmem:[#allocation191_spill] sm:$0xff] }
 0x3e2   :  { %v5281_v20 = vcombine.high %v8506_v59, %v8505_v57  ;;  %v7380_v25 = vpack.c.bf16 %v8523_v56, %v8523_v56  ;;  %v8528_v50 = vld [vmem:[#allocation129_spill] sm:$0xff]  ;;  %v8551_v56 = vld [vmem:[#allocation235_spill] sm:$0xff] }
 0x3e3   :  { %3915 = vmatpush1.bf16.msra.mxu0 %v5256_v53  ;;  %3956 = vmatpush1.bf16.msra.mxu1 %v5320_v55  ;;  %v8508_v53 = vld [vmem:[#allocation87_spill] sm:$0xff]  ;;  %v8532_v63 = vld [vmem:[#allocation125_spill] sm:$0xff] }
 0x3e4   :  { %3916 = vmatprep.subr.bf16.mxu0 %v5253_v16  ;;  %3957 = vmatprep.subr.bf16.mxu1 %v5317_v18  ;;  %v5345_v55 = vcombine.high %v8508_v53, %v8507_v22  ;;  %v5280_v16 = vcombine.low %v8506_v59, %v8505_v57  ;;  %v5344_v18 = vcombine.low %v8508_v53, %v8507_v22  ;;  %v8535_v57 = vld [vmem:[#allocation187_spill] sm:$0xff]  ;;  %v8536_v53 = vld [vmem:[#allocation121_spill] sm:$0xff] }
 0x3e7   :  { %3917 = vmatpush1.bf16.msra.mxu0 %v5252_v12  ;;  %3958 = vmatpush1.bf16.msra.mxu1 %v5316_v14  ;;  %v8509_v12 = vld [vmem:[#allocation38_spill] sm:$0xff]  ;;  %v8510_v14 = vld [vmem:[#allocation35_spill] sm:$0xff] }
 0x3e8   :  { %3918 = vmatprep.subr.bf16.mxu0 %v5249_v43  ;;  %3959 = vmatprep.subr.bf16.mxu1 %v5313_v47  ;;  %v5277_v43 = vcombine.high %v8510_v14, %v8509_v12  ;;  %v8511_v47 = vld [vmem:[#allocation85_spill] sm:$0xff] }
 0x3eb   :  { %3919 = vmatpush1.bf16.msra.mxu0 %v5248_v8  ;;  %3960 = vmatpush1.bf16.msra.mxu1 %v5312_v10  ;;  %v8512_v8 = vld [vmem:[#allocation83_spill] sm:$0xff] }
 0x3ec   :  { %3920 = vmatprep.subr.bf16.mxu0 %v5245_v35  ;;  %3961 = vmatprep.subr.bf16.mxu1 %v5309_v39  ;;  %v5341_v10 = vcombine.high %v8512_v8, %v8511_v47  ;;  %v5276_v35 = vcombine.low %v8510_v14, %v8509_v12  ;;  %v5340_v39 = vcombine.low %v8512_v8, %v8511_v47  ;;  %v8539_v12 = vld [vmem:[#allocation183_spill] sm:$0xff]  ;;  %v8540_v8 = vld [vmem:[#allocation117_spill] sm:$0xff] }
 0x3ef   :  { %3921 = vmatpush1.bf16.msra.mxu0 %v5244_v5  ;;  %3962 = vmatpush1.bf16.msra.mxu1 %v5308_v11  ;;  %v8513_v5 = vld [vmem:[#allocation141_spill] sm:$0xff]  ;;  %v8514_v11 = vld [vmem:[#allocation139_spill] sm:$0xff] }
 0x3f0   :  { %3922 = vmatprep.subr.bf16.mxu0 %v5305_v4  ;;  %3963 = vmatprep.subr.bf16.mxu1 %v5369_v6  ;;  %v5401_v4 = vcombine.high %v8514_v11, %v8513_v5  ;;  %v8515_v6 = vld [vmem:[#allocation205_spill] sm:$0xff]  ;;  %v5400_v60 = vcombine.low %v8514_v11, %v8513_v5  ;;  %v8543_v5 = vld [vmem:[#allocation179_spill] sm:$0xff] }
 0x3f3   :  { %3923 = vmatpush2.bf16.msra.mxu0 %v5304_v41  ;;  %3964 = vmatpush2.bf16.msra.mxu1 %v5368_v45  ;;  %v8516_v41 = vld [vmem:[#allocation203_spill] sm:$0xff] }
 0x3f4   :  { %3924 = vmatprep.subr.bf16.mxu0 %v5301_v0  ;;  %3965 = vmatprep.subr.bf16.mxu1 %v5365_v2  ;;  %v5465_v45 = vcombine.high %v8516_v41, %v8515_v6  ;;  %v8517_v0 = vld [vmem:[#allocation271_spill] sm:$0xff]  ;;  %v5464_v29 = vcombine.low %v8516_v41, %v8515_v6  ;;  %v8544_v41 = vld [vmem:[#allocation113_spill] sm:$0xff] }
 0x3f5   :  { %v7364_v2 = vpack.c.bf16 %v8517_v0, %v8517_v0 }
 0x3f7   :  { %3925 = vmatpush2.bf16.msra.mxu0 %v5300_v33  ;;  %3966 = vmatpush2.bf16.msra.mxu1 %v5364_v37  ;;  %v8518_v33 = vld [vmem:[#allocation272_spill] sm:$0xff] }
 0x3f8   :  { %3926 = vmatprep.subr.bf16.mxu0 %v5297_v31  ;;  %3967 = vmatprep.subr.bf16.mxu1 %v5361_v19  ;;  %v7368_v37 = vpack.c.bf16 %v8518_v33, %v8518_v33  ;;  %v8519_v31 = vld [vmem:[#allocation137_spill] sm:$0xff] }
 0x3f9   :  { %v5397_v17 = vcombine.high %v8520_v62, %v8519_v31  ;;  %v8521_v19 = vld [vmem:[#allocation201_spill] sm:$0xff]  ;;  %v5396_v58 = vcombine.low %v8520_v62, %v8519_v31 }
 0x3fa   :  { %v8546_v33 = vld [vmem:[#allocation177_spill] sm:$0xff] }
 0x3fb   :  { %3927 = vmatpush2.bf16.msra.mxu0 %v5296_v7  ;;  %3968 = vmatpush2.bf16.msra.mxu1 %v5360_v46  ;;  %v8522_v7 = vld [vmem:[#allocation199_spill] sm:$0xff] }
 0x3fc   :  { %3928 = vmatprep.subr.bf16.mxu0 %v5293_v27  ;;  %3969 = vmatprep.subr.bf16.mxu1 %v5357_v34  ;;  %v5461_v46 = vcombine.high %v8522_v7, %v8521_v19  ;;  %v7384_v27 = vpack.c.bf16 %v7209_v44, %v7209_v44  ;;  %v5460_v38 = vcombine.low %v8522_v7, %v8521_v19  ;;  %v8524_v34 = vld [vmem:[#allocation133_spill] sm:$0xff]  ;;  %v8527_v44 = vld [vmem:[#allocation195_spill] sm:$0xff] }
 0x3fd   :  { %v5457_v21 = vcombine.high %v8527_v44, %v8526_v3  ;;  %v5456_v42 = vcombine.low %v8527_v44, %v8526_v3  ;;  %v8549_v19 = vld [vmem:[#allocation171_spill] sm:$0xff]  ;;  %v8554_v44 = vld [vmem:[#allocation233_spill] sm:$0xff] }
 0x3ff   :  { %3929 = vmatpush2.bf16.msra.mxu0 %v5292_v52  ;;  %3970 = vmatpush2.bf16.msra.mxu1 %v5356_v36  ;;  %v8525_v52 = vld [vmem:[#allocation131_spill] sm:$0xff] }
 0x400   :  { %3930 = vmatprep.subr.bf16.mxu0 %v5289_v9  ;;  %3971 = vmatprep.subr.bf16.mxu1 %v5353_v54  ;;  %v5393_v36 = vcombine.high %v8525_v52, %v8524_v34  ;;  %v5392_v9 = vcombine.low %v8525_v52, %v8524_v34  ;;  %v8529_v54 = vld [vmem:[#allocation127_spill] sm:$0xff]  ;;  %v8552_v52 = vld [vmem:[#allocation169_spill] sm:$0xff] }
 0x403   :  { %3931 = vmatpush2.bf16.msra.mxu0 %v5288_v13  ;;  %3972 = vmatpush2.bf16.msra.mxu1 %v5352_v23  ;;  %v5389_v13 = vcombine.high %v8529_v54, %v8528_v50  ;;  %v8530_v23 = vld [vmem:[#allocation193_spill] sm:$0xff] }
 0x404   :  { %3932 = vmatprep.subr.bf16.mxu0 %v5285_v30  ;;  %3973 = vmatprep.subr.bf16.mxu1 %v5349_v48  ;;  %v5453_v28 = vcombine.high %v8531_v15, %v8530_v23  ;;  %v5388_v30 = vcombine.low %v8529_v54, %v8528_v50  ;;  %v5452_v61 = vcombine.low %v8531_v15, %v8530_v23  ;;  %v8533_v48 = vld [vmem:[#allocation123_spill] sm:$0xff]  ;;  %v8556_v54 = vld [vmem:[#allocation165_spill] sm:$0xff] }
 0x405   :  { %v8558_v15 = vld [vmem:[#allocation229_spill] sm:$0xff] }
 0x407   :  { %3933 = vmatpush2.bf16.msra.mxu0 %v5284_v24  ;;  %3974 = vmatpush2.bf16.msra.mxu1 %v5348_v26  ;;  %v5385_v24 = vcombine.high %v8533_v48, %v8532_v63  ;;  %v8534_v26 = vld [vmem:[#allocation189_spill] sm:$0xff] }
 0x408   :  { %3934 = vmatprep.subr.bf16.mxu0 %v5281_v20  ;;  %3975 = vmatprep.subr.bf16.mxu1 %v5345_v55  ;;  %v5449_v59 = vcombine.high %v8535_v57, %v8534_v26  ;;  %v5384_v20 = vcombine.low %v8533_v48, %v8532_v63  ;;  %v5448_v22 = vcombine.low %v8535_v57, %v8534_v26  ;;  %v8537_v55 = vld [vmem:[#allocation119_spill] sm:$0xff]  ;;  %v8560_v48 = vld [vmem:[#allocation161_spill] sm:$0xff] }
 0x409   :  { %v8562_v57 = vld [vmem:[#allocation225_spill] sm:$0xff] }
 0x40b   :  { %3935 = vmatpush2.bf16.msra.mxu0 %v5280_v16  ;;  %3976 = vmatpush2.bf16.msra.mxu1 %v5344_v18  ;;  %v5381_v16 = vcombine.high %v8537_v55, %v8536_v53  ;;  %v8538_v18 = vld [vmem:[#allocation185_spill] sm:$0xff] }
 0x40c   :  { %3936 = vmatprep.subr.bf16.mxu0 %v5277_v43  ;;  %3977 = vmatprep.subr.bf16.mxu1 %v5341_v10  ;;  %v5445_v14 = vcombine.high %v8539_v12, %v8538_v18  ;;  %v5380_v43 = vcombine.low %v8537_v55, %v8536_v53  ;;  %v5444_v47 = vcombine.low %v8539_v12, %v8538_v18  ;;  %v8541_v10 = vld [vmem:[#allocation115_spill] sm:$0xff]  ;;  %v8564_v55 = vld [vmem:[#allocation157_spill] sm:$0xff] }
 0x40d   :  { %v8566_v12 = vld [vmem:[#allocation221_spill] sm:$0xff] }
 0x40f   :  { %3937 = vmatpush2.bf16.msra.mxu0 %v5276_v35  ;;  %3978 = vmatpush2.bf16.msra.mxu1 %v5340_v39  ;;  %v5377_v35 = vcombine.high %v8541_v10, %v8540_v8  ;;  %v8542_v39 = vld [vmem:[#allocation181_spill] sm:$0xff] }
 0x410   :  { %3988 = vmatprep.subr.bf16.mxu0 %v5401_v4  ;;  %4029 = vmatprep.subr.bf16.mxu1 %v5465_v45  ;;  %v5441_v11 = vcombine.high %v8543_v5, %v8542_v39  ;;  %v5376_v4 = vcombine.low %v8541_v10, %v8540_v8  ;;  %v5440_v6 = vcombine.low %v8543_v5, %v8542_v39  ;;  %v8545_v45 = vld [vmem:[#allocation111_spill] sm:$0xff]  ;;  %v8568_v10 = vld [vmem:[#allocation153_spill] sm:$0xff] }
 0x411   :  { %v5373_v0 = vcombine.high %v8545_v45, %v8544_v41  ;;  %v5372_v31 = vcombine.low %v8545_v45, %v8544_v41  ;;  %v8570_v5 = vld [vmem:[#allocation217_spill] sm:$0xff] }
 0x412   :  { %3939 = vmatmul.mubr.bf16.vlgmr.msra.gmra.mxu0 %v7364_v2  ;;  %3980 = vmatmul.mubr.bf16.vlgmr.msra.gmra.mxu1 %v7368_v37  ;;  %v8572_v45 = vld [vmem:[#allocation149_spill] sm:$0xff] }
 0x413   :  { %3989 = vmatpush1.bf16.msra.mxu0 %v5400_v60  ;;  %4030 = vmatpush1.bf16.msra.mxu1 %v5464_v29  ;;  %v8547_v60 = vld [vmem:[#allocation175_spill] sm:$0xff] }
 0x414   :  { %3990 = vmatprep.subr.bf16.mxu0 %v5397_v17  ;;  %4031 = vmatprep.subr.bf16.mxu1 %v5461_v46  ;;  %v5437_v29 = vcombine.high %v8547_v60, %v8546_v33  ;;  %v5436_v62 = vcombine.low %v8547_v60, %v8546_v33  ;;  %v8548_v17 = vld [vmem:[#allocation173_spill] sm:$0xff] }
 0x415   :  { %4020 = vmatprep.mubr.bf16.mxu0 %v7380_v25  ;;  %4061 = vmatprep.mubr.bf16.mxu1 %v7384_v27  ;;  %v5433_v7 = vcombine.high %v8549_v19, %v8548_v17  ;;  %v8550_v46 = vld [vmem:[#allocation237_spill] sm:$0xff] }
 0x416   :  { %v5496_v34 = vcombine.low %v8551_v56, %v8550_v46  ;;  %v8574_v60 = vld [vmem:[#allocation213_spill] sm:$0xff] }
 0x417   :  { %3991 = vmatpush1.bf16.msra.mxu0 %v5396_v58  ;;  %4032 = vmatpush1.bf16.msra.mxu1 %v5460_v38  ;;  %v5497_v58 = vcombine.high %v8551_v56, %v8550_v46  ;;  %v5432_v38 = vcombine.low %v8549_v19, %v8548_v17  ;;  %v8576_v19 = vld [vmem:[#allocation145_spill] sm:$0xff] }
 0x418   :  { %3992 = vmatprep.subr.bf16.mxu0 %v5393_v36  ;;  %4033 = vmatprep.subr.bf16.mxu1 %v5457_v21  ;;  %v8553_v36 = vld [vmem:[#allocation167_spill] sm:$0xff]  ;;  %v8578_v56 = vld [vmem:[#allocation209_spill] sm:$0xff] }
 0x419   :  { %v5429_v3 = vcombine.high %v8553_v36, %v8552_v52  ;;  %v8555_v21 = vld [vmem:[#allocation231_spill] sm:$0xff] }
 0x41a   :  { %v5492_v50 = vcombine.low %v8555_v21, %v8554_v44 }
 0x41b   :  { %3993 = vmatpush1.bf16.msra.mxu0 %v5392_v9  ;;  %4034 = vmatpush1.bf16.msra.mxu1 %v5456_v42  ;;  %v5493_v9 = vcombine.high %v8555_v21, %v8554_v44  ;;  %v5428_v42 = vcombine.low %v8553_v36, %v8552_v52  ;;  %v8580_v36 = vld [vmem:[#allocation269_spill] sm:$0xff]  ;;  %v8582_v21 = vld [vmem:[#allocation34_spill] sm:$0xff] }
 0x41c   :  { %3994 = vmatprep.subr.bf16.mxu0 %v5389_v13  ;;  %4035 = vmatprep.subr.bf16.mxu1 %v5453_v28  ;;  %v8557_v13 = vld [vmem:[#allocation163_spill] sm:$0xff] }
 0x41d   :  { %v5425_v23 = vcombine.high %v8557_v13, %v8556_v54  ;;  %v8559_v28 = vld [vmem:[#allocation227_spill] sm:$0xff] }
 0x41e   :  { %v5488_v63 = vcombine.low %v8559_v28, %v8558_v15 }
 0x41f   :  { %3995 = vmatpush1.bf16.msra.mxu0 %v5388_v30  ;;  %4036 = vmatpush1.bf16.msra.mxu1 %v5452_v61  ;;  %v5489_v30 = vcombine.high %v8559_v28, %v8558_v15  ;;  %v5424_v61 = vcombine.low %v8557_v13, %v8556_v54  ;;  %v8585_v13 = vld [vmem:[#allocation275_spill] sm:$0xff] }
 0x420   :  { %3996 = vmatprep.subr.bf16.mxu0 %v5385_v24  ;;  %4037 = vmatprep.subr.bf16.mxu1 %v5449_v59  ;;  %v8561_v24 = vld [vmem:[#allocation159_spill] sm:$0xff] }
 0x421   :  { %v5421_v26 = vcombine.high %v8561_v24, %v8560_v48  ;;  %v8563_v59 = vld [vmem:[#allocation223_spill] sm:$0xff] }
 0x422   :  { %v5484_v53 = vcombine.low %v8563_v59, %v8562_v57 }
 0x423   :  { %3997 = vmatpush1.bf16.msra.mxu0 %v5384_v20  ;;  %4038 = vmatpush1.bf16.msra.mxu1 %v5448_v22  ;;  %v5485_v20 = vcombine.high %v8563_v59, %v8562_v57  ;;  %v5420_v22 = vcombine.low %v8561_v24, %v8560_v48  ;;  %v8588_v48 = vld [vmem:[#allocation31_spill] sm:$0xff]  ;;  %v8589_v24 = vld [vmem:[#allocation29_spill] sm:$0xff] }
 0x424   :  { %3998 = vmatprep.subr.bf16.mxu0 %v5381_v16  ;;  %4039 = vmatprep.subr.bf16.mxu1 %v5445_v14  ;;  %v8565_v16 = vld [vmem:[#allocation155_spill] sm:$0xff]  ;;  %v5270_v59 = vcombine.low %v8589_v24, %v8588_v48 }
 0x425   :  { %v5417_v18 = vcombine.high %v8565_v16, %v8564_v55  ;;  %v8567_v14 = vld [vmem:[#allocation219_spill] sm:$0xff] }
 0x426   :  { %v5480_v8 = vcombine.low %v8567_v14, %v8566_v12 }
 0x427   :  { %3999 = vmatpush1.bf16.msra.mxu0 %v5380_v43  ;;  %4040 = vmatpush1.bf16.msra.mxu1 %v5444_v47  ;;  %v5481_v43 = vcombine.high %v8567_v14, %v8566_v12  ;;  %v5416_v47 = vcombine.low %v8565_v16, %v8564_v55  ;;  %v8592_v55 = vld [vmem:[#allocation27_spill] sm:$0xff]  ;;  %v8593_v16 = vld [vmem:[#allocation26_spill] sm:$0xff]  ;;  %v8594_v12 = vmov 0  }
 0x428   :  { %4000 = vmatprep.subr.bf16.mxu0 %v5377_v35  ;;  %4041 = vmatprep.subr.bf16.mxu1 %v5441_v11  ;;  %v8569_v35 = vld [vmem:[#allocation151_spill] sm:$0xff] }
 0x429   :  { %v5413_v39 = vcombine.high %v8569_v35, %v8568_v10  ;;  %v8571_v11 = vld [vmem:[#allocation215_spill] sm:$0xff] }
 0x42a   :  { %v5476_v41 = vcombine.low %v8571_v11, %v8570_v5 }
 0x42b   :  { %4001 = vmatpush1.bf16.msra.mxu0 %v5376_v4  ;;  %4042 = vmatpush1.bf16.msra.mxu1 %v5440_v6  ;;  %v5477_v4 = vcombine.high %v8571_v11, %v8570_v5  ;;  %v5412_v6 = vcombine.low %v8569_v35, %v8568_v10  ;;  %v8597_v35 = vld [vmem:[#allocation24_spill] sm:$0xff] }
 0x42c   :  { %4002 = vmatprep.subr.bf16.mxu0 %v5373_v0  ;;  %4043 = vmatprep.subr.bf16.mxu1 %v5437_v29  ;;  %v8573_v0 = vld [vmem:[#allocation147_spill] sm:$0xff] }
 0x42d   :  { %v5409_v33 = vcombine.high %v8573_v0, %v8572_v45  ;;  %v8575_v29 = vld [vmem:[#allocation211_spill] sm:$0xff] }
 0x42e   :  { %v5472_v17 = vcombine.low %v8575_v29, %v8574_v60 }
 0x42f   :  { %4003 = vmatpush1.bf16.msra.mxu0 %v5372_v31  ;;  %4044 = vmatpush1.bf16.msra.mxu1 %v5436_v62  ;;  %v5473_v31 = vcombine.high %v8575_v29, %v8574_v60  ;;  %v5408_v62 = vcombine.low %v8573_v0, %v8572_v45  ;;  %v8601_v45 = vld [vmem:[#allocation21_spill] sm:$0xff]  ;;  %v8602_v0 = vld [vmem:[#allocation20_spill] sm:$0xff] }
 0x430   :  { %4004 = vmatprep.subr.bf16.mxu0 %v5433_v7  ;;  %4045 = vmatprep.subr.bf16.mxu1 %v5497_v58  ;;  %v8577_v7 = vld [vmem:[#allocation143_spill] sm:$0xff]  ;;  %v5258_v29 = vcombine.low %v8602_v0, %v8601_v45 }
 0x431   :  { %v5405_v46 = vcombine.high %v8577_v7, %v8576_v19  ;;  %v8579_v58 = vld [vmem:[#allocation207_spill] sm:$0xff] }
 0x432   :  { %v5468_v52 = vcombine.low %v8579_v58, %v8578_v56 }
 0x433   :  { %4005 = vmatpush2.bf16.msra.mxu0 %v5432_v38  ;;  %4046 = vmatpush2.bf16.msra.mxu1 %v5496_v34  ;;  %v5469_v38 = vcombine.high %v8579_v58, %v8578_v56  ;;  %v5404_v34 = vcombine.low %v8577_v7, %v8576_v19  ;;  %v8605_v19 = vld [vmem:[#allocation18_spill] sm:$0xff]  ;;  %v8606_v7 = vld [vmem:[#allocation17_spill] sm:$0xff] }
 0x434   :  { %4006 = vmatprep.subr.bf16.mxu0 %v5429_v3  ;;  %4047 = vmatprep.subr.bf16.mxu1 %v5493_v9  ;;  %v8581_v3 = vld [vmem:[#allocation267_spill] sm:$0xff]  ;;  %v8583_v9 = vld [vmem:[#allocation32_spill] sm:$0xff]  ;;  %v5254_v58 = vcombine.low %v8606_v7, %v8605_v19 }
 0x435   :  { %v5529_v44 = vcombine.high %v8581_v3, %v8580_v36  ;;  %v5528_v15 = vcombine.low %v8581_v3, %v8580_v36  ;;  %v5274_v28 = vcombine.low %v8583_v9, %v8582_v21  ;;  %v8609_v36 = vld [vmem:[#allocation16_spill] sm:$0xff]  ;;  %v8610_v3 = vld [vmem:[#allocation15_spill] sm:$0xff] }
 0x437   :  { %4007 = vmatpush2.bf16.msra.mxu0 %v5428_v42  ;;  %4048 = vmatpush2.bf16.msra.mxu1 %v5492_v50  ;;  %v5275_v42 = vcombine.high %v8583_v9, %v8582_v21  ;;  %v8584_v50 = vld [vmem:[#allocation273_spill] sm:$0xff]  ;;  %v5250_v9 = vcombine.low %v8610_v3, %v8609_v36 }
 0x438   :  { %4008 = vmatprep.subr.bf16.mxu0 %v5425_v23  ;;  %4049 = vmatprep.subr.bf16.mxu1 %v5489_v30  ;;  %v7512_v54 = vpack.c.bf16 %v8584_v50, %v8584_v50  ;;  %v7516_v23 = vpack.c.bf16 %v8585_v13, %v8585_v13  ;;  %v8586_v30 = vld [vmem:[#allocation265_spill] sm:$0xff]  ;;  %v8612_v50 = vld [vmem:[#allocation239_spill] sm:$0xff] }
 0x43b   :  { %4009 = vmatpush2.bf16.msra.mxu0 %v5424_v61  ;;  %4050 = vmatpush2.bf16.msra.mxu1 %v5488_v63  ;;  %v8587_v61 = vld [vmem:[#allocation263_spill] sm:$0xff] }
 0x43c   :  { %4010 = vmatprep.subr.bf16.mxu0 %v5421_v26  ;;  %4051 = vmatprep.subr.bf16.mxu1 %v5485_v20  ;;  %v5525_v63 = vcombine.high %v8587_v61, %v8586_v30  ;;  %v5271_v26 = vcombine.high %v8589_v24, %v8588_v48  ;;  %v5524_v57 = vcombine.low %v8587_v61, %v8586_v30  ;;  %v8590_v20 = vld [vmem:[#allocation261_spill] sm:$0xff]  ;;  %v8615_v48 = vld [vmem:[#allocation66_spill] sm:$0xff] }
 0x43d   :  { %v8616_v24 = vld [vmem:[#allocation65_spill] sm:$0xff] }
 0x43f   :  { %4011 = vmatpush2.bf16.msra.mxu0 %v5420_v22  ;;  %4052 = vmatpush2.bf16.msra.mxu1 %v5484_v53  ;;  %v8591_v22 = vld [vmem:[#allocation259_spill] sm:$0xff] }
 0x440   :  { %4012 = vmatprep.subr.bf16.mxu0 %v5417_v18  ;;  %4053 = vmatprep.subr.bf16.mxu1 %v5481_v43  ;;  %v5521_v53 = vcombine.high %v8591_v22, %v8590_v20  ;;  %v5267_v18 = vcombine.high %v8593_v16, %v8592_v55  ;;  %v5520_v14 = vcombine.low %v8591_v22, %v8590_v20 }
 0x441   :  { %v5266_v43 = vcombine.low %v8593_v16, %v8592_v55  ;;  %v7588_v22 = vpack.c.bf16 %v7213_v32, %v7213_v32  ;;  %v8619_v16 = vld [vmem:[#allocation64_spill] sm:$0xff] }
 0x443   :  { %4013 = vmatpush2.bf16.msra.mxu0 %v5416_v47  ;;  %4054 = vmatpush2.bf16.msra.mxu1 %v5480_v8  ;;  %v8595_v47 = vld [vmem:[#allocation257_spill] sm:$0xff]  ;;  %v8596_v8 = vld [vmem:[#allocation255_spill] sm:$0xff] }
 0x444   :  { %4014 = vmatprep.subr.bf16.mxu0 %v5413_v39  ;;  %4055 = vmatprep.subr.bf16.mxu1 %v5477_v4  ;;  %v5517_v10 = vcombine.high %v8596_v8, %v8595_v47  ;;  %v8598_v39 = vld [vmem:[#allocation22_spill] sm:$0xff]  ;;  %v8599_v4 = vld [vmem:[#allocation253_spill] sm:$0xff] }
 0x445   :  { %v5263_v5 = vcombine.high %v8598_v39, %v8597_v35  ;;  %v5262_v11 = vcombine.low %v8598_v39, %v8597_v35  ;;  %v8623_v35 = vld [vmem:[#allocation62_spill] sm:$0xff]  ;;  %v8624_v39 = vld [vmem:[#allocation60_spill] sm:$0xff] }
 0x447   :  { %4015 = vmatpush2.bf16.msra.mxu0 %v5412_v6  ;;  %4056 = vmatpush2.bf16.msra.mxu1 %v5476_v41  ;;  %v8600_v6 = vld [vmem:[#allocation251_spill] sm:$0xff] }
 0x448   :  { %4016 = vmatprep.subr.bf16.mxu0 %v5409_v33  ;;  %4057 = vmatprep.subr.bf16.mxu1 %v5473_v31  ;;  %v5513_v41 = vcombine.high %v8600_v6, %v8599_v4  ;;  %v5259_v33 = vcombine.high %v8602_v0, %v8601_v45  ;;  %v5512_v60 = vcombine.low %v8600_v6, %v8599_v4  ;;  %v8603_v31 = vld [vmem:[#allocation249_spill] sm:$0xff]  ;;  %v8627_v45 = vld [vmem:[#allocation58_spill] sm:$0xff]  ;;  %v8628_v0 = vld [vmem:[#allocation56_spill] sm:$0xff] }
 0x449   :  { %v5298_v6 = vcombine.low %v8624_v39, %v8623_v35 }
 0x44b   :  { %4017 = vmatpush2.bf16.msra.mxu0 %v5408_v62  ;;  %4058 = vmatpush2.bf16.msra.mxu1 %v5472_v17  ;;  %v8604_v62 = vld [vmem:[#allocation247_spill] sm:$0xff] }
 0x44c   :  { %4018 = vmatprep.subr.bf16.mxu0 %v5405_v46  ;;  %4059 = vmatprep.subr.bf16.mxu1 %v5469_v38  ;;  %v5509_v17 = vcombine.high %v8604_v62, %v8603_v31  ;;  %v5255_v46 = vcombine.high %v8606_v7, %v8605_v19  ;;  %v5508_v56 = vcombine.low %v8604_v62, %v8603_v31  ;;  %v8607_v38 = vld [vmem:[#allocation245_spill] sm:$0xff]  ;;  %v8632_v19 = vld [vmem:[#allocation52_spill] sm:$0xff] }
 0x44f   :  { %4019 = vmatpush2.bf16.msra.mxu0 %v5404_v34  ;;  %4060 = vmatpush2.bf16.msra.mxu1 %v5468_v52  ;;  %v8608_v34 = vld [vmem:[#allocation243_spill] sm:$0xff] }
 0x450   :  { %4070 = vmatprep.subr.bf16.mxu0 %v5529_v44  ;;  %4111 = vmatprep.subr.bf16.mxu1 %v5275_v42  ;;  %v5505_v52 = vcombine.high %v8608_v34, %v8607_v38  ;;  %v5251_v44 = vcombine.high %v8610_v3, %v8609_v36  ;;  %v5504_v21 = vcombine.low %v8608_v34, %v8607_v38  ;;  %v8611_v42 = vld [vmem:[#allocation241_spill] sm:$0xff]  ;;  %v8636_v36 = vld [vmem:[#allocation47_spill] sm:$0xff] }
 0x451   :  { %v5501_v13 = vcombine.high %v8612_v50, %v8611_v42  ;;  %v5500_v61 = vcombine.low %v8612_v50, %v8611_v42 }
 0x452   :  { %4021 = vmatmul.mubr.bf16.vlgmr.msra.gmra.mxu0 %v7512_v54  ;;  %4062 = vmatmul.mubr.bf16.vlgmr.msra.gmra.mxu1 %v7516_v23 }
 0x453   :  { %4071 = vmatpush1.bf16.msra.mxu0 %v5528_v15  ;;  %4112 = vmatpush1.bf16.msra.mxu1 %v5274_v28  ;;  %v8613_v15 = vld [vmem:[#allocation14_spill] sm:$0xff]  ;;  %v8614_v28 = vld [vmem:[#allocation13_spill] sm:$0xff] }
 0x454   :  { %4072 = vmatprep.subr.bf16.mxu0 %v5525_v63  ;;  %4113 = vmatprep.subr.bf16.mxu1 %v5271_v26  ;;  %v5247_v30 = vcombine.high %v8614_v28, %v8613_v15  ;;  %v5246_v63 = vcombine.low %v8614_v28, %v8613_v15  ;;  %v5307_v26 = vcombine.high %v8616_v24, %v8615_v48  ;;  %v8640_v15 = vld [vmem:[#allocation42_spill] sm:$0xff] }
 0x455   :  { %4102 = vmatprep.mubr.bf16.mxu0 %v8594_v12  ;;  %4143 = vmatprep.mubr.bf16.mxu1 %v7266_v49  ;;  %v5516_v49 = vcombine.low %v8596_v8, %v8595_v47  ;;  %v8622_v47 = vld [vmem:[#allocation79_spill] sm:$0xff] }
 0x457   :  { %4073 = vmatpush1.bf16.msra.mxu0 %v5524_v57  ;;  %4114 = vmatpush1.bf16.msra.mxu1 %v5270_v59  ;;  %v8617_v57 = vld [vmem:[#allocation82_spill] sm:$0xff]  ;;  %v8618_v59 = vld [vmem:[#allocation81_spill] sm:$0xff] }
 0x458   :  { %4074 = vmatprep.subr.bf16.mxu0 %v5521_v53  ;;  %4115 = vmatprep.subr.bf16.mxu1 %v5267_v18  ;;  %v5339_v20 = vcombine.high %v8618_v59, %v8617_v57  ;;  %v5306_v53 = vcombine.low %v8616_v24, %v8615_v48  ;;  %v5338_v55 = vcombine.low %v8618_v59, %v8617_v57  ;;  %v8620_v18 = vld [vmem:[#allocation63_spill] sm:$0xff]  ;;  %v8644_v57 = vld [vmem:[#allocation37_spill] sm:$0xff] }
 0x459   :  { %v5302_v32 = vcombine.low %v8620_v18, %v8619_v16 }
 0x45b   :  { %4075 = vmatpush1.bf16.msra.mxu0 %v5520_v14  ;;  %4116 = vmatpush1.bf16.msra.mxu1 %v5266_v43  ;;  %v5303_v14 = vcombine.high %v8620_v18, %v8619_v16  ;;  %v8621_v43 = vld [vmem:[#allocation80_spill] sm:$0xff] }
 0x45c   :  { %4076 = vmatprep.subr.bf16.mxu0 %v5517_v10  ;;  %4117 = vmatprep.subr.bf16.mxu1 %v5263_v5  ;;  %v5335_v8 = vcombine.high %v8622_v47, %v8621_v43  ;;  %v5334_v10 = vcombine.low %v8622_v47, %v8621_v43  ;;  %v5299_v5 = vcombine.high %v8624_v39, %v8623_v35  ;;  %v8648_v43 = vld [vmem:[#allocation109_spill] sm:$0xff] }
 0x45f   :  { %4077 = vmatpush1.bf16.msra.mxu0 %v5516_v49  ;;  %4118 = vmatpush1.bf16.msra.mxu1 %v5262_v11  ;;  %v8625_v49 = vld [vmem:[#allocation78_spill] sm:$0xff]  ;;  %v8626_v11 = vld [vmem:[#allocation77_spill] sm:$0xff] }
 0x460   :  { %4078 = vmatprep.subr.bf16.mxu0 %v5513_v41  ;;  %4119 = vmatprep.subr.bf16.mxu1 %v5259_v33  ;;  %v5331_v4 = vcombine.high %v8626_v11, %v8625_v49  ;;  %v5330_v41 = vcombine.low %v8626_v11, %v8625_v49  ;;  %v5295_v33 = vcombine.high %v8628_v0, %v8627_v45  ;;  %v8652_v49 = vld [vmem:[#allocation107_spill] sm:$0xff] }
 0x463   :  { %4079 = vmatpush1.bf16.msra.mxu0 %v5512_v60  ;;  %4120 = vmatpush1.bf16.msra.mxu1 %v5258_v29  ;;  %v8629_v60 = vld [vmem:[#allocation76_spill] sm:$0xff]  ;;  %v8630_v29 = vld [vmem:[#allocation75_spill] sm:$0xff] }
 0x464   :  { %4080 = vmatprep.subr.bf16.mxu0 %v5509_v17  ;;  %4121 = vmatprep.subr.bf16.mxu1 %v5255_v46  ;;  %v5327_v31 = vcombine.high %v8630_v29, %v8629_v60  ;;  %v5326_v62 = vcombine.low %v8630_v29, %v8629_v60  ;;  %v8631_v17 = vld [vmem:[#allocation54_spill] sm:$0xff]  ;;  %v8656_v60 = vld [vmem:[#allocation104_spill] sm:$0xff] }
 0x465   :  { %v5291_v7 = vcombine.high %v8632_v19, %v8631_v17  ;;  %v8633_v46 = vld [vmem:[#allocation74_spill] sm:$0xff]  ;;  %v5290_v38 = vcombine.low %v8632_v19, %v8631_v17 }
 0x466   :  { %v8659_v19 = vld [vmem:[#allocation102_spill] sm:$0xff] }
 0x467   :  { %4081 = vmatpush1.bf16.msra.mxu0 %v5508_v56  ;;  %4122 = vmatpush1.bf16.msra.mxu1 %v5254_v58  ;;  %v8634_v56 = vld [vmem:[#allocation73_spill] sm:$0xff] }
 0x468   :  { %4082 = vmatprep.subr.bf16.mxu0 %v5505_v52  ;;  %4123 = vmatprep.subr.bf16.mxu1 %v5251_v44  ;;  %v5323_v58 = vcombine.high %v8634_v56, %v8633_v46  ;;  %v5322_v34 = vcombine.low %v8634_v56, %v8633_v46  ;;  %v8635_v52 = vld [vmem:[#allocation50_spill] sm:$0xff]  ;;  %v8637_v44 = vld [vmem:[#allocation72_spill] sm:$0xff] }
 0x469   :  { %v5287_v3 = vcombine.high %v8636_v36, %v8635_v52  ;;  %v5286_v42 = vcombine.low %v8636_v36, %v8635_v52  ;;  %v8661_v56 = vld [vmem:[#allocation130_spill] sm:$0xff]  ;;  %v8664_v36 = vld [vmem:[#allocation96_spill] sm:$0xff] }
 0x46a   :  { %v8663_v52 = vld [vmem:[#allocation98_spill] sm:$0xff] }
 0x46b   :  { %4083 = vmatpush1.bf16.msra.mxu0 %v5504_v21  ;;  %4124 = vmatpush1.bf16.msra.mxu1 %v5250_v9  ;;  %v8638_v21 = vld [vmem:[#allocation71_spill] sm:$0xff] }
 0x46c   :  { %4084 = vmatprep.subr.bf16.mxu0 %v5501_v13  ;;  %4125 = vmatprep.subr.bf16.mxu1 %v5247_v30  ;;  %v5319_v9 = vcombine.high %v8638_v21, %v8637_v44  ;;  %v5318_v50 = vcombine.low %v8638_v21, %v8637_v44  ;;  %v8639_v13 = vld [vmem:[#allocation45_spill] sm:$0xff]  ;;  %v8666_v21 = vld [vmem:[#allocation124_spill] sm:$0xff] }
 0x46d   :  { %v5283_v28 = vcombine.high %v8640_v15, %v8639_v13  ;;  %v8641_v30 = vld [vmem:[#allocation70_spill] sm:$0xff]  ;;  %v5282_v48 = vcombine.low %v8640_v15, %v8639_v13  ;;  %v8668_v15 = vld [vmem:[#allocation92_spill] sm:$0xff] }
 0x46e   :  { %v8665_v44 = vld [vmem:[#allocation126_spill] sm:$0xff] }
 0x46f   :  { %4085 = vmatpush1.bf16.msra.mxu0 %v5500_v61  ;;  %4126 = vmatpush1.bf16.msra.mxu1 %v5246_v63  ;;  %v8642_v61 = vld [vmem:[#allocation69_spill] sm:$0xff]  ;;  %v8667_v13 = vld [vmem:[#allocation94_spill] sm:$0xff] }
 0x470   :  { %4127 = vmatprep.subr.bf16.mxu1 %v5307_v26  ;;  %4152 = vmatprep.subr.bf16.mxu0 %v5339_v20  ;;  %v5315_v63 = vcombine.high %v8642_v61, %v8641_v30  ;;  %v5314_v24 = vcombine.low %v8642_v61, %v8641_v30  ;;  %v8643_v26 = vld [vmem:[#allocation39_spill] sm:$0xff]  ;;  %v8645_v20 = vld [vmem:[#allocation68_spill] sm:$0xff] }
 0x471   :  { %v5279_v59 = vcombine.high %v8644_v57, %v8643_v26  ;;  %v5278_v16 = vcombine.low %v8644_v57, %v8643_v26  ;;  %v8669_v30 = vld [vmem:[#allocation122_spill] sm:$0xff]  ;;  %v8670_v61 = vld [vmem:[#allocation120_spill] sm:$0xff] }
 0x472   :  { %4103 = vmatmul.mubr.bf16.vlgmr.msra.gmra.mxu0 %v7588_v22  ;;  %v8671_v26 = vld [vmem:[#allocation90_spill] sm:$0xff]  ;;  %v8672_v57 = vld [vmem:[#allocation88_spill] sm:$0xff] }
 0x473   :  { %4128 = vmatpush2.bf16.msra.mxu1 %v5306_v53  ;;  %4153 = vmatpush1.bf16.msra.mxu0 %v5338_v55  ;;  %v8646_v53 = vld [vmem:[#allocation67_spill] sm:$0xff] }
 0x474   :  { %4129 = vmatprep.subr.bf16.mxu1 %v5303_v14  ;;  %4154 = vmatprep.subr.bf16.mxu0 %v5335_v8  ;;  %v5311_v55 = vcombine.high %v8646_v53, %v8645_v20  ;;  %v5310_v18 = vcombine.low %v8646_v53, %v8645_v20  ;;  %v8647_v14 = vld [vmem:[#allocation110_spill] sm:$0xff]  ;;  %v8674_v53 = vld [vmem:[#allocation116_spill] sm:$0xff] }
 0x475   :  { %4184 = vmatprep.mubr.bf16.mxu0 %v7270_v51  ;;  %v5294_v51 = vcombine.low %v8628_v0, %v8627_v45  ;;  %v5371_v47 = vcombine.high %v8648_v43, %v8647_v14  ;;  %v8649_v8 = vld [vmem:[#allocation142_spill] sm:$0xff]  ;;  %v5370_v35 = vcombine.low %v8648_v43, %v8647_v14  ;;  %v8676_v43 = vld [vmem:[#allocation84_spill] sm:$0xff] }
 0x476   :  { %v8673_v20 = vld [vmem:[#allocation118_spill] sm:$0xff] }
 0x477   :  { %4130 = vmatpush2.bf16.msra.mxu1 %v5302_v32  ;;  %4155 = vmatpush1.bf16.msra.mxu0 %v5334_v10  ;;  %v8650_v32 = vld [vmem:[#allocation140_spill] sm:$0xff]  ;;  %v8675_v14 = vld [vmem:[#allocation86_spill] sm:$0xff] }
 0x478   :  { %4131 = vmatprep.subr.bf16.mxu1 %v5299_v5  ;;  %4156 = vmatprep.subr.bf16.mxu0 %v5331_v4  ;;  %v5403_v10 = vcombine.high %v8650_v32, %v8649_v8  ;;  %v5402_v39 = vcombine.low %v8650_v32, %v8649_v8  ;;  %v8651_v5 = vld [vmem:[#allocation108_spill] sm:$0xff]  ;;  %v8653_v4 = vld [vmem:[#allocation138_spill] sm:$0xff] }
 0x479   :  { %v5367_v11 = vcombine.high %v8652_v49, %v8651_v5  ;;  %v5366_v45 = vcombine.low %v8652_v49, %v8651_v5  ;;  %v8677_v8 = vld [vmem:[#allocation114_spill] sm:$0xff]  ;;  %v8678_v32 = vld [vmem:[#allocation112_spill] sm:$0xff] }
 0x47a   :  { %v8679_v5 = vld [vmem:[#allocation174_spill] sm:$0xff]  ;;  %v8680_v49 = vld [vmem:[#allocation172_spill] sm:$0xff] }
 0x47b   :  { %4132 = vmatpush2.bf16.msra.mxu1 %v5298_v6  ;;  %4157 = vmatpush1.bf16.msra.mxu0 %v5330_v41  ;;  %v8654_v6 = vld [vmem:[#allocation136_spill] sm:$0xff] }
 0x47c   :  { %4133 = vmatprep.subr.bf16.mxu1 %v5295_v33  ;;  %4158 = vmatprep.subr.bf16.mxu0 %v5327_v31  ;;  %v5399_v41 = vcombine.high %v8654_v6, %v8653_v4  ;;  %v5398_v0 = vcombine.low %v8654_v6, %v8653_v4  ;;  %v8655_v33 = vld [vmem:[#allocation106_spill] sm:$0xff]  ;;  %v8682_v6 = vld [vmem:[#allocation204_spill] sm:$0xff] }
 0x47d   :  { %v5363_v29 = vcombine.high %v8656_v60, %v8655_v33  ;;  %v8657_v31 = vld [vmem:[#allocation134_spill] sm:$0xff] }
 0x47e   :  { %v8681_v4 = vld [vmem:[#allocation206_spill] sm:$0xff] }
 0x47f   :  { %4134 = vmatpush2.bf16.msra.mxu1 %v5294_v51  ;;  %4159 = vmatpush1.bf16.msra.mxu0 %v5326_v62  ;;  %v8658_v51 = vld [vmem:[#allocation132_spill] sm:$0xff] }
 0x480   :  { %4135 = vmatprep.subr.bf16.mxu1 %v5291_v7  ;;  %4160 = vmatprep.subr.bf16.mxu0 %v5323_v58  ;;  %v5395_v62 = vcombine.high %v8658_v51, %v8657_v31  ;;  %v5394_v17 = vcombine.low %v8658_v51, %v8657_v31  ;;  %v8660_v7 = vld [vmem:[#allocation100_spill] sm:$0xff]  ;;  %v8685_v31 = vld [vmem:[#allocation202_spill] sm:$0xff] }
 0x481   :  { %v5359_v46 = vcombine.high %v8660_v7, %v8659_v19  ;;  %v8662_v58 = vld [vmem:[#allocation128_spill] sm:$0xff] }
 0x482   :  { %v8686_v51 = vld [vmem:[#allocation200_spill] sm:$0xff] }
 0x483   :  { %4136 = vmatpush2.bf16.msra.mxu1 %v5290_v38  ;;  %4161 = vmatpush1.bf16.msra.mxu0 %v5322_v34  ;;  %v5391_v38 = vcombine.high %v8662_v58, %v8661_v56  ;;  %v5390_v34 = vcombine.low %v8662_v58, %v8661_v56  ;;  %v8689_v56 = vld [vmem:[#allocation198_spill] sm:$0xff]  ;;  %v8690_v58 = vld [vmem:[#allocation196_spill] sm:$0xff] }
 0x484   :  { %4137 = vmatprep.subr.bf16.mxu1 %v5287_v3  ;;  %4162 = vmatprep.subr.bf16.mxu0 %v5319_v9  ;;  %v5355_v3 = vcombine.high %v8664_v36, %v8663_v52  ;;  %v5387_v9 = vcombine.high %v8666_v21, %v8665_v44 }
 0x487   :  { %4138 = vmatpush2.bf16.msra.mxu1 %v5286_v42  ;;  %4163 = vmatpush1.bf16.msra.mxu0 %v5318_v50  ;;  %v5354_v42 = vcombine.low %v8664_v36, %v8663_v52  ;;  %v5386_v50 = vcombine.low %v8666_v21, %v8665_v44  ;;  %v8692_v52 = vld [vmem:[#allocation160_spill] sm:$0xff] }
 0x488   :  { %4139 = vmatprep.subr.bf16.mxu1 %v5283_v28  ;;  %4164 = vmatprep.subr.bf16.mxu0 %v5315_v63  ;;  %v5351_v28 = vcombine.high %v8668_v15, %v8667_v13  ;;  %v5383_v63 = vcombine.high %v8670_v61, %v8669_v30  ;;  %v8694_v44 = vld [vmem:[#allocation192_spill] sm:$0xff] }
 0x48b   :  { %4140 = vmatpush2.bf16.msra.mxu1 %v5282_v48  ;;  %4165 = vmatpush1.bf16.msra.mxu0 %v5314_v24  ;;  %v5350_v48 = vcombine.low %v8668_v15, %v8667_v13  ;;  %v5382_v24 = vcombine.low %v8670_v61, %v8669_v30  ;;  %v8697_v15 = vld [vmem:[#allocation190_spill] sm:$0xff] }
 0x48c   :  { %4141 = vmatprep.subr.bf16.mxu1 %v5279_v59  ;;  %4166 = vmatprep.subr.bf16.mxu0 %v5311_v55  ;;  %v5347_v59 = vcombine.high %v8672_v57, %v8671_v26  ;;  %v5379_v55 = vcombine.high %v8674_v53, %v8673_v20 }
 0x48f   :  { %4142 = vmatpush2.bf16.msra.mxu1 %v5278_v16  ;;  %4167 = vmatpush1.bf16.msra.mxu0 %v5310_v18  ;;  %v5346_v16 = vcombine.low %v8672_v57, %v8671_v26  ;;  %v5378_v18 = vcombine.low %v8674_v53, %v8673_v20  ;;  %v8701_v57 = vld [vmem:[#allocation186_spill] sm:$0xff] }
 0x490   :  { %4168 = vmatprep.subr.bf16.mxu0 %v5371_v47  ;;  %4193 = vmatprep.subr.bf16.mxu1 %v5403_v10  ;;  %v5343_v47 = vcombine.high %v8676_v43, %v8675_v14  ;;  %v5375_v10 = vcombine.high %v8678_v32, %v8677_v8 }
 0x492   :  { %4144 = vmatmul.mubr.bf16.vlgmr.msra.gmra.mxu1 %v7364_v2  ;;  %v5362_v2 = vcombine.low %v8656_v60, %v8655_v33  ;;  %v8683_v33 = vld [vmem:[#allocation170_spill] sm:$0xff]  ;;  %v8684_v60 = vld [vmem:[#allocation168_spill] sm:$0xff] }
 0x493   :  { %4169 = vmatpush2.bf16.msra.mxu0 %v5370_v35  ;;  %4194 = vmatpush1.bf16.msra.mxu1 %v5402_v39  ;;  %v5342_v35 = vcombine.low %v8676_v43, %v8675_v14  ;;  %v5374_v39 = vcombine.low %v8678_v32, %v8677_v8  ;;  %v8704_v14 = vld [vmem:[#allocation148_spill] sm:$0xff] }
 0x494   :  { %4170 = vmatprep.subr.bf16.mxu0 %v5367_v11  ;;  %4195 = vmatprep.subr.bf16.mxu1 %v5399_v41  ;;  %v5435_v11 = vcombine.high %v8680_v49, %v8679_v5  ;;  %v5467_v41 = vcombine.high %v8682_v6, %v8681_v4  ;;  %v8706_v8 = vld [vmem:[#allocation180_spill] sm:$0xff] }
 0x495   :  { %4225 = vmatprep.mubr.bf16.mxu1 %v7380_v25  ;;  %v5358_v25 = vcombine.low %v8660_v7, %v8659_v19  ;;  %v8687_v19 = vld [vmem:[#allocation166_spill] sm:$0xff]  ;;  %v8688_v7 = vld [vmem:[#allocation164_spill] sm:$0xff] }
 0x497   :  { %4171 = vmatpush2.bf16.msra.mxu0 %v5366_v45  ;;  %4196 = vmatpush1.bf16.msra.mxu1 %v5398_v0  ;;  %v5434_v45 = vcombine.low %v8680_v49, %v8679_v5  ;;  %v5466_v0 = vcombine.low %v8682_v6, %v8681_v4  ;;  %v8707_v5 = vld [vmem:[#allocation146_spill] sm:$0xff]  ;;  %v8708_v49 = vld [vmem:[#allocation144_spill] sm:$0xff] }
 0x498   :  { %4172 = vmatprep.subr.bf16.mxu0 %v5363_v29  ;;  %4197 = vmatprep.subr.bf16.mxu1 %v5395_v62  ;;  %v5431_v29 = vcombine.high %v8684_v60, %v8683_v33  ;;  %v5463_v62 = vcombine.high %v8686_v51, %v8685_v31  ;;  %v8709_v4 = vld [vmem:[#allocation178_spill] sm:$0xff]  ;;  %v8710_v6 = vld [vmem:[#allocation176_spill] sm:$0xff] }
 0x49b   :  { %4173 = vmatpush2.bf16.msra.mxu0 %v5362_v2  ;;  %4198 = vmatpush1.bf16.msra.mxu1 %v5394_v17  ;;  %v5430_v2 = vcombine.low %v8684_v60, %v8683_v33  ;;  %v5462_v17 = vcombine.low %v8686_v51, %v8685_v31  ;;  %v7788_v60 = vld [vmem:[%s5985_s12] sm:$0xf] }
 0x49c   :  { %4174 = vmatprep.subr.bf16.mxu0 %v5359_v46  ;;  %4199 = vmatprep.subr.bf16.mxu1 %v5391_v38  ;;  %v5427_v46 = vcombine.high %v8688_v7, %v8687_v19  ;;  %v5459_v38 = vcombine.high %v8690_v58, %v8689_v56  ;;  %v8712_v31 = vld [vmem:[#allocation236_spill] sm:$0xff] }
 0x49f   :  { %4175 = vmatpush2.bf16.msra.mxu0 %v5358_v25  ;;  %4200 = vmatpush1.bf16.msra.mxu1 %v5390_v34  ;;  %v5458_v25 = vcombine.low %v8690_v58, %v8689_v56  ;;  %v8691_v34 = vld [vmem:[#allocation162_spill] sm:$0xff] }
 0x4a0   :  { %4176 = vmatprep.subr.bf16.mxu0 %v5355_v3  ;;  %4201 = vmatprep.subr.bf16.mxu1 %v5387_v9  ;;  %v5423_v36 = vcombine.high %v8692_v52, %v8691_v34  ;;  %v8693_v3 = vld [vmem:[#allocation194_spill] sm:$0xff] }
 0x4a1   :  { %v5455_v21 = vcombine.high %v8694_v44, %v8693_v3  ;;  %v5454_v9 = vcombine.low %v8694_v44, %v8693_v3  ;;  %v8715_v58 = vld [vmem:[#allocation234_spill] sm:$0xff] }
 0x4a3   :  { %4177 = vmatpush2.bf16.msra.mxu0 %v5354_v42  ;;  %4202 = vmatpush1.bf16.msra.mxu1 %v5386_v50  ;;  %v8695_v42 = vld [vmem:[#allocation158_spill] sm:$0xff]  ;;  %v8696_v50 = vld [vmem:[#allocation156_spill] sm:$0xff] }
 0x4a4   :  { %4178 = vmatprep.subr.bf16.mxu0 %v5351_v28  ;;  %4203 = vmatprep.subr.bf16.mxu1 %v5383_v63  ;;  %v5419_v13 = vcombine.high %v8696_v50, %v8695_v42  ;;  %v8698_v28 = vld [vmem:[#allocation188_spill] sm:$0xff]  ;;  %v5418_v61 = vcombine.low %v8696_v50, %v8695_v42 }
 0x4a5   :  { %v5451_v30 = vcombine.high %v8698_v28, %v8697_v15  ;;  %v5450_v63 = vcombine.low %v8698_v28, %v8697_v15  ;;  %v8720_v15 = vld [vmem:[#allocation228_spill] sm:$0xff] }
 0x4a7   :  { %4179 = vmatpush2.bf16.msra.mxu0 %v5350_v48  ;;  %4204 = vmatpush1.bf16.msra.mxu1 %v5382_v24  ;;  %v8699_v48 = vld [vmem:[#allocation154_spill] sm:$0xff]  ;;  %v8700_v24 = vld [vmem:[#allocation152_spill] sm:$0xff] }
 0x4a8   :  { %4180 = vmatprep.subr.bf16.mxu0 %v5347_v59  ;;  %4205 = vmatprep.subr.bf16.mxu1 %v5379_v55  ;;  %v5415_v26 = vcombine.high %v8700_v24, %v8699_v48  ;;  %v8702_v59 = vld [vmem:[#allocation184_spill] sm:$0xff]  ;;  %v5414_v53 = vcombine.low %v8700_v24, %v8699_v48 }
 0x4a9   :  { %v5447_v20 = vcombine.high %v8702_v59, %v8701_v57  ;;  %v5446_v55 = vcombine.low %v8702_v59, %v8701_v57 }
 0x4ab   :  { %4181 = vmatpush2.bf16.msra.mxu0 %v5346_v16  ;;  %4206 = vmatpush1.bf16.msra.mxu1 %v5378_v18  ;;  %v2446_v16 = vlaneseq  ;;  %v8703_v18 = vld [vmem:[#allocation150_spill] sm:$0xff] }
 0x4ac   :  { %4182 = vmatprep.subr.bf16.mxu0 %v5343_v47  ;;  %4207 = vmatprep.subr.bf16.mxu1 %v5375_v10  ;;  %v5411_v43 = vcombine.high %v8704_v14, %v8703_v18  ;;  %v8705_v47 = vld [vmem:[#allocation182_spill] sm:$0xff]  ;;  %v5410_v10 = vcombine.low %v8704_v14, %v8703_v18  ;;  %v8724_v18 = vld [vmem:[#allocation224_spill] sm:$0xff] }
 0x4ad   :  { %v5443_v32 = vcombine.high %v8706_v8, %v8705_v47 }
 0x4af   :  { %4183 = vmatpush2.bf16.msra.mxu0 %v5342_v35  ;;  %4208 = vmatpush1.bf16.msra.mxu1 %v5374_v39  ;;  %v5442_v35 = vcombine.low %v8706_v8, %v8705_v47  ;;  %v7776_v39 = vshrl.u32 %v2446_v16, 7  ;;  %v8723_v16 = vld [vmem:[#allocation226_spill] sm:$0xff] }
 0x4b0   :  { %4209 = vmatprep.subr.bf16.mxu1 %v5435_v11  ;;  %4234 = vmatprep.subr.bf16.mxu0 %v5467_v41  ;;  %v5407_v11 = vcombine.high %v8708_v49, %v8707_v5  ;;  %v5439_v41 = vcombine.high %v8710_v6, %v8709_v4  ;;  %v5487_v14 = vcombine.high %v8724_v18, %v8723_v16 }
 0x4b1   :  { %v2448_v33 = vsub.s32 0, %v7776_v39  ;;  %v5486_v8 = vcombine.low %v8724_v18, %v8723_v16 }
 0x4b2   :  { %4185 = vmatmul.mubr.bf16.vlgmr.msra.gmra.mxu0 %v7368_v37  ;;  %v5426_v37 = vcombine.low %v8688_v7, %v8687_v19  ;;  %v2452_v19 = vsub.s32 1, %v7776_v39 }
 0x4b3   :  { %4210 = vmatpush2.bf16.msra.mxu1 %v5434_v45  ;;  %4235 = vmatpush1.bf16.msra.mxu0 %v5466_v0  ;;  %v5406_v45 = vcombine.low %v8708_v49, %v8707_v5  ;;  %v5438_v0 = vcombine.low %v8710_v6, %v8709_v4  ;;  %v2449_v7 = vrot.slane %v7788_v60, %v2448_v33  ;;  %v8729_v49 = vld [vmem:[#allocation254_spill] sm:$0xff] }
 0x4b4   :  { %4211 = vmatprep.subr.bf16.mxu1 %v5431_v29  ;;  %4236 = vmatprep.subr.bf16.mxu0 %v5463_v62  ;;  %v8711_v29 = vld [vmem:[#allocation238_spill] sm:$0xff] }
 0x4b5   :  { %4266 = vmatprep.mubr.bf16.mxu0 %v7384_v27  ;;  %v5422_v27 = vcombine.low %v8692_v52, %v8691_v34  ;;  %v5499_v51 = vcombine.high %v8712_v31, %v8711_v29  ;;  %v8713_v62 = vld [vmem:[#allocation270_spill] sm:$0xff]  ;;  %v8718_v34 = vld [vmem:[#allocation264_spill] sm:$0xff] }
 0x4b7   :  { %4212 = vmatpush2.bf16.msra.mxu1 %v5430_v2  ;;  %4237 = vmatpush1.bf16.msra.mxu0 %v5462_v17  ;;  %v8714_v2 = vld [vmem:[#allocation268_spill] sm:$0xff] }
 0x4b8   :  { %4213 = vmatprep.subr.bf16.mxu1 %v5427_v46  ;;  %4238 = vmatprep.subr.bf16.mxu0 %v5459_v38  ;;  %v5531_v17 = vcombine.high %v8714_v2, %v8713_v62  ;;  %v5498_v46 = vcombine.low %v8712_v31, %v8711_v29  ;;  %v5530_v56 = vcombine.low %v8714_v2, %v8713_v62  ;;  %v8716_v38 = vld [vmem:[#allocation232_spill] sm:$0xff]  ;;  %v8733_v29 = vld [vmem:[#allocation250_spill] sm:$0xff] }
 0x4b9   :  { %v8734_v31 = vld [vmem:[#allocation248_spill] sm:$0xff] }
 0x4ba   :  { %v5510_v2 = vcombine.low %v8734_v31, %v8733_v29 }
 0x4bb   :  { %4214 = vmatpush2.bf16.msra.mxu1 %v5426_v37  ;;  %4239 = vmatpush1.bf16.msra.mxu0 %v5458_v25  ;;  %v5495_v37 = vcombine.high %v8716_v38, %v8715_v58  ;;  %v8717_v25 = vld [vmem:[#allocation266_spill] sm:$0xff] }
 0x4bc   :  { %4215 = vmatprep.subr.bf16.mxu1 %v5423_v36  ;;  %4240 = vmatprep.subr.bf16.mxu0 %v5455_v21  ;;  %v5527_v52 = vcombine.high %v8718_v34, %v8717_v25  ;;  %v2453_v36 = vrot.slane %v7788_v60, %v2452_v19  ;;  %v8736_v19 = vld [vmem:[#allocation212_spill] sm:$0xff] }
 0x4bf   :  { %4216 = vmatpush2.bf16.msra.mxu1 %v5422_v27  ;;  %4241 = vmatpush1.bf16.msra.mxu0 %v5454_v9  ;;  %v5494_v27 = vcombine.low %v8716_v38, %v8715_v58  ;;  %v5526_v9 = vcombine.low %v8718_v34, %v8717_v25  ;;  %v8739_v25 = vld [vmem:[#allocation210_spill] sm:$0xff]  ;;  %v8740_v34 = vld [vmem:[#allocation208_spill] sm:$0xff] }
 0x4c0   :  { %4217 = vmatprep.subr.bf16.mxu1 %v5419_v13  ;;  %4242 = vmatprep.subr.bf16.mxu0 %v5451_v30  ;;  %v8719_v13 = vld [vmem:[#allocation230_spill] sm:$0xff] }
 0x4c1   :  { %v5491_v28 = vcombine.high %v8720_v15, %v8719_v13  ;;  %v8721_v30 = vld [vmem:[#allocation262_spill] sm:$0xff]  ;;  %v5490_v59 = vcombine.low %v8720_v15, %v8719_v13  ;;  %v5828_v15 = vld [vmem:[%s5990_s20 + $0x68] sm:$0xff]  }
 0x4c2   :  { %v5827_v13 = vld [vmem:[%s5990_s20 + $0x30] sm:$0xff]  }
 0x4c3   :  { %4218 = vmatpush2.bf16.msra.mxu1 %v5418_v61  ;;  %4243 = vmatpush1.bf16.msra.mxu0 %v5450_v63  ;;  %v8722_v61 = vld [vmem:[#allocation260_spill] sm:$0xff] }
 0x4c4   :  { %4219 = vmatprep.subr.bf16.mxu1 %v5415_v26  ;;  %4244 = vmatprep.subr.bf16.mxu0 %v5447_v20  ;;  %v5523_v63 = vcombine.high %v8722_v61, %v8721_v30  ;;  %v5522_v20 = vcombine.low %v8722_v61, %v8721_v30  ;;  %v5830_v30 = vld [vmem:[%s5990_s20 + $0x60] sm:$0xff]  }
 0x4c5   :  { %v5831_v61 = vld [vmem:[%s5990_s20 + $0x20] sm:$0xff]  }
 0x4c7   :  { %4220 = vmatpush2.bf16.msra.mxu1 %v5414_v53  ;;  %4245 = vmatpush1.bf16.msra.mxu0 %v5446_v55 }
 0x4c8   :  { %4221 = vmatprep.subr.bf16.mxu1 %v5411_v43  ;;  %4246 = vmatprep.subr.bf16.mxu0 %v5443_v32  ;;  %v8726_v43 = vld [vmem:[#allocation256_spill] sm:$0xff] }
 0x4cb   :  { %4222 = vmatpush2.bf16.msra.mxu1 %v5410_v10  ;;  %4247 = vmatpush1.bf16.msra.mxu0 %v5442_v35  ;;  %v8727_v10 = vld [vmem:[#allocation222_spill] sm:$0xff]  ;;  %v8728_v35 = vld [vmem:[#allocation220_spill] sm:$0xff] }
 0x4cc   :  { %4223 = vmatprep.subr.bf16.mxu1 %v5407_v11  ;;  %4248 = vmatprep.subr.bf16.mxu0 %v5439_v41  ;;  %v5483_v5 = vcombine.high %v8728_v35, %v8727_v10  ;;  %v8730_v11 = vld [vmem:[#allocation252_spill] sm:$0xff]  ;;  %v5482_v6 = vcombine.low %v8728_v35, %v8727_v10  ;;  %v5841_v10 = vld [vmem:[%s5990_s20 + $0xb8] sm:$0xff]   ;;  %v5842_v35 = vld [vmem:[%s5990_s20 + $0xf0] sm:$0xff]  }
 0x4cd   :  { %v5515_v4 = vcombine.high %v8730_v11, %v8729_v49  ;;  %v5514_v41 = vcombine.low %v8730_v11, %v8729_v49  ;;  %v5844_v49 = vld [vmem:[%s5990_s20 + $0xe8] sm:$0xff]  }
 0x4ce   :  { %v5845_v11 = vld [vmem:[%s5990_s20 + $0xa8] sm:$0xff]  }
 0x4cf   :  { %4224 = vmatpush2.bf16.msra.mxu1 %v5406_v45  ;;  %4249 = vmatpush1.bf16.msra.mxu0 %v5438_v0  ;;  %v8731_v45 = vld [vmem:[#allocation218_spill] sm:$0xff]  ;;  %v8732_v0 = vld [vmem:[#allocation216_spill] sm:$0xff] }
 0x4d0   :  { %4250 = vmatprep.subr.bf16.mxu0 %v5499_v51  ;;  %4275 = vmatprep.subr.bf16.mxu1 %v5531_v17  ;;  %v5479_v33 = vcombine.high %v8732_v0, %v8731_v45  ;;  %v5511_v51 = vcombine.high %v8734_v31, %v8733_v29  ;;  %v5478_v62 = vcombine.low %v8732_v0, %v8731_v45  ;;  %v8735_v17 = vld [vmem:[#allocation214_spill] sm:$0xff]  ;;  %v5849_v45 = vld [vmem:[%s5990_s20 + $0x98] sm:$0xff]  }
 0x4d1   :  { %v5474_v38 = vcombine.low %v8736_v19, %v8735_v17  ;;  %v5850_v29 = vld [vmem:[%s5990_s20 + $0xd0] sm:$0xff]  }
 0x4d2   :  { %v3940_v3 = vpop.f32.mrf.mxu0  ;;  %v3981_v44 = vpop.f32.mrf.mxu1  ;;  %4226 = vmatmul.mubr.bf16.vlgmr.msra.gmra.mxu1 %v7512_v54 }
 0x4d3   :  { %v3941_v21 = vadd.f32 %v3940_v3, %v2449_v7  ;;  %4251 = vmatpush2.bf16.msra.mxu0 %v5498_v46  ;;  %4276 = vmatpush1.bf16.msra.mxu1 %v5530_v56  ;;  %v5475_v7 = vcombine.high %v8736_v19, %v8735_v17  ;;  %v8737_v46 = vld [vmem:[#allocation246_spill] sm:$0xff]  ;;  %v8738_v56 = vld [vmem:[#allocation244_spill] sm:$0xff] }
 0x4d4   :  { %v3942_v42 = vpop.f32.mrf.mxu0  ;;  %v3983_v50 = vpop.f32.mrf.mxu1  ;;  %4252 = vmatprep.subr.bf16.mxu0 %v5495_v37  ;;  %4277 = vmatprep.subr.bf16.mxu1 %v5527_v52  ;;  %v5507_v58 = vcombine.high %v8738_v56, %v8737_v46  ;;  %v5506_v37 = vcombine.low %v8738_v56, %v8737_v46  ;;  %v5471_v52 = vcombine.high %v8740_v34, %v8739_v25  ;;  %v8742_v3 = vld [vmem:[#allocation240_spill] sm:$0xff]  ;;  %v5853_v56 = vld [vmem:[%s5990_s20 + $0x88] sm:$0xff]  }
 0x4d5   :  { %v7814_v54 = vadd.f32 %v3981_v44, %v3941_v21  ;;  %v3943_v48 = vadd.f32 %v3942_v42, %v2453_v36  ;;  %4307 = vmatprep.mubr.bf16.mxu1 %v8594_v12  ;;  %v8725_v12 = vld [vmem:[#allocation258_spill] sm:$0xff]  ;;  %v5470_v21 = vcombine.low %v8740_v34, %v8739_v25  ;;  %v5825_v42 = vld [vmem:[%s5990_s20 + $0x38] sm:$0xff]   ;;  %v5855_v34 = vld [vmem:[%s5990_s20 + $0x80] sm:$0xff]  }
 0x4d6   :  { %v3944_v24 = vpop.f32.mrf.mxu0  ;;  %v3985_v26 = vpop.f32.mrf.mxu1  ;;  %v5519_v47 = vcombine.high %v8726_v43, %v8725_v12  ;;  %v5518_v32 = vcombine.low %v8726_v43, %v8725_v12  ;;  %v8741_v36 = vld [vmem:[#allocation242_spill] sm:$0xff] }
 0x4d7   :  { %v7817_v57 = vadd.f32 %v3983_v50, %v3943_v48  ;;  %4253 = vmatpush2.bf16.msra.mxu0 %v5494_v27  ;;  %4278 = vmatpush1.bf16.msra.mxu1 %v5526_v9  ;;  %v5503_v44 = vcombine.high %v8742_v3, %v8741_v36  ;;  %v5502_v27 = vcombine.low %v8742_v3, %v8741_v36  ;;  %v5824_v9 = vld [vmem:[%s5990_s20 + $0x78] sm:$0xff]   ;;  %v5826_v50 = vld [vmem:[%s5990_s20 + $0x70] sm:$0xff]   ;;  %v5836_v24 = vld [vmem:[%s5990_s20 + $0x48] sm:$0xff]  }
 0x4d8   :  { %v3945_v53 = vpop.f32.mrf.mxu0  ;;  %v3986_v55 = vpop.f32.mrf.mxu1  ;;  %4254 = vmatprep.subr.bf16.mxu0 %v5491_v28  ;;  %4279 = vmatprep.subr.bf16.mxu1 %v5523_v63  ;;  %v5829_v28 = vld [vmem:[%s5990_s20 + $0x28] sm:$0xff]   ;;  %v5834_v63 = vld [vmem:[%s5990_s20 + $0x50] sm:$0xff]  }
 0x4d9   :  { %v5835_v48 = vld [vmem:[%s5990_s20 + $0x10] sm:$0xff]   ;;  %v5837_v26 = vld [vmem:[%s5990_s20 + $0x8] sm:$0xff]   ;;  %v8743_v53 = vmov 0.0  }
 0x4db   :  { %4255 = vmatpush2.bf16.msra.mxu0 %v5490_v59  ;;  %4280 = vmatpush1.bf16.msra.mxu1 %v5522_v20  ;;  %v5838_v59 = vld [vmem:[%s5990_s20 + $0x40] sm:$0xff]  }
 0x4dc   :  { %4256 = vmatprep.subr.bf16.mxu0 %v5487_v14  ;;  %4281 = vmatprep.subr.bf16.mxu1 %v5519_v47  ;;  %v5839_v20 = vld [vmem:[%s5990_s20] sm:$0xff]  }
 0x4df   :  { %4257 = vmatpush2.bf16.msra.mxu0 %v5486_v8  ;;  %4282 = vmatpush1.bf16.msra.mxu1 %v5518_v32  ;;  %v5840_v32 = vld [vmem:[%s5990_s20 + $0xf8] ss:$0 sps:$4 sm:$0x33]  }
 0x4e0   :  { %4258 = vmatprep.subr.bf16.mxu0 %v5483_v5  ;;  %4283 = vmatprep.subr.bf16.mxu1 %v5515_v4  ;;  %v5843_v5 = vld [vmem:[%s5990_s20 + $0xb0] sm:$0xff]   ;;  %v5846_v4 = vld [vmem:[%s5990_s20 + $0xe0] sm:$0xff]  }
 0x4e3   :  { %4259 = vmatpush2.bf16.msra.mxu0 %v5482_v6  ;;  %4284 = vmatpush1.bf16.msra.mxu1 %v5514_v41  ;;  %v5847_v6 = vld [vmem:[%s5990_s20 + $0xa0] sm:$0xff]   ;;  %v5848_v41 = vld [vmem:[%s5990_s20 + $0xd8] sm:$0xff]  }
 0x4e4   :  { %4260 = vmatprep.subr.bf16.mxu0 %v5479_v33  ;;  %4285 = vmatprep.subr.bf16.mxu1 %v5511_v51  ;;  %v5851_v51 = vld [vmem:[%s5990_s20 + $0x90] sm:$0xff]  }
 0x4e7   :  { %4261 = vmatpush2.bf16.msra.mxu0 %v5478_v62  ;;  %4286 = vmatpush1.bf16.msra.mxu1 %v5510_v2 }
 0x4e8   :  { %4262 = vmatprep.subr.bf16.mxu0 %v5475_v7  ;;  %4287 = vmatprep.subr.bf16.mxu1 %v5507_v58  ;;  %v5852_v7 = vld [vmem:[%s5990_s20 + $0xc8] sm:$0xff]  }
 0x4eb   :  { %4263 = vmatpush2.bf16.msra.mxu0 %v5474_v38  ;;  %4288 = vmatpush1.bf16.msra.mxu1 %v5506_v37  ;;  %v5854_v37 = vld [vmem:[%s5990_s20 + $0xc0] sm:$0xff]  }
 0x4ec   :  { %4264 = vmatprep.subr.bf16.mxu0 %v5471_v52  ;;  %4289 = vmatprep.subr.bf16.mxu1 %v5503_v44 }
 0x4ef   :  { %4265 = vmatpush2.bf16.msra.mxu0 %v5470_v21  ;;  %4290 = vmatpush1.bf16.msra.mxu1 %v5502_v27 }
 0x4f0   :  { %5598 = vmatprep.subr.bf16.mxu0 %v5824_v9  ;;  %5740 = vmatprep.subr.msk.bf16.mxu1 %vm2089_vm5, %v5840_v32 }
 0x4f2   :  { %4267 = vmatmul.mubr.bf16.vlgmr.msra.gmra.mxu0 %v7516_v23  ;;  %4308 = vmatmul.mubr.bf16.vlgmr.msra.gmra.mxu1 %v7588_v22  ;;  %v5832_v23 = vld [vmem:[%s5990_s20 + $0x58] sm:$0xff]  }
 0x4f3   :  { %5599 = vmatpush3.bf16.msra.mxu0 %v5825_v42  ;;  %v5833_v22 = vld [vmem:[%s5990_s20 + $0x18] sm:$0xff]   ;;  %5621 = vmatpush3.bf16.msra.mxu1 %v5841_v10 }
 0x4f4   :  { %5600 = vmatprep.subr.bf16.mxu0 %v5826_v50  ;;  %5622 = vmatprep.subr.bf16.mxu1 %v5842_v35 }
 0x4f7   :  { %5601 = vmatpush3.bf16.msra.mxu0 %v5827_v13  ;;  %5623 = vmatpush3.bf16.msra.mxu1 %v5843_v5  ;;  %v5856_v13 = vld [vmem:[%s6080_s17 + $0x18] sm:$0x3f]  }
 0x4f8   :  { %5602 = vmatprep.subr.bf16.mxu0 %v5828_v15  ;;  %5624 = vmatprep.subr.bf16.mxu1 %v5844_v49  ;;  %v4711_v15 = vsel %vm1948_vm2, %v5856_v13, 0  ;;  %v8750_v13 = vmov 65535  }
 0x4fb   :  { %5603 = vmatpush3.bf16.msra.mxu0 %v5829_v28  ;;  %5625 = vmatpush3.bf16.msra.mxu1 %v5845_v11 }
 0x4fc   :  { %5604 = vmatprep.subr.bf16.mxu0 %v5830_v30  ;;  %5626 = vmatprep.subr.bf16.mxu1 %v5846_v4 }
 0x4ff   :  { %5605 = vmatpush3.bf16.msra.mxu0 %v5831_v61  ;;  %5627 = vmatpush3.bf16.msra.mxu1 %v5847_v6 }
 0x500   :  { %5606 = vmatprep.subr.bf16.mxu0 %v5832_v23  ;;  %5628 = vmatprep.subr.bf16.mxu1 %v5848_v41 }
 0x503   :  { %5607 = vmatpush3.bf16.msra.mxu0 %v5833_v22  ;;  %5629 = vmatpush3.bf16.msra.mxu1 %v5849_v45  ;;  %v2456_v22 = vsub.s32 2, %v7776_v39 }
 0x504   :  { %5608 = vmatprep.subr.bf16.mxu0 %v5834_v63  ;;  %5630 = vmatprep.subr.bf16.mxu1 %v5850_v29  ;;  %v2460_v63 = vsub.s32 3, %v7776_v39 }
 0x507   :  { %5609 = vmatpush3.bf16.msra.mxu0 %v5835_v48  ;;  %5631 = vmatpush3.bf16.msra.mxu1 %v5851_v51  ;;  %v2457_v48 = vrot.slane %v7788_v60, %v2456_v22  ;;  %v4958_v22 = vld [vmem:[%s8749_s21] sm:$0xf] }
 0x508   :  { %5610 = vmatprep.subr.bf16.mxu0 %v5836_v24  ;;  %5632 = vmatprep.subr.bf16.mxu1 %v5852_v7  ;;  %v2461_v24 = vrot.slane %v7788_v60, %v2460_v63  ;;  %v5860_v7 = vld [vmem:[%s6080_s17] sm:$0xff]  }
 0x50b   :  { %5611 = vmatpush3.bf16.msra.mxu0 %v5837_v26  ;;  %5633 = vmatpush3.bf16.msra.mxu1 %v5853_v56 }
 0x50c   :  { %5612 = vmatprep.subr.bf16.mxu0 %v5838_v59  ;;  %5634 = vmatprep.subr.bf16.mxu1 %v5854_v37 }
 0x50f   :  { %5613 = vmatpush3.bf16.msra.mxu0 %v5839_v20  ;;  %5635 = vmatpush3.bf16.msra.mxu1 %v5855_v34 }
 0x510   :  { %5686 = vmatprep.subr.bf16.mxu0 %v8743_v53  ;;  %5698 = vmatprep.subr.bf16.mxu1 %v8743_v53 }
 0x512   :  { %v4022_v55 = vpop.f32.mrf.mxu0  ;;  %v4063_v16 = vpop.f32.mrf.mxu1 }
 0x513   :  { %v4023_v0 = vadd.f32 %v4022_v55, %v7814_v54 }
 0x514   :  { %v4024_v18 = vpop.f32.mrf.mxu0  ;;  %v4065_v14 = vpop.f32.mrf.mxu1 }
 0x515   :  { %v4025_v33 = vadd.f32 %v4024_v18, %v7817_v57  ;;  %v4064_v31 = vadd.f32 %v4063_v16, %v4023_v0  ;;  %v5857_v0 = vld [vmem:[%s6080_s17 + $0x10] sm:$0xff]  }
 0x516   :  { %v4026_v12 = vpop.f32.mrf.mxu0  ;;  %v4067_v43 = vpop.f32.mrf.mxu1 }
 0x517   :  { %v4066_v2 = vadd.f32 %v4065_v14, %v4025_v33  ;;  %v5858_v33 = vld [vmem:[%s8744_s0] sm:$0x3f]  }
 0x518   :  { %v4027_v47 = vpop.f32.mrf.mxu0  ;;  %v4068_v8 = vpop.f32.mrf.mxu1  ;;  %v4763_v51 = vsel %vm1948_vm2, %v5858_v33, 0 }
 0x532   :  { %v4104_v62 = vpop.f32.mrf.mxu0 }
 0x533   :  { %v4105_v17 = vadd.f32 %v4104_v62, %v4064_v31 }
 0x534   :  { %v4106_v19 = vpop.f32.mrf.mxu0 }
 0x535   :  { %v4107_v46 = vadd.f32 %v4106_v19, %v4066_v2  ;;  %v4316_v58 = vmax.f32 %v4105_v17, 0.0  ;;  %v5859_v2 = vld [vmem:[%s6080_s17 + $0x8] sm:$0xff]   ;;  %v4673_v17 = vpack.c.bf16 %v2133_v40, %v2133_v40  ;;  %v5532_v40 = vld [vmem:[%s8746_s9] ss:$0 sm:$0xff]  ;;  %s8748_s17 = sld [smem:[#allocation23_spill]] }
 0x536   :  { %v4108_v38 = vpop.f32.mrf.mxu0 }
 0x537   :  { %v4317_v54 = vmax.f32 %v4107_v46, 0.0  ;;  %v4383_v52 = vpack.c.bf16 %v4316_v58, %v4316_v58  ;;  %v5861_v46 = vld [vmem:[%s8745_s5 + $0x10] ss:$0 sps:$4 sm:$0xff]  }
 0x538   :  { %v4109_v57 = vpop.f32.mrf.mxu0  ;;  %v4848_v1 = vsel %vm4846_vm9, %v5861_v46, 0 }
 0x539   :  { %v4384_v25 = vpack.c.bf16 %v4317_v54, %v4317_v54 }
 0x53b   :  { %4622 = vmatprep.mubr.bf16.mxu0 %v4384_v25 }
 0x53c   :  { %4623 = vmatmul.mubr.bf16.vlgmr.msra.gmra.mxu0 %v4383_v52 }
 0x53d   :  { %5694 = vmatprep.mubr.msk.bf16.mxu0 %vm5906_vm3, %v8743_v53  ;;  %5687 = vmatpush3.bf16.msra.mxu0 %v4711_v15  ;;  %v5016_v15 = vsel %vm5015_vm11, 4294967295, %v8750_v13 }
 0x53e   :  { %5688 = vmatprep.subr.bf16.mxu0 %v8743_v53  ;;  %v5017_v63 = vsel %vm4846_vm9, %v5016_v15, 0 }
 0x541   :  { %5689 = vmatpush3.bf16.msra.mxu0 %v5857_v0 }
 0x542   :  { %5690 = vmatprep.subr.bf16.mxu0 %v8743_v53 }
 0x545   :  { %5691 = vmatpush3.bf16.msra.mxu0 %v5859_v2  ;;  %v5070_v2 = vld [vmem:[%s8755_s14] sm:$0x7] }
 0x546   :  { %5692 = vmatprep.subr.bf16.mxu0 %v8743_v53 }
 0x549   :  { %5693 = vmatpush3.bf16.msra.mxu0 %v5860_v7 }
 0x54a   :  { %5714 = vmatprep.subr.bf16.mxu0 %v8743_v53 }
 0x552   :  { %v4145_v36 = vpop.f32.mrf.mxu1 }
 0x553   :  { %v4146_v26 = vadd.f32 %v4145_v36, %v2457_v48 }
 0x554   :  { %v4147_v3 = vpop.f32.mrf.mxu1 }
 0x555   :  { %v4148_v59 = vadd.f32 %v4147_v3, %v2461_v24 }
 0x556   :  { %v4149_v44 = vpop.f32.mrf.mxu1 }
 0x558   :  { %v4150_v21 = vpop.f32.mrf.mxu1 }
 0x572   :  { %v4186_v27 = vpop.f32.mrf.mxu0 }
 0x573   :  { %v4187_v20 = vadd.f32 %v4186_v27, %v4146_v26  ;;  %v5862_v27 = vld [vmem:[%s8745_s5 + $0x8] sm:$0xff]  }
 0x574   :  { %v4188_v9 = vpop.f32.mrf.mxu0 }
 0x575   :  { %v4189_v55 = vadd.f32 %v4188_v9, %v4148_v59  ;;  %v5863_v9 = vld [vmem:[%s8745_s5] sm:$0xff]   ;;  %v5019_v59 = vand.u32 %v5017_v63, %v4958_v22 }
 0x576   :  { %v4190_v42 = vpop.f32.mrf.mxu0 }
 0x577   :  { %v5864_v42 = vld [vmem:[%s8747_s13 + $0x8] ss:$0 sps:$4 sm:$0x33]  }
 0x578   :  { %v4191_v50 = vpop.f32.mrf.mxu0 }
 0x579   :  { %v4915_v50 = vsel %vm2089_vm5, %v5864_v42, 0 }
 0x592   :  { %v4227_v28 = vpop.f32.mrf.mxu1 }
 0x593   :  { %v4228_v16 = vadd.f32 %v4227_v28, %v4187_v20 }
 0x594   :  { %v4229_v30 = vpop.f32.mrf.mxu1 }
 0x595   :  { %v4230_v12 = vadd.f32 %v4229_v30, %v4189_v55  ;;  %v5573_v30 = vld [vmem:[%s8748_s17] ss:$0 sm:$0xff] }
 0x596   :  { %v4231_v61 = vpop.f32.mrf.mxu1 }
 0x598   :  { %v4232_v23 = vpop.f32.mrf.mxu1 }
 0x5b2   :  { %v4268_v18 = vpop.f32.mrf.mxu0  ;;  %v4309_v14 = vpop.f32.mrf.mxu1 }
 0x5b3   :  { %v4269_v43 = vadd.f32 %v4268_v18, %v4228_v16  ;;  %v5865_v16 = vld [vmem:[%s8747_s13] sm:$0xff]  }
 0x5b4   :  { %v4270_v47 = vpop.f32.mrf.mxu0  ;;  %v4311_v8 = vpop.f32.mrf.mxu1  ;;  %v5574_v18 = vld [vmem:[%s8751_s25] ss:$0 sm:$0xff] }
 0x5b5   :  { %v4310_v32 = vadd.f32 %v4309_v14, %v4269_v43  ;;  %v4271_v10 = vadd.f32 %v4270_v47, %v4230_v12  ;;  %v4961_v47 = vld [vmem:[%s8752_s29] sm:$0x1] }
 0x5b6   :  { %v4272_v39 = vpop.f32.mrf.mxu0  ;;  %v4313_v35 = vpop.f32.mrf.mxu1 }
 0x5b7   :  { %v4312_v5 = vadd.f32 %v4311_v8, %v4271_v10  ;;  %v4318_v49 = vmax.f32 %v4310_v32, 0.0  ;;  %v4969_v39 = vsel %vm4967_vm13, %v4961_v47, 0 }
 0x5b8   :  { %v4273_v60 = vpop.f32.mrf.mxu0  ;;  %v4314_v11 = vpop.f32.mrf.mxu1 }
 0x5b9   :  { %v4319_v4 = vmax.f32 %v4312_v5, 0.0  ;;  %v4385_v41 = vpack.c.bf16 %v4318_v49, %v4318_v49  ;;  %v4960_v5 = vld [vmem:[%s8753_s3] sm:$0xff] }
 0x5ba   :  { %v4962_v49 = vpack.c.bf16 %v4960_v5, %v4960_v5  ;;  %v5579_v60 = vld [vmem:[%s8754_s8] ss:$0 sm:$0xff] }
 0x5bb   :  { %v4386_v6 = vpack.c.bf16 %v4319_v4, %v4319_v4 }
 0x5bd   :  { %5565 = vmatprep.mubr.msk.bf16.mxu1 %vm4583_vm7, %v4386_v6 }
 0x5be   :  { %4663 = vmatmul.mubr.bf16.vlgmr.msra.gmra.mxu1 %v4385_v41 }
 0x5bf   :  { %5700 = vmatprep.mubr.msk.bf16.mxu1 %vm5906_vm3, %v8743_v53  ;;  %5699 = vmatpush3.bf16.msra.mxu1 %v4763_v51 }
 0x5c0   :  { %5704 = vmatprep.subr.bf16.mxu1 %v8743_v53 }
 0x5c6   :  { %5701 = vmatmul.mubr.msk.bf16.vlgmr.msra.gmra.mxu1 %vm4758_vm8, %v4673_v17  ;;  %v5084_v17 = vsel %vm5015_vm11, %v5070_v2, 0 }
 0x5c7   :  { %5710 = vmatprep.mubr.msk.bf16.mxu1 %vm5906_vm3, %v8743_v53  ;;  %5705 = vmatpush3.bf16.msra.mxu1 %v4848_v1 }
 0x5c8   :  { %5706 = vmatprep.subr.bf16.mxu1 %v8743_v53 }
 0x5cb   :  { %5707 = vmatpush3.bf16.msra.mxu1 %v5862_v27 }
 0x5cc   :  { %5708 = vmatprep.subr.bf16.mxu1 %v8743_v53 }
 0x5cf   :  { %5709 = vmatpush3.bf16.msra.mxu1 %v5863_v9 }
 0x5d0   :  { %5728 = vmatprep.subr.bf16.mxu1 %v8743_v53 }
 0x5fc   :  { %v5614_v45 = vpop.f32.mrf.mxu0 }
 0x5fe   :  { %v5615_v29 = vpop.f32.mrf.mxu0 }
 0x5ff   :  { %v5616_v31 = vadd.f32 %v5615_v29, %v5614_v45 }
 0x600   :  { %v5617_v62 = vpop.f32.mrf.mxu0 }
 0x601   :  { %v4625_v38 = vadd.f32 %v5616_v31, %v5532_v40 }
 0x602   :  { %v5618_v19 = vpop.f32.mrf.mxu0 }
 0x603   :  { %v5585_v19 = vld [vmem:[%s8756_s19] ss:$0 sm:$0xff] }
 0x67e   :  { %v5636_v56 = vpop.f32.mrf.mxu1 }
 0x680   :  { %v5637_v58 = vpop.f32.mrf.mxu1 }
 0x681   :  { %v5638_v54 = vadd.f32 %v5637_v58, %v5636_v56 }
 0x682   :  { %v5639_v57 = vpop.f32.mrf.mxu1 }
 0x683   :  { %v4665_v37 = vadd.f32 %v5638_v54, %v4625_v38  ;;  %v5586_v54 = vld [vmem:[%s6220_s11] ss:$0 sm:$0xff] }
 0x684   :  { %v5640_v25 = vpop.f32.mrf.mxu1 }
 0x685   :  { %v4670_v34 = vmax.f32 %v4665_v37, 0.0 }
 0x686   :  { %v4799_v36 = vpop.f32.mrf.mxu1 }
 0x687   :  { %v4682_v52 = vpack.c.bf16 %v4670_v34, %v4670_v34 }
 0x688   :  { %v5702_v3 = vpop.f32.mrf.mxu1 }
 0x689   :  { %5695 = vmatmul.mubr.msk.bf16.vlgmr.msra.gmra.mxu0 %vm4706_vm10, %v4682_v52 }
 0x68a   :  { %5718 = vmatprep.mubr.msk.bf16.mxu0 %vm5906_vm3, %v8743_v53  ;;  %v4802_v44 = vpop.f32.mrf.mxu1  ;;  %5715 = vmatpush3.bf16.msra.mxu0 %v4915_v50 }
 0x68b   :  { %5716 = vmatprep.subr.bf16.mxu0 %v8743_v53 }
 0x68c   :  { %v5703_v21 = vpop.f32.mrf.mxu1 }
 0x68e   :  { %5717 = vmatpush3.bf16.msra.mxu0 %v5865_v16 }
 0x68f   :  { %5722 = vmatprep.subr.bf16.mxu0 %v8743_v53 }
 0x749   :  { %v4747_v28 = vpop.f32.mrf.mxu0 }
 0x74a   :  { %v4800_v61 = vadd.f32 %v4799_v36, %v4747_v28 }
 0x74b   :  { %v5696_v23 = vpop.f32.mrf.mxu0 }
 0x74c   :  { %v4812_v48 = vadd.f32 %v5573_v30, %v4800_v61 }
 0x74d   :  { %v4750_v24 = vpop.f32.mrf.mxu0 }
 0x74e   :  { %v4813_v26 = vmax.f32 %v4812_v48, 0.0 }
 0x74f   :  { %v5697_v20 = vpop.f32.mrf.mxu0 }
 0x750   :  { %v4819_v55 = vpack.c.bf16 %v4813_v26, %v4813_v26 }
 0x752   :  { %5711 = vmatmul.mubr.msk.bf16.vlgmr.msra.gmra.mxu1 %vm4842_vm12, %v4819_v55 }
 0x753   :  { %5729 = vmatpush3.bf16.msra.mxu1 %v5019_v59  ;;  %5730 = vmatprep.mubr.msk.bf16.mxu1 %vm5906_vm3, %v8743_v53 }
 0x812   :  { %v4884_v14 = vpop.f32.mrf.mxu1 }
 0x813   :  { %v4885_v12 = vadd.f32 %v5574_v18, %v4884_v14 }
 0x814   :  { %v5712_v43 = vpop.f32.mrf.mxu1 }
 0x815   :  { %v4890_v8 = vmax.f32 %v4885_v12, 0.0 }
 0x816   :  { %v4887_v32 = vpop.f32.mrf.mxu1 }
 0x817   :  { %v4894_v10 = vpack.c.bf16 %v4890_v8, %v4890_v8 }
 0x818   :  { %v5713_v35 = vpop.f32.mrf.mxu1 }
 0x819   :  { %5719 = vmatmul.mubr.msk.bf16.vlgmr.msra.gmra.mxu0 %vm2085_vm6, %v4894_v10 }
 0x81a   :  { %5723 = vmatpush3.bf16.msra.mxu0 %v4969_v39  ;;  %5724 = vmatprep.mubr.msk.bf16.mxu0 %vm5906_vm3, %v8743_v53 }
 0x81b   :  { %5734 = vmatprep.subr.bf16.mxu0 %v8743_v53 }
 0x821   :  { %5725 = vmatmul.mubr.msk.bf16.vlgmr.msra.gmra.mxu0 %vm4963_vm14, %v4962_v49 }
 0x822   :  { %5736 = vmatprep.mubr.msk.bf16.mxu0 %vm5906_vm3, %v8743_v53  ;;  %5735 = vmatpush3.bf16.msra.mxu0 %v5084_v17 }
 0x8d9   :  { %v4951_v11 = vpop.f32.mrf.mxu0 }
 0x8da   :  { %v4952_v4 = vadd.f32 %v5579_v60, %v4951_v11 }
 0x8db   :  { %v5720_v6 = vpop.f32.mrf.mxu0 }
 0x8dc   :  { %v4957_v41 = vmax.f32 %v4952_v4, 0.0 }
 0x8dd   :  { %v4954_v45 = vpop.f32.mrf.mxu0 }
 0x8de   :  { %v4959_v0 = vpack.c.bf16 %v4957_v41, %v4957_v41 }
 0x8df   :  { %v5721_v33 = vpop.f32.mrf.mxu0 }
 0x8e0   :  { %5731 = vmatmul.mubr.msk.bf16.vlgmr.msra.gmra.mxu1 %vm5011_vm15, %v4959_v0 }
 0x8e1   :  { %v5005_v29 = vpop.f32.mrf.mxu0 }
 0x8e3   :  { %v5726_v31 = vpop.f32.mrf.mxu0 }
 0x8e5   :  { %v5008_v51 = vpop.f32.mrf.mxu0 }
 0x8e7   :  { %v5727_v62 = vpop.f32.mrf.mxu0 }
 0x9a0   :  { %v5055_v53 = vpop.f32.mrf.mxu1 }
 0x9a1   :  { %v5056_v7 = vadd.f32 %v5055_v53, %v5005_v29 }
 0x9a2   :  { %v5732_v46 = vpop.f32.mrf.mxu1 }
 0x9a3   :  { %v5068_v1 = vadd.f32 %v5585_v19, %v5056_v7 }
 0x9a4   :  { %v5058_v40 = vpop.f32.mrf.mxu1 }
 0x9a5   :  { %v5069_v56 = vmax.f32 %v5068_v1, 0.0 }
 0x9a6   :  { %v5733_v58 = vpop.f32.mrf.mxu1 }
 0x9a7   :  { %v5071_v38 = vpack.c.bf16 %v5069_v56, %v5069_v56 }
 0x9a9   :  { %5737 = vmatmul.mubr.msk.bf16.vlgmr.msra.gmra.mxu0 %vm5079_vm0, %v5071_v38 }
 0xa69   :  { %v5120_v57 = vpop.f32.mrf.mxu0 }
 0xa6a   :  { %v5121_v37 = vadd.f32 %v5586_v54, %v5120_v57 }
 0xa6b   :  { %v5738_v25 = vpop.f32.mrf.mxu0 }
 0xa6c   :  { %v5126_v34 = vmax.f32 %v5121_v37, 0.0 }
 0xa6d   :  { %v5123_v52 = vpop.f32.mrf.mxu0 }
 0xa6e   :  { %5127 = vst [vmem:[%s6234_s27] sm:$0xff] %v5126_v34 }
 0xa6f   :  { %v5739_v36 = vpop.f32.mrf.mxu0 }
 0xa70   :  { %5132 = vsyncmov [#allocation8] }
 0xa73   :  { %s5133_s24 = vpop.sfrf %5132 }
 0xa74   :  { %p5588_p0 = scmp.ne.s32.totalorder %s5133_s24, 0 }
 0xa76   :  { %5137 = shalt.err (%p5588_p0)  }

</bundles_post_ra>
